<compile_context>
chip_gen: v6e
topology: v6e:2x2x1
jax: 0.10.0
libtpu: 0.0.40
codegen_flags: <defaults>
</compile_context>

<pallas_src>
import math

import numpy as np
import jax
import jax.numpy as jnp
from jax.experimental import pallas as pl
from jax.experimental.pallas import tpu as pltpu


# ---------------------------------------------------------------------------
# Fused Pallas kernel: 4 x (conv3x3 + bias + ReLU + maxpool2x2) on one sample-group
# ---------------------------------------------------------------------------
def _make_kernel(meta):
    """meta: per-layer (h, w, cout) static Python ints (h, w = conv-input spatial dims)."""

    def kernel(x_ref, *refs):
        o_ref = refs[-1]
        params = refs[:-1]

        a = x_ref[0]                                        # (spb*h, w*cin) f32 row slab
        for l, (h, w, cout) in enumerate(meta):
            wd, bias, eh, ew = params[4 * l: 4 * l + 4]
            m = a.shape[0]
            lanes = w * cout

            # --- conv 3x3 (padding=1) ------------------------------------------------
            # Vertical +/-1 shift = sublane roll + per-sample border mask (also kills the
            # wrapped row); horizontal taps + channel mixing live in the block-banded wd[k].
            row = jax.lax.broadcasted_iota(jnp.int32, (m, 1), 0)
            a_dn = jnp.where(row % h != 0,
                             pltpu.roll(a, 1, axis=0), 0.0)          # a[i-1], 0 at top row
            a_up = jnp.where(row % h != h - 1,
                             pltpu.roll(a, m - 1, axis=0), 0.0)      # a[i+1], 0 at bottom

            acc = jnp.dot(a.astype(jnp.bfloat16), wd[1],
                          preferred_element_type=jnp.float32)
            acc = acc + jnp.dot(a_dn.astype(jnp.bfloat16), wd[0],
                                preferred_element_type=jnp.float32)
            acc = acc + jnp.dot(a_up.astype(jnp.bfloat16), wd[2],
                                preferred_element_type=jnp.float32)

            # --- bias + ReLU (f32 VPU) ----------------------------------------------
            r = jnp.maximum(acc + bias[...], 0.0)

            # --- maxpool 2x2 stride 2 -------------------------------------------------
            # rows: pairwise max via sublane roll, keep even rows with ONE selector matmul
            r2 = jnp.maximum(r, pltpu.roll(r, m - 1, axis=0)).astype(jnp.bfloat16)
            hp = jnp.dot(eh[...], r2, preferred_element_type=jnp.float32)
            # cols: pairwise max via lane roll, keep even column blocks with ONE selector
            hp2 = jnp.maximum(hp, pltpu.roll(hp, lanes - cout, axis=1))
            a = jnp.dot(hp2.astype(jnp.bfloat16), ew[...],
                        preferred_element_type=jnp.float32)
            # nn.Dropout(0.1): identity (see TODO at top of file).

        o_ref[0] = a.astype(o_ref.dtype)                    # (spb*Hf, Wf*Cf) lane-dense

    return kernel


# ---------------------------------------------------------------------------
# One-time parameter packing (hoisted out of the forward path)
# ---------------------------------------------------------------------------
def pack_params(params, height, width, samples_per_block):
    """PyTorch conv params -> bf16 matrices for the fused kernel + static layer meta.

    Per layer: wd   (3, w*cin, w*cout) block-banded horizontal taps + channel mixing,
                                       one matrix per vertical tap (bf16)
               bias (1, w*cout)        f32
               eh   (spb*h/2, spb*h)   even-row maxpool selector (bf16, 0/1 exact)
               ew   (w*cout, w/2*cout) even-column-block maxpool selector (bf16, 0/1 exact)
    """
    packed, meta = [], []
    h, w = height, width
    spb = samples_per_block
    for (wt, b) in params:                               # wt: (cout, cin, 3, 3)
        wt = np.asarray(wt, np.float32)
        b = np.asarray(b, np.float32)
        cout, cin = wt.shape[0], wt.shape[1]
        assert h % 2 == 0 and w % 2 == 0, (h, w)
        k_in, n_out = w * cin, w * cout

        wd = np.zeros((3, k_in, n_out), np.float32)
        wt_hwio = np.transpose(wt, (2, 3, 1, 0))          # (kh, kw, cin, cout)
        for kh in range(3):
            for kw in range(3):
                for j in range(w):
                    jj = j + kw - 1                       # input column feeding output col j
                    if 0 <= jj < w:                       # zero padding in W otherwise
                        wd[kh, jj * cin:(jj + 1) * cin,
                           j * cout:(j + 1) * cout] = wt_hwio[kh, kw]
        bias_row = np.tile(b, w)[None, :].astype(np.float32)

        m = spb * h
        eh = np.zeros((m // 2, m), np.float32)            # even-row selector (stacked slab)
        eh[np.arange(m // 2), 2 * np.arange(m // 2)] = 1.0

        ew = np.zeros((n_out, (w // 2) * cout), np.float32)   # even column-block selector
        eye_c = np.eye(cout, dtype=np.float32)
        for q in range(w // 2):
            ew[(2 * q) * cout:(2 * q + 1) * cout, q * cout:(q + 1) * cout] = eye_c

        packed.append((jnp.asarray(wd, jnp.bfloat16),
                       jnp.asarray(bias_row, jnp.float32),
                       jnp.asarray(eh, jnp.bfloat16),
                       jnp.asarray(ew, jnp.bfloat16)))
        meta.append((h, w, cout))
        h, w = h // 2, w // 2
    return packed, tuple(meta)


def _const_index_map(ndim):
    zeros = (0,) * ndim
    return lambda g: zeros


def choose_spb(n, h):
    """Largest sample group with <=256 layer-1 rows while keeping >=2 grid steps
    (software pipelining / both v7x TensorCores) whenever possible."""
    cands = [s for s in range(1, n + 1) if n % s == 0 and s * h <= 256]
    with_pipe = [s for s in cands if n // s >= 2]
    pool = with_pipe if with_pipe else cands
    return max(pool) if pool else 1


# ---------------------------------------------------------------------------
# Forward pass: one pallas_call for the whole 4-layer pipeline
# ---------------------------------------------------------------------------
def feature_extractor_forward(x, packed, meta, samples_per_block):
    """x: (B, I, C, H, W) float32 (PyTorch NCHW convention). Returns (B, I, -1)."""
    B, I, C, H, W = x.shape
    N = B * I
    spb = samples_per_block
    assert N % spb == 0, (N, spb)
    G = N // spb
    n_layers = len(meta)
    assert H % (2 ** n_layers) == 0 and W % (2 ** n_layers) == 0, (H, W)

    # NCHW -> channels-last row slab: row (n*H + i), lane (j*C + c) = x[n, c, i, j]
    xr = jnp.transpose(x.reshape(N, C, H, W), (0, 2, 3, 1)).reshape(G, spb * H, W * C)

    Hf, Wf = H // (2 ** n_layers), W // (2 ** n_layers)
    out_lanes = packed[-1][3].shape[1]                    # Wf * Cf
    Cf = out_lanes // Wf

    flat_params = [a for layer in packed for a in layer]
    in_specs = [pl.BlockSpec((1, spb * H, W * C), lambda g: (g, 0, 0))]
    for arr in flat_params:                               # constant index map: DMA'd once
        in_specs.append(pl.BlockSpec(arr.shape, _const_index_map(arr.ndim)))

    # Explicit scoped-VMEM budget: packed weights (double-buffered worst case) +
    # activation slabs + headroom for in-kernel intermediates; clamped to a safe range.
    weight_bytes = sum(int(a.size) * a.dtype.itemsize for a in flat_params)
    act_bytes = (spb * H * W * C + spb * Hf * out_lanes) * 4
    vmem_limit = int(min(32 << 20,
                         max(16 << 20, 2 * weight_bytes + 4 * act_bytes + (8 << 20))))

    out = pl.pallas_call(
        _make_kernel(meta),
        out_shape=jax.ShapeDtypeStruct((G, spb * Hf, out_lanes), jnp.float32),
        grid=(G,),
        in_specs=in_specs,
        out_specs=pl.BlockSpec((1, spb * Hf, out_lanes), lambda g: (g, 0, 0)),
        compiler_params=pltpu.CompilerParams(
            dimension_semantics=("parallel",),
            vmem_limit_bytes=vmem_limit),
    )(xr, *flat_params)

    # Back to PyTorch NCHW flatten order (trivial here since Hf == Wf == 1).
    out = out.reshape(N, Hf, Wf, Cf)
    out = jnp.transpose(out, (0, 3, 1, 2))
    return out.reshape(B, I, -1)


# ---------------------------------------------------------------------------
# Pure-JAX reference (PyTorch semantics, f32) for numerical sanity check
# ---------------------------------------------------------------------------
def reference_forward(x, params):
    B, I, C, H, W = x.shape
    a = jnp.transpose(x.reshape(B * I, C, H, W), (0, 2, 3, 1))     # NHWC
    for (wt, b) in params:
        k = jnp.transpose(wt, (2, 3, 1, 0))                        # HWIO
        a = jax.lax.conv_general_dilated(
            a, k, window_strides=(1, 1), padding="SAME",
            dimension_numbers=("NHWC", "HWIO", "NHWC"),
            precision=jax.lax.Precision.HIGHEST)
        a = jnp.maximum(a + b, 0.0)
        n, h, w, c = a.shape
        a = a.reshape(n, h // 2, 2, w // 2, 2, c).max(axis=(2, 4))
    a = jnp.transpose(a, (0, 3, 1, 2))
    return a.reshape(B, I, -1)


# ---------------------------------------------------------------------------
# Deterministic parameter init (matches nn.Conv2d default U(-1/sqrt(fan_in), ..))
# ---------------------------------------------------------------------------
def init_params(key):
    layer_dims = [(1, 16), (16, 32), (32, 64), (64, 128)]
    params = []
    keys = jax.random.split(key, 2 * len(layer_dims))
    for idx, (cin, cout) in enumerate(layer_dims):
        bound = 1.0 / math.sqrt(cin * 9)
        w = jax.random.uniform(keys[2 * idx], (cout, cin, 3, 3),
                               jnp.float32, -bound, bound)
        b = jax.random.uniform(keys[2 * idx + 1], (cout,),
                               jnp.float32, -bound, bound)
        params.append((w, b))
    return params


if __name__ == "__main__":
    key = jax.random.PRNGKey(0)
    k_x, k_p = jax.random.split(key)

    B, I, C, H, W = 2, 4, 1, 16, 16
    x = jax.random.normal(k_x, (B, I, C, H, W), jnp.float32)
    params = init_params(k_p)

    N = B * I
    spb = choose_spb(N, H)                                # N=8, H=16 -> spb=4, G=2
    packed, meta = pack_params(params, H, W, spb)         # one-time packing (bf16 weights)

    fwd = jax.jit(feature_extractor_forward, static_argnums=(2, 3))
    out = jax.block_until_ready(fwd(x, packed, meta, spb))

    # 16x16 input through 4 maxpools -> 1x1 spatial, 128 channels
    assert out.shape == (B, I, 128), out.shape
    assert bool(jnp.all(jnp.isfinite(out)))

    ref = reference_forward(x, params)
    max_err = float(jnp.max(jnp.abs(out - ref)))
    # Tolerance sized for bf16 matmul operands (f32 accumulation) across 4 layers.
    assert bool(jnp.allclose(out, ref, atol=5e-2, rtol=5e-2)), max_err

    print("KERNEL_OK")
</pallas_src>

<mosaic_0001>
module attributes {stable_mosaic.version = 11 : i64} {
  func.func @kernel(%arg0: i32, %arg1: memref<1x64x16xf32, #tpu.memory_space<vmem>>, %arg2: memref<3x16x256xbf16, #tpu.memory_space<vmem>>, %arg3: memref<1x256xf32, #tpu.memory_space<vmem>>, %arg4: memref<32x64xbf16, #tpu.memory_space<vmem>>, %arg5: memref<256x128xbf16, #tpu.memory_space<vmem>>, %arg6: memref<3x128x256xbf16, #tpu.memory_space<vmem>>, %arg7: memref<1x256xf32, #tpu.memory_space<vmem>>, %arg8: memref<16x32xbf16, #tpu.memory_space<vmem>>, %arg9: memref<256x128xbf16, #tpu.memory_space<vmem>>, %arg10: memref<3x128x256xbf16, #tpu.memory_space<vmem>>, %arg11: memref<1x256xf32, #tpu.memory_space<vmem>>, %arg12: memref<8x16xbf16, #tpu.memory_space<vmem>>, %arg13: memref<256x128xbf16, #tpu.memory_space<vmem>>, %arg14: memref<3x128x256xbf16, #tpu.memory_space<vmem>>, %arg15: memref<1x256xf32, #tpu.memory_space<vmem>>, %arg16: memref<4x8xbf16, #tpu.memory_space<vmem>>, %arg17: memref<256x128xbf16, #tpu.memory_space<vmem>>, %arg18: memref<1x4x128xf32, #tpu.memory_space<vmem>>) attributes {dimension_semantics = [#tpu.dimension_semantics<parallel>], iteration_bounds = array<i64: 2>, scalar_prefetch = 0 : i64, scratch_operands = 0 : i64, tpu.core_type = #tpu.core_type<tc>, window_params = [{transform_indices = @transform_0, window_bounds = array<i64: 1, 64, 16>}, {pipeline_mode = #tpu.pipeline_mode<synchronous>, transform_indices = @transform_1, window_bounds = array<i64: 3, 16, 256>}, {pipeline_mode = #tpu.pipeline_mode<synchronous>, transform_indices = @transform_2, window_bounds = array<i64: 1, 256>}, {pipeline_mode = #tpu.pipeline_mode<synchronous>, transform_indices = @transform_3, window_bounds = array<i64: 32, 64>}, {pipeline_mode = #tpu.pipeline_mode<synchronous>, transform_indices = @transform_4, window_bounds = array<i64: 256, 128>}, {pipeline_mode = #tpu.pipeline_mode<synchronous>, transform_indices = @transform_5, window_bounds = array<i64: 3, 128, 256>}, {pipeline_mode = #tpu.pipeline_mode<synchronous>, transform_indices = @transform_6, window_bounds = array<i64: 1, 256>}, {pipeline_mode = #tpu.pipeline_mode<synchronous>, transform_indices = @transform_7, window_bounds = array<i64: 16, 32>}, {pipeline_mode = #tpu.pipeline_mode<synchronous>, transform_indices = @transform_8, window_bounds = array<i64: 256, 128>}, {pipeline_mode = #tpu.pipeline_mode<synchronous>, transform_indices = @transform_9, window_bounds = array<i64: 3, 128, 256>}, {pipeline_mode = #tpu.pipeline_mode<synchronous>, transform_indices = @transform_10, window_bounds = array<i64: 1, 256>}, {pipeline_mode = #tpu.pipeline_mode<synchronous>, transform_indices = @transform_11, window_bounds = array<i64: 8, 16>}, {pipeline_mode = #tpu.pipeline_mode<synchronous>, transform_indices = @transform_12, window_bounds = array<i64: 256, 128>}, {pipeline_mode = #tpu.pipeline_mode<synchronous>, transform_indices = @transform_13, window_bounds = array<i64: 3, 128, 256>}, {pipeline_mode = #tpu.pipeline_mode<synchronous>, transform_indices = @transform_14, window_bounds = array<i64: 1, 256>}, {pipeline_mode = #tpu.pipeline_mode<synchronous>, transform_indices = @transform_15, window_bounds = array<i64: 4, 8>}, {pipeline_mode = #tpu.pipeline_mode<synchronous>, transform_indices = @transform_16, window_bounds = array<i64: 256, 128>}, {transform_indices = @transform_17, window_bounds = array<i64: 1, 4, 128>}]} {
    %c0 = arith.constant 0 : index
    %c0_0 = arith.constant 0 : index
    %c0_1 = arith.constant 0 : index
    %0 = vector.load %arg1[%c0, %c0_0, %c0_1] : memref<1x64x16xf32, #tpu.memory_space<vmem>>, vector<1x64x16xf32>
    %1 = vector.shape_cast %0 : vector<1x64x16xf32> to vector<64x16xf32>
    %2 = tpu.iota {dimensions = array<i32: 0>} : vector<64x1xi32>
    %c16_i32 = arith.constant 16 : i32
    %c0_i32 = arith.constant 0 : i32
    %3 = arith.cmpi eq, %c16_i32, %c0_i32 : i32
    %c1_i32 = arith.constant 1 : i32
    %4 = arith.select %3, %c1_i32, %c16_i32 : i32
    %5 = vector.broadcast %4 : i32 to vector<64x1xi32>
    %6 = arith.remsi %2, %5 : vector<64x1xi32>
    %c0_i32_2 = arith.constant 0 : i32
    %7 = vector.broadcast %c0_i32_2 : i32 to vector<64x1xi32>
    %8 = arith.cmpi ne, %6, %7 : vector<64x1xi32>
    %c0_i32_3 = arith.constant 0 : i32
    %9 = vector.broadcast %c0_i32_3 : i32 to vector<64x1xi32>
    %10 = arith.cmpi slt, %6, %9 : vector<64x1xi32>
    %c0_i32_4 = arith.constant 0 : i32
    %11 = arith.cmpi slt, %4, %c0_i32_4 : i32
    %12 = vector.broadcast %11 : i1 to vector<64x1xi1>
    %13 = vector.broadcast %12 : vector<64x1xi1> to vector<64x1xi1>
    %14 = arith.xori %10, %13 : vector<64x1xi1>
    %15 = arith.andi %14, %8 : vector<64x1xi1>
    %16 = vector.broadcast %4 : i32 to vector<64x1xi32>
    %17 = arith.addi %6, %16 : vector<64x1xi32>
    %18 = arith.select %15, %17, %6 : vector<64x1xi1>, vector<64x1xi32>
    %c0_i32_5 = arith.constant 0 : i32
    %19 = vector.broadcast %c0_i32_5 : i32 to vector<64x1xi32>
    %20 = arith.cmpi ne, %18, %19 : vector<64x1xi32>
    %c1_i32_6 = arith.constant 1 : i32
    %21 = tpu.dynamic_rotate %1 by %c1_i32_6 dim 0 : vector<64x16xf32>, i32 -> vector<64x16xf32>
    %cst = arith.constant 0.000000e+00 : f32
    %22 = vector.shape_cast %20 : vector<64x1xi1> to vector<64x1xi1>
    %23 = vector.broadcast %22 : vector<64x1xi1> to vector<64x16xi1>
    %24 = vector.broadcast %cst : f32 to vector<64x16xf32>
    %25 = arith.select %23, %21, %24 : vector<64x16xi1>, vector<64x16xf32>
    %c16_i32_7 = arith.constant 16 : i32
    %c0_i32_8 = arith.constant 0 : i32
    %26 = arith.cmpi eq, %c16_i32_7, %c0_i32_8 : i32
    %c1_i32_9 = arith.constant 1 : i32
    %27 = arith.select %26, %c1_i32_9, %c16_i32_7 : i32
    %28 = vector.broadcast %27 : i32 to vector<64x1xi32>
    %29 = arith.remsi %2, %28 : vector<64x1xi32>
    %c0_i32_10 = arith.constant 0 : i32
    %30 = vector.broadcast %c0_i32_10 : i32 to vector<64x1xi32>
    %31 = arith.cmpi ne, %29, %30 : vector<64x1xi32>
    %c0_i32_11 = arith.constant 0 : i32
    %32 = vector.broadcast %c0_i32_11 : i32 to vector<64x1xi32>
    %33 = arith.cmpi slt, %29, %32 : vector<64x1xi32>
    %c0_i32_12 = arith.constant 0 : i32
    %34 = arith.cmpi slt, %27, %c0_i32_12 : i32
    %35 = vector.broadcast %34 : i1 to vector<64x1xi1>
    %36 = vector.broadcast %35 : vector<64x1xi1> to vector<64x1xi1>
    %37 = arith.xori %33, %36 : vector<64x1xi1>
    %38 = arith.andi %37, %31 : vector<64x1xi1>
    %39 = vector.broadcast %27 : i32 to vector<64x1xi32>
    %40 = arith.addi %29, %39 : vector<64x1xi32>
    %41 = arith.select %38, %40, %29 : vector<64x1xi1>, vector<64x1xi32>
    %c15_i32 = arith.constant 15 : i32
    %42 = vector.broadcast %c15_i32 : i32 to vector<64x1xi32>
    %43 = arith.cmpi ne, %41, %42 : vector<64x1xi32>
    %c63_i32 = arith.constant 63 : i32
    %44 = tpu.dynamic_rotate %1 by %c63_i32 dim 0 : vector<64x16xf32>, i32 -> vector<64x16xf32>
    %cst_13 = arith.constant 0.000000e+00 : f32
    %45 = vector.shape_cast %43 : vector<64x1xi1> to vector<64x1xi1>
    %46 = vector.broadcast %45 : vector<64x1xi1> to vector<64x16xi1>
    %47 = vector.broadcast %cst_13 : f32 to vector<64x16xf32>
    %48 = arith.select %46, %44, %47 : vector<64x16xi1>, vector<64x16xf32>
    %49 = arith.truncf %1 : vector<64x16xf32> to vector<64x16xbf16>
    %c1 = arith.constant 1 : index
    %c0_14 = arith.constant 0 : index
    %c0_15 = arith.constant 0 : index
    %50 = vector.load %arg2[%c1, %c0_14, %c0_15] : memref<3x16x256xbf16, #tpu.memory_space<vmem>>, vector<1x16x256xbf16>
    %51 = vector.shape_cast %50 : vector<1x16x256xbf16> to vector<16x256xbf16>
    %cst_16 = arith.constant dense<0.000000e+00> : vector<64x256xf32>
    %52 = tpu.matmul %49, %51, %cst_16 {dimension_numbers = #tpu.dot_dimension_numbers<[1], [0], [0], [1], [0, 0, 1, 1], [], []>} : vector<64x16xbf16>, vector<16x256xbf16>, vector<64x256xf32> -> vector<64x256xf32>
    %53 = arith.truncf %25 : vector<64x16xf32> to vector<64x16xbf16>
    %c0_17 = arith.constant 0 : index
    %c0_18 = arith.constant 0 : index
    %c0_19 = arith.constant 0 : index
    %54 = vector.load %arg2[%c0_17, %c0_18, %c0_19] : memref<3x16x256xbf16, #tpu.memory_space<vmem>>, vector<1x16x256xbf16>
    %55 = vector.shape_cast %54 : vector<1x16x256xbf16> to vector<16x256xbf16>
    %cst_20 = arith.constant dense<0.000000e+00> : vector<64x256xf32>
    %56 = tpu.matmul %53, %55, %cst_20 {dimension_numbers = #tpu.dot_dimension_numbers<[1], [0], [0], [1], [0, 0, 1, 1], [], []>} : vector<64x16xbf16>, vector<16x256xbf16>, vector<64x256xf32> -> vector<64x256xf32>
    %57 = arith.addf %52, %56 : vector<64x256xf32>
    %58 = arith.truncf %48 : vector<64x16xf32> to vector<64x16xbf16>
    %c2 = arith.constant 2 : index
    %c0_21 = arith.constant 0 : index
    %c0_22 = arith.constant 0 : index
    %59 = vector.load %arg2[%c2, %c0_21, %c0_22] : memref<3x16x256xbf16, #tpu.memory_space<vmem>>, vector<1x16x256xbf16>
    %60 = vector.shape_cast %59 : vector<1x16x256xbf16> to vector<16x256xbf16>
    %cst_23 = arith.constant dense<0.000000e+00> : vector<64x256xf32>
    %61 = tpu.matmul %58, %60, %cst_23 {dimension_numbers = #tpu.dot_dimension_numbers<[1], [0], [0], [1], [0, 0, 1, 1], [], []>} : vector<64x16xbf16>, vector<16x256xbf16>, vector<64x256xf32> -> vector<64x256xf32>
    %62 = arith.addf %57, %61 : vector<64x256xf32>
    %c0_24 = arith.constant 0 : index
    %c0_25 = arith.constant 0 : index
    %63 = vector.load %arg3[%c0_24, %c0_25] : memref<1x256xf32, #tpu.memory_space<vmem>>, vector<1x256xf32>
    %64 = vector.broadcast %63 : vector<1x256xf32> to vector<64x256xf32>
    %65 = arith.addf %62, %64 : vector<64x256xf32>
    %cst_26 = arith.constant 0.000000e+00 : f32
    %66 = vector.broadcast %cst_26 : f32 to vector<64x256xf32>
    %67 = arith.maximumf %65, %66 : vector<64x256xf32>
    %c63_i32_27 = arith.constant 63 : i32
    %68 = tpu.dynamic_rotate %67 by %c63_i32_27 dim 0 : vector<64x256xf32>, i32 -> vector<64x256xf32>
    %69 = arith.maximumf %67, %68 : vector<64x256xf32>
    %70 = arith.truncf %69 : vector<64x256xf32> to vector<64x256xbf16>
    %c0_28 = arith.constant 0 : index
    %c0_29 = arith.constant 0 : index
    %71 = vector.load %arg4[%c0_28, %c0_29] : memref<32x64xbf16, #tpu.memory_space<vmem>>, vector<32x64xbf16>
    %cst_30 = arith.constant dense<0.000000e+00> : vector<32x256xf32>
    %72 = tpu.matmul %71, %70, %cst_30 {dimension_numbers = #tpu.dot_dimension_numbers<[1], [0], [0], [1], [0, 0, 1, 1], [], []>} : vector<32x64xbf16>, vector<64x256xbf16>, vector<32x256xf32> -> vector<32x256xf32>
    %c240_i32 = arith.constant 240 : i32
    %73 = tpu.dynamic_rotate %72 by %c240_i32 dim 1 : vector<32x256xf32>, i32 -> vector<32x256xf32>
    %74 = arith.maximumf %72, %73 : vector<32x256xf32>
    %75 = arith.truncf %74 : vector<32x256xf32> to vector<32x256xbf16>
    %c0_31 = arith.constant 0 : index
    %c0_32 = arith.constant 0 : index
    %76 = vector.load %arg5[%c0_31, %c0_32] : memref<256x128xbf16, #tpu.memory_space<vmem>>, vector<256x128xbf16>
    %cst_33 = arith.constant dense<0.000000e+00> : vector<32x128xf32>
    %77 = tpu.matmul %75, %76, %cst_33 {dimension_numbers = #tpu.dot_dimension_numbers<[1], [0], [0], [1], [0, 0, 1, 1], [], []>} : vector<32x256xbf16>, vector<256x128xbf16>, vector<32x128xf32> -> vector<32x128xf32>
    %78 = tpu.iota {dimensions = array<i32: 0>} : vector<32x1xi32>
    %c8_i32 = arith.constant 8 : i32
    %c0_i32_34 = arith.constant 0 : i32
    %79 = arith.cmpi eq, %c8_i32, %c0_i32_34 : i32
    %c1_i32_35 = arith.constant 1 : i32
    %80 = arith.select %79, %c1_i32_35, %c8_i32 : i32
    %81 = vector.broadcast %80 : i32 to vector<32x1xi32>
    %82 = arith.remsi %78, %81 : vector<32x1xi32>
    %c0_i32_36 = arith.constant 0 : i32
    %83 = vector.broadcast %c0_i32_36 : i32 to vector<32x1xi32>
    %84 = arith.cmpi ne, %82, %83 : vector<32x1xi32>
    %c0_i32_37 = arith.constant 0 : i32
    %85 = vector.broadcast %c0_i32_37 : i32 to vector<32x1xi32>
    %86 = arith.cmpi slt, %82, %85 : vector<32x1xi32>
    %c0_i32_38 = arith.constant 0 : i32
    %87 = arith.cmpi slt, %80, %c0_i32_38 : i32
    %88 = vector.broadcast %87 : i1 to vector<32x1xi1>
    %89 = vector.broadcast %88 : vector<32x1xi1> to vector<32x1xi1>
    %90 = arith.xori %86, %89 : vector<32x1xi1>
    %91 = arith.andi %90, %84 : vector<32x1xi1>
    %92 = vector.broadcast %80 : i32 to vector<32x1xi32>
    %93 = arith.addi %82, %92 : vector<32x1xi32>
    %94 = arith.select %91, %93, %82 : vector<32x1xi1>, vector<32x1xi32>
    %c0_i32_39 = arith.constant 0 : i32
    %95 = vector.broadcast %c0_i32_39 : i32 to vector<32x1xi32>
    %96 = arith.cmpi ne, %94, %95 : vector<32x1xi32>
    %c1_i32_40 = arith.constant 1 : i32
    %97 = tpu.dynamic_rotate %77 by %c1_i32_40 dim 0 : vector<32x128xf32>, i32 -> vector<32x128xf32>
    %cst_41 = arith.constant 0.000000e+00 : f32
    %98 = vector.shape_cast %96 : vector<32x1xi1> to vector<32x1xi1>
    %99 = vector.broadcast %98 : vector<32x1xi1> to vector<32x128xi1>
    %100 = vector.broadcast %cst_41 : f32 to vector<32x128xf32>
    %101 = arith.select %99, %97, %100 : vector<32x128xi1>, vector<32x128xf32>
    %c8_i32_42 = arith.constant 8 : i32
    %c0_i32_43 = arith.constant 0 : i32
    %102 = arith.cmpi eq, %c8_i32_42, %c0_i32_43 : i32
    %c1_i32_44 = arith.constant 1 : i32
    %103 = arith.select %102, %c1_i32_44, %c8_i32_42 : i32
    %104 = vector.broadcast %103 : i32 to vector<32x1xi32>
    %105 = arith.remsi %78, %104 : vector<32x1xi32>
    %c0_i32_45 = arith.constant 0 : i32
    %106 = vector.broadcast %c0_i32_45 : i32 to vector<32x1xi32>
    %107 = arith.cmpi ne, %105, %106 : vector<32x1xi32>
    %c0_i32_46 = arith.constant 0 : i32
    %108 = vector.broadcast %c0_i32_46 : i32 to vector<32x1xi32>
    %109 = arith.cmpi slt, %105, %108 : vector<32x1xi32>
    %c0_i32_47 = arith.constant 0 : i32
    %110 = arith.cmpi slt, %103, %c0_i32_47 : i32
    %111 = vector.broadcast %110 : i1 to vector<32x1xi1>
    %112 = vector.broadcast %111 : vector<32x1xi1> to vector<32x1xi1>
    %113 = arith.xori %109, %112 : vector<32x1xi1>
    %114 = arith.andi %113, %107 : vector<32x1xi1>
    %115 = vector.broadcast %103 : i32 to vector<32x1xi32>
    %116 = arith.addi %105, %115 : vector<32x1xi32>
    %117 = arith.select %114, %116, %105 : vector<32x1xi1>, vector<32x1xi32>
    %c7_i32 = arith.constant 7 : i32
    %118 = vector.broadcast %c7_i32 : i32 to vector<32x1xi32>
    %119 = arith.cmpi ne, %117, %118 : vector<32x1xi32>
    %c31_i32 = arith.constant 31 : i32
    %120 = tpu.dynamic_rotate %77 by %c31_i32 dim 0 : vector<32x128xf32>, i32 -> vector<32x128xf32>
    %cst_48 = arith.constant 0.000000e+00 : f32
    %121 = vector.shape_cast %119 : vector<32x1xi1> to vector<32x1xi1>
    %122 = vector.broadcast %121 : vector<32x1xi1> to vector<32x128xi1>
    %123 = vector.broadcast %cst_48 : f32 to vector<32x128xf32>
    %124 = arith.select %122, %120, %123 : vector<32x128xi1>, vector<32x128xf32>
    %125 = arith.truncf %77 : vector<32x128xf32> to vector<32x128xbf16>
    %c1_49 = arith.constant 1 : index
    %c0_50 = arith.constant 0 : index
    %c0_51 = arith.constant 0 : index
    %126 = vector.load %arg6[%c1_49, %c0_50, %c0_51] : memref<3x128x256xbf16, #tpu.memory_space<vmem>>, vector<1x128x256xbf16>
    %127 = vector.shape_cast %126 : vector<1x128x256xbf16> to vector<128x256xbf16>
    %cst_52 = arith.constant dense<0.000000e+00> : vector<32x256xf32>
    %128 = tpu.matmul %125, %127, %cst_52 {dimension_numbers = #tpu.dot_dimension_numbers<[1], [0], [0], [1], [0, 0, 1, 1], [], []>} : vector<32x128xbf16>, vector<128x256xbf16>, vector<32x256xf32> -> vector<32x256xf32>
    %129 = arith.truncf %101 : vector<32x128xf32> to vector<32x128xbf16>
    %c0_53 = arith.constant 0 : index
    %c0_54 = arith.constant 0 : index
    %c0_55 = arith.constant 0 : index
    %130 = vector.load %arg6[%c0_53, %c0_54, %c0_55] : memref<3x128x256xbf16, #tpu.memory_space<vmem>>, vector<1x128x256xbf16>
    %131 = vector.shape_cast %130 : vector<1x128x256xbf16> to vector<128x256xbf16>
    %cst_56 = arith.constant dense<0.000000e+00> : vector<32x256xf32>
    %132 = tpu.matmul %129, %131, %cst_56 {dimension_numbers = #tpu.dot_dimension_numbers<[1], [0], [0], [1], [0, 0, 1, 1], [], []>} : vector<32x128xbf16>, vector<128x256xbf16>, vector<32x256xf32> -> vector<32x256xf32>
    %133 = arith.addf %128, %132 : vector<32x256xf32>
    %134 = arith.truncf %124 : vector<32x128xf32> to vector<32x128xbf16>
    %c2_57 = arith.constant 2 : index
    %c0_58 = arith.constant 0 : index
    %c0_59 = arith.constant 0 : index
    %135 = vector.load %arg6[%c2_57, %c0_58, %c0_59] : memref<3x128x256xbf16, #tpu.memory_space<vmem>>, vector<1x128x256xbf16>
    %136 = vector.shape_cast %135 : vector<1x128x256xbf16> to vector<128x256xbf16>
    %cst_60 = arith.constant dense<0.000000e+00> : vector<32x256xf32>
    %137 = tpu.matmul %134, %136, %cst_60 {dimension_numbers = #tpu.dot_dimension_numbers<[1], [0], [0], [1], [0, 0, 1, 1], [], []>} : vector<32x128xbf16>, vector<128x256xbf16>, vector<32x256xf32> -> vector<32x256xf32>
    %138 = arith.addf %133, %137 : vector<32x256xf32>
    %c0_61 = arith.constant 0 : index
    %c0_62 = arith.constant 0 : index
    %139 = vector.load %arg7[%c0_61, %c0_62] : memref<1x256xf32, #tpu.memory_space<vmem>>, vector<1x256xf32>
    %140 = vector.broadcast %139 : vector<1x256xf32> to vector<32x256xf32>
    %141 = arith.addf %138, %140 : vector<32x256xf32>
    %cst_63 = arith.constant 0.000000e+00 : f32
    %142 = vector.broadcast %cst_63 : f32 to vector<32x256xf32>
    %143 = arith.maximumf %141, %142 : vector<32x256xf32>
    %c31_i32_64 = arith.constant 31 : i32
    %144 = tpu.dynamic_rotate %143 by %c31_i32_64 dim 0 : vector<32x256xf32>, i32 -> vector<32x256xf32>
    %145 = arith.maximumf %143, %144 : vector<32x256xf32>
    %146 = arith.truncf %145 : vector<32x256xf32> to vector<32x256xbf16>
    %c0_65 = arith.constant 0 : index
    %c0_66 = arith.constant 0 : index
    %147 = vector.load %arg8[%c0_65, %c0_66] : memref<16x32xbf16, #tpu.memory_space<vmem>>, vector<16x32xbf16>
    %cst_67 = arith.constant dense<0.000000e+00> : vector<16x256xf32>
    %148 = tpu.matmul %147, %146, %cst_67 {dimension_numbers = #tpu.dot_dimension_numbers<[1], [0], [0], [1], [0, 0, 1, 1], [], []>} : vector<16x32xbf16>, vector<32x256xbf16>, vector<16x256xf32> -> vector<16x256xf32>
    %c224_i32 = arith.constant 224 : i32
    %149 = tpu.dynamic_rotate %148 by %c224_i32 dim 1 : vector<16x256xf32>, i32 -> vector<16x256xf32>
    %150 = arith.maximumf %148, %149 : vector<16x256xf32>
    %151 = arith.truncf %150 : vector<16x256xf32> to vector<16x256xbf16>
    %c0_68 = arith.constant 0 : index
    %c0_69 = arith.constant 0 : index
    %152 = vector.load %arg9[%c0_68, %c0_69] : memref<256x128xbf16, #tpu.memory_space<vmem>>, vector<256x128xbf16>
    %cst_70 = arith.constant dense<0.000000e+00> : vector<16x128xf32>
    %153 = tpu.matmul %151, %152, %cst_70 {dimension_numbers = #tpu.dot_dimension_numbers<[1], [0], [0], [1], [0, 0, 1, 1], [], []>} : vector<16x256xbf16>, vector<256x128xbf16>, vector<16x128xf32> -> vector<16x128xf32>
    %154 = tpu.iota {dimensions = array<i32: 0>} : vector<16x1xi32>
    %c4_i32 = arith.constant 4 : i32
    %c0_i32_71 = arith.constant 0 : i32
    %155 = arith.cmpi eq, %c4_i32, %c0_i32_71 : i32
    %c1_i32_72 = arith.constant 1 : i32
    %156 = arith.select %155, %c1_i32_72, %c4_i32 : i32
    %157 = vector.broadcast %156 : i32 to vector<16x1xi32>
    %158 = arith.remsi %154, %157 : vector<16x1xi32>
    %c0_i32_73 = arith.constant 0 : i32
    %159 = vector.broadcast %c0_i32_73 : i32 to vector<16x1xi32>
    %160 = arith.cmpi ne, %158, %159 : vector<16x1xi32>
    %c0_i32_74 = arith.constant 0 : i32
    %161 = vector.broadcast %c0_i32_74 : i32 to vector<16x1xi32>
    %162 = arith.cmpi slt, %158, %161 : vector<16x1xi32>
    %c0_i32_75 = arith.constant 0 : i32
    %163 = arith.cmpi slt, %156, %c0_i32_75 : i32
    %164 = vector.broadcast %163 : i1 to vector<16x1xi1>
    %165 = vector.broadcast %164 : vector<16x1xi1> to vector<16x1xi1>
    %166 = arith.xori %162, %165 : vector<16x1xi1>
    %167 = arith.andi %166, %160 : vector<16x1xi1>
    %168 = vector.broadcast %156 : i32 to vector<16x1xi32>
    %169 = arith.addi %158, %168 : vector<16x1xi32>
    %170 = arith.select %167, %169, %158 : vector<16x1xi1>, vector<16x1xi32>
    %c0_i32_76 = arith.constant 0 : i32
    %171 = vector.broadcast %c0_i32_76 : i32 to vector<16x1xi32>
    %172 = arith.cmpi ne, %170, %171 : vector<16x1xi32>
    %c1_i32_77 = arith.constant 1 : i32
    %173 = tpu.dynamic_rotate %153 by %c1_i32_77 dim 0 : vector<16x128xf32>, i32 -> vector<16x128xf32>
    %cst_78 = arith.constant 0.000000e+00 : f32
    %174 = vector.shape_cast %172 : vector<16x1xi1> to vector<16x1xi1>
    %175 = vector.broadcast %174 : vector<16x1xi1> to vector<16x128xi1>
    %176 = vector.broadcast %cst_78 : f32 to vector<16x128xf32>
    %177 = arith.select %175, %173, %176 : vector<16x128xi1>, vector<16x128xf32>
    %c4_i32_79 = arith.constant 4 : i32
    %c0_i32_80 = arith.constant 0 : i32
    %178 = arith.cmpi eq, %c4_i32_79, %c0_i32_80 : i32
    %c1_i32_81 = arith.constant 1 : i32
    %179 = arith.select %178, %c1_i32_81, %c4_i32_79 : i32
    %180 = vector.broadcast %179 : i32 to vector<16x1xi32>
    %181 = arith.remsi %154, %180 : vector<16x1xi32>
    %c0_i32_82 = arith.constant 0 : i32
    %182 = vector.broadcast %c0_i32_82 : i32 to vector<16x1xi32>
    %183 = arith.cmpi ne, %181, %182 : vector<16x1xi32>
    %c0_i32_83 = arith.constant 0 : i32
    %184 = vector.broadcast %c0_i32_83 : i32 to vector<16x1xi32>
    %185 = arith.cmpi slt, %181, %184 : vector<16x1xi32>
    %c0_i32_84 = arith.constant 0 : i32
    %186 = arith.cmpi slt, %179, %c0_i32_84 : i32
    %187 = vector.broadcast %186 : i1 to vector<16x1xi1>
    %188 = vector.broadcast %187 : vector<16x1xi1> to vector<16x1xi1>
    %189 = arith.xori %185, %188 : vector<16x1xi1>
    %190 = arith.andi %189, %183 : vector<16x1xi1>
    %191 = vector.broadcast %179 : i32 to vector<16x1xi32>
    %192 = arith.addi %181, %191 : vector<16x1xi32>
    %193 = arith.select %190, %192, %181 : vector<16x1xi1>, vector<16x1xi32>
    %c3_i32 = arith.constant 3 : i32
    %194 = vector.broadcast %c3_i32 : i32 to vector<16x1xi32>
    %195 = arith.cmpi ne, %193, %194 : vector<16x1xi32>
    %c15_i32_85 = arith.constant 15 : i32
    %196 = tpu.dynamic_rotate %153 by %c15_i32_85 dim 0 : vector<16x128xf32>, i32 -> vector<16x128xf32>
    %cst_86 = arith.constant 0.000000e+00 : f32
    %197 = vector.shape_cast %195 : vector<16x1xi1> to vector<16x1xi1>
    %198 = vector.broadcast %197 : vector<16x1xi1> to vector<16x128xi1>
    %199 = vector.broadcast %cst_86 : f32 to vector<16x128xf32>
    %200 = arith.select %198, %196, %199 : vector<16x128xi1>, vector<16x128xf32>
    %201 = arith.truncf %153 : vector<16x128xf32> to vector<16x128xbf16>
    %c1_87 = arith.constant 1 : index
    %c0_88 = arith.constant 0 : index
    %c0_89 = arith.constant 0 : index
    %202 = vector.load %arg10[%c1_87, %c0_88, %c0_89] : memref<3x128x256xbf16, #tpu.memory_space<vmem>>, vector<1x128x256xbf16>
    %203 = vector.shape_cast %202 : vector<1x128x256xbf16> to vector<128x256xbf16>
    %cst_90 = arith.constant dense<0.000000e+00> : vector<16x256xf32>
    %204 = tpu.matmul %201, %203, %cst_90 {dimension_numbers = #tpu.dot_dimension_numbers<[1], [0], [0], [1], [0, 0, 1, 1], [], []>} : vector<16x128xbf16>, vector<128x256xbf16>, vector<16x256xf32> -> vector<16x256xf32>
    %205 = arith.truncf %177 : vector<16x128xf32> to vector<16x128xbf16>
    %c0_91 = arith.constant 0 : index
    %c0_92 = arith.constant 0 : index
    %c0_93 = arith.constant 0 : index
    %206 = vector.load %arg10[%c0_91, %c0_92, %c0_93] : memref<3x128x256xbf16, #tpu.memory_space<vmem>>, vector<1x128x256xbf16>
    %207 = vector.shape_cast %206 : vector<1x128x256xbf16> to vector<128x256xbf16>
    %cst_94 = arith.constant dense<0.000000e+00> : vector<16x256xf32>
    %208 = tpu.matmul %205, %207, %cst_94 {dimension_numbers = #tpu.dot_dimension_numbers<[1], [0], [0], [1], [0, 0, 1, 1], [], []>} : vector<16x128xbf16>, vector<128x256xbf16>, vector<16x256xf32> -> vector<16x256xf32>
    %209 = arith.addf %204, %208 : vector<16x256xf32>
    %210 = arith.truncf %200 : vector<16x128xf32> to vector<16x128xbf16>
    %c2_95 = arith.constant 2 : index
    %c0_96 = arith.constant 0 : index
    %c0_97 = arith.constant 0 : index
    %211 = vector.load %arg10[%c2_95, %c0_96, %c0_97] : memref<3x128x256xbf16, #tpu.memory_space<vmem>>, vector<1x128x256xbf16>
    %212 = vector.shape_cast %211 : vector<1x128x256xbf16> to vector<128x256xbf16>
    %cst_98 = arith.constant dense<0.000000e+00> : vector<16x256xf32>
    %213 = tpu.matmul %210, %212, %cst_98 {dimension_numbers = #tpu.dot_dimension_numbers<[1], [0], [0], [1], [0, 0, 1, 1], [], []>} : vector<16x128xbf16>, vector<128x256xbf16>, vector<16x256xf32> -> vector<16x256xf32>
    %214 = arith.addf %209, %213 : vector<16x256xf32>
    %c0_99 = arith.constant 0 : index
    %c0_100 = arith.constant 0 : index
    %215 = vector.load %arg11[%c0_99, %c0_100] : memref<1x256xf32, #tpu.memory_space<vmem>>, vector<1x256xf32>
    %216 = vector.broadcast %215 : vector<1x256xf32> to vector<16x256xf32>
    %217 = arith.addf %214, %216 : vector<16x256xf32>
    %cst_101 = arith.constant 0.000000e+00 : f32
    %218 = vector.broadcast %cst_101 : f32 to vector<16x256xf32>
    %219 = arith.maximumf %217, %218 : vector<16x256xf32>
    %c15_i32_102 = arith.constant 15 : i32
    %220 = tpu.dynamic_rotate %219 by %c15_i32_102 dim 0 : vector<16x256xf32>, i32 -> vector<16x256xf32>
    %221 = arith.maximumf %219, %220 : vector<16x256xf32>
    %222 = arith.truncf %221 : vector<16x256xf32> to vector<16x256xbf16>
    %c0_103 = arith.constant 0 : index
    %c0_104 = arith.constant 0 : index
    %223 = vector.load %arg12[%c0_103, %c0_104] : memref<8x16xbf16, #tpu.memory_space<vmem>>, vector<8x16xbf16>
    %cst_105 = arith.constant dense<0.000000e+00> : vector<8x256xf32>
    %224 = tpu.matmul %223, %222, %cst_105 {dimension_numbers = #tpu.dot_dimension_numbers<[1], [0], [0], [1], [0, 0, 1, 1], [], []>} : vector<8x16xbf16>, vector<16x256xbf16>, vector<8x256xf32> -> vector<8x256xf32>
    %c192_i32 = arith.constant 192 : i32
    %225 = tpu.dynamic_rotate %224 by %c192_i32 dim 1 : vector<8x256xf32>, i32 -> vector<8x256xf32>
    %226 = arith.maximumf %224, %225 : vector<8x256xf32>
    %227 = arith.truncf %226 : vector<8x256xf32> to vector<8x256xbf16>
    %c0_106 = arith.constant 0 : index
    %c0_107 = arith.constant 0 : index
    %228 = vector.load %arg13[%c0_106, %c0_107] : memref<256x128xbf16, #tpu.memory_space<vmem>>, vector<256x128xbf16>
    %cst_108 = arith.constant dense<0.000000e+00> : vector<8x128xf32>
    %229 = tpu.matmul %227, %228, %cst_108 {dimension_numbers = #tpu.dot_dimension_numbers<[1], [0], [0], [1], [0, 0, 1, 1], [], []>} : vector<8x256xbf16>, vector<256x128xbf16>, vector<8x128xf32> -> vector<8x128xf32>
    %230 = tpu.iota {dimensions = array<i32: 0>} : vector<8x1xi32>
    %c2_i32 = arith.constant 2 : i32
    %c0_i32_109 = arith.constant 0 : i32
    %231 = arith.cmpi eq, %c2_i32, %c0_i32_109 : i32
    %c1_i32_110 = arith.constant 1 : i32
    %232 = arith.select %231, %c1_i32_110, %c2_i32 : i32
    %233 = vector.broadcast %232 : i32 to vector<8x1xi32>
    %234 = arith.remsi %230, %233 : vector<8x1xi32>
    %c0_i32_111 = arith.constant 0 : i32
    %235 = vector.broadcast %c0_i32_111 : i32 to vector<8x1xi32>
    %236 = arith.cmpi ne, %234, %235 : vector<8x1xi32>
    %c0_i32_112 = arith.constant 0 : i32
    %237 = vector.broadcast %c0_i32_112 : i32 to vector<8x1xi32>
    %238 = arith.cmpi slt, %234, %237 : vector<8x1xi32>
    %c0_i32_113 = arith.constant 0 : i32
    %239 = arith.cmpi slt, %232, %c0_i32_113 : i32
    %240 = vector.broadcast %239 : i1 to vector<8x1xi1>
    %241 = vector.broadcast %240 : vector<8x1xi1> to vector<8x1xi1>
    %242 = arith.xori %238, %241 : vector<8x1xi1>
    %243 = arith.andi %242, %236 : vector<8x1xi1>
    %244 = vector.broadcast %232 : i32 to vector<8x1xi32>
    %245 = arith.addi %234, %244 : vector<8x1xi32>
    %246 = arith.select %243, %245, %234 : vector<8x1xi1>, vector<8x1xi32>
    %c0_i32_114 = arith.constant 0 : i32
    %247 = vector.broadcast %c0_i32_114 : i32 to vector<8x1xi32>
    %248 = arith.cmpi ne, %246, %247 : vector<8x1xi32>
    %c1_i32_115 = arith.constant 1 : i32
    %249 = tpu.dynamic_rotate %229 by %c1_i32_115 dim 0 : vector<8x128xf32>, i32 -> vector<8x128xf32>
    %cst_116 = arith.constant 0.000000e+00 : f32
    %250 = vector.shape_cast %248 : vector<8x1xi1> to vector<8x1xi1>
    %251 = vector.broadcast %250 : vector<8x1xi1> to vector<8x128xi1>
    %252 = vector.broadcast %cst_116 : f32 to vector<8x128xf32>
    %253 = arith.select %251, %249, %252 : vector<8x128xi1>, vector<8x128xf32>
    %c2_i32_117 = arith.constant 2 : i32
    %c0_i32_118 = arith.constant 0 : i32
    %254 = arith.cmpi eq, %c2_i32_117, %c0_i32_118 : i32
    %c1_i32_119 = arith.constant 1 : i32
    %255 = arith.select %254, %c1_i32_119, %c2_i32_117 : i32
    %256 = vector.broadcast %255 : i32 to vector<8x1xi32>
    %257 = arith.remsi %230, %256 : vector<8x1xi32>
    %c0_i32_120 = arith.constant 0 : i32
    %258 = vector.broadcast %c0_i32_120 : i32 to vector<8x1xi32>
    %259 = arith.cmpi ne, %257, %258 : vector<8x1xi32>
    %c0_i32_121 = arith.constant 0 : i32
    %260 = vector.broadcast %c0_i32_121 : i32 to vector<8x1xi32>
    %261 = arith.cmpi slt, %257, %260 : vector<8x1xi32>
    %c0_i32_122 = arith.constant 0 : i32
    %262 = arith.cmpi slt, %255, %c0_i32_122 : i32
    %263 = vector.broadcast %262 : i1 to vector<8x1xi1>
    %264 = vector.broadcast %263 : vector<8x1xi1> to vector<8x1xi1>
    %265 = arith.xori %261, %264 : vector<8x1xi1>
    %266 = arith.andi %265, %259 : vector<8x1xi1>
    %267 = vector.broadcast %255 : i32 to vector<8x1xi32>
    %268 = arith.addi %257, %267 : vector<8x1xi32>
    %269 = arith.select %266, %268, %257 : vector<8x1xi1>, vector<8x1xi32>
    %c1_i32_123 = arith.constant 1 : i32
    %270 = vector.broadcast %c1_i32_123 : i32 to vector<8x1xi32>
    %271 = arith.cmpi ne, %269, %270 : vector<8x1xi32>
    %c7_i32_124 = arith.constant 7 : i32
    %272 = tpu.dynamic_rotate %229 by %c7_i32_124 dim 0 : vector<8x128xf32>, i32 -> vector<8x128xf32>
    %cst_125 = arith.constant 0.000000e+00 : f32
    %273 = vector.shape_cast %271 : vector<8x1xi1> to vector<8x1xi1>
    %274 = vector.broadcast %273 : vector<8x1xi1> to vector<8x128xi1>
    %275 = vector.broadcast %cst_125 : f32 to vector<8x128xf32>
    %276 = arith.select %274, %272, %275 : vector<8x128xi1>, vector<8x128xf32>
    %277 = arith.truncf %229 : vector<8x128xf32> to vector<8x128xbf16>
    %c1_126 = arith.constant 1 : index
    %c0_127 = arith.constant 0 : index
    %c0_128 = arith.constant 0 : index
    %278 = vector.load %arg14[%c1_126, %c0_127, %c0_128] : memref<3x128x256xbf16, #tpu.memory_space<vmem>>, vector<1x128x256xbf16>
    %279 = vector.shape_cast %278 : vector<1x128x256xbf16> to vector<128x256xbf16>
    %cst_129 = arith.constant dense<0.000000e+00> : vector<8x256xf32>
    %280 = tpu.matmul %277, %279, %cst_129 {dimension_numbers = #tpu.dot_dimension_numbers<[1], [0], [0], [1], [0, 0, 1, 1], [], []>} : vector<8x128xbf16>, vector<128x256xbf16>, vector<8x256xf32> -> vector<8x256xf32>
    %281 = arith.truncf %253 : vector<8x128xf32> to vector<8x128xbf16>
    %c0_130 = arith.constant 0 : index
    %c0_131 = arith.constant 0 : index
    %c0_132 = arith.constant 0 : index
    %282 = vector.load %arg14[%c0_130, %c0_131, %c0_132] : memref<3x128x256xbf16, #tpu.memory_space<vmem>>, vector<1x128x256xbf16>
    %283 = vector.shape_cast %282 : vector<1x128x256xbf16> to vector<128x256xbf16>
    %cst_133 = arith.constant dense<0.000000e+00> : vector<8x256xf32>
    %284 = tpu.matmul %281, %283, %cst_133 {dimension_numbers = #tpu.dot_dimension_numbers<[1], [0], [0], [1], [0, 0, 1, 1], [], []>} : vector<8x128xbf16>, vector<128x256xbf16>, vector<8x256xf32> -> vector<8x256xf32>
    %285 = arith.addf %280, %284 : vector<8x256xf32>
    %286 = arith.truncf %276 : vector<8x128xf32> to vector<8x128xbf16>
    %c2_134 = arith.constant 2 : index
    %c0_135 = arith.constant 0 : index
    %c0_136 = arith.constant 0 : index
    %287 = vector.load %arg14[%c2_134, %c0_135, %c0_136] : memref<3x128x256xbf16, #tpu.memory_space<vmem>>, vector<1x128x256xbf16>
    %288 = vector.shape_cast %287 : vector<1x128x256xbf16> to vector<128x256xbf16>
    %cst_137 = arith.constant dense<0.000000e+00> : vector<8x256xf32>
    %289 = tpu.matmul %286, %288, %cst_137 {dimension_numbers = #tpu.dot_dimension_numbers<[1], [0], [0], [1], [0, 0, 1, 1], [], []>} : vector<8x128xbf16>, vector<128x256xbf16>, vector<8x256xf32> -> vector<8x256xf32>
    %290 = arith.addf %285, %289 : vector<8x256xf32>
    %c0_138 = arith.constant 0 : index
    %c0_139 = arith.constant 0 : index
    %291 = vector.load %arg15[%c0_138, %c0_139] : memref<1x256xf32, #tpu.memory_space<vmem>>, vector<1x256xf32>
    %292 = vector.broadcast %291 : vector<1x256xf32> to vector<8x256xf32>
    %293 = arith.addf %290, %292 : vector<8x256xf32>
    %cst_140 = arith.constant 0.000000e+00 : f32
    %294 = vector.broadcast %cst_140 : f32 to vector<8x256xf32>
    %295 = arith.maximumf %293, %294 : vector<8x256xf32>
    %c7_i32_141 = arith.constant 7 : i32
    %296 = tpu.dynamic_rotate %295 by %c7_i32_141 dim 0 : vector<8x256xf32>, i32 -> vector<8x256xf32>
    %297 = arith.maximumf %295, %296 : vector<8x256xf32>
    %298 = arith.truncf %297 : vector<8x256xf32> to vector<8x256xbf16>
    %c0_142 = arith.constant 0 : index
    %c0_143 = arith.constant 0 : index
    %299 = vector.load %arg16[%c0_142, %c0_143] : memref<4x8xbf16, #tpu.memory_space<vmem>>, vector<4x8xbf16>
    %cst_144 = arith.constant dense<0.000000e+00> : vector<4x256xf32>
    %300 = tpu.matmul %299, %298, %cst_144 {dimension_numbers = #tpu.dot_dimension_numbers<[1], [0], [0], [1], [0, 0, 1, 1], [], []>} : vector<4x8xbf16>, vector<8x256xbf16>, vector<4x256xf32> -> vector<4x256xf32>
    %c128_i32 = arith.constant 128 : i32
    %301 = tpu.dynamic_rotate %300 by %c128_i32 dim 1 : vector<4x256xf32>, i32 -> vector<4x256xf32>
    %302 = arith.maximumf %300, %301 : vector<4x256xf32>
    %303 = arith.truncf %302 : vector<4x256xf32> to vector<4x256xbf16>
    %c0_145 = arith.constant 0 : index
    %c0_146 = arith.constant 0 : index
    %304 = vector.load %arg17[%c0_145, %c0_146] : memref<256x128xbf16, #tpu.memory_space<vmem>>, vector<256x128xbf16>
    %cst_147 = arith.constant dense<0.000000e+00> : vector<4x128xf32>
    %305 = tpu.matmul %303, %304, %cst_147 {dimension_numbers = #tpu.dot_dimension_numbers<[1], [0], [0], [1], [0, 0, 1, 1], [], []>} : vector<4x256xbf16>, vector<256x128xbf16>, vector<4x128xf32> -> vector<4x128xf32>
    %c0_148 = arith.constant 0 : index
    %c0_149 = arith.constant 0 : index
    %c0_150 = arith.constant 0 : index
    %306 = vector.load %arg18[%c0_148, %c0_149, %c0_150] : memref<1x4x128xf32, #tpu.memory_space<vmem>>, vector<1x4x128xf32>
    %307 = vector.shape_cast %306 : vector<1x4x128xf32> to vector<4x128xf32>
    %308 = vector.shape_cast %305 : vector<4x128xf32> to vector<1x4x128xf32>
    tpu.vector_store %arg18[%c0_148, %c0_149, %c0_150], %308 {strides = array<i32>} : memref<1x4x128xf32, #tpu.memory_space<vmem>>, vector<1x4x128xf32>,
    return
  }
  func.func @transform_0(%arg0: i32) -> (i32, i32, i32) {
    %c0_i32 = arith.constant 0 : i32
    %c0_i32_0 = arith.constant 0 : i32
    %c0_i32_1 = arith.constant 0 : i32
    return %arg0, %c0_i32, %c0_i32_0 : i32, i32, i32
  }
  func.func @transform_1(%arg0: i32) -> (i32, i32, i32) {
    %c0_i32 = arith.constant 0 : i32
    %c0_i32_0 = arith.constant 0 : i32
    %c0_i32_1 = arith.constant 0 : i32
    %c0_i32_2 = arith.constant 0 : i32
    return %c0_i32, %c0_i32_0, %c0_i32_1 : i32, i32, i32
  }
  func.func @transform_2(%arg0: i32) -> (i32, i32) {
    %c0_i32 = arith.constant 0 : i32
    %c0_i32_0 = arith.constant 0 : i32
    %c0_i32_1 = arith.constant 0 : i32
    return %c0_i32, %c0_i32_0 : i32, i32
  }
  func.func @transform_3(%arg0: i32) -> (i32, i32) {
    %c0_i32 = arith.constant 0 : i32
    %c0_i32_0 = arith.constant 0 : i32
    %c0_i32_1 = arith.constant 0 : i32
    return %c0_i32, %c0_i32_0 : i32, i32
  }
  func.func @transform_4(%arg0: i32) -> (i32, i32) {
    %c0_i32 = arith.constant 0 : i32
    %c0_i32_0 = arith.constant 0 : i32
    %c0_i32_1 = arith.constant 0 : i32
    return %c0_i32, %c0_i32_0 : i32, i32
  }
  func.func @transform_5(%arg0: i32) -> (i32, i32, i32) {
    %c0_i32 = arith.constant 0 : i32
    %c0_i32_0 = arith.constant 0 : i32
    %c0_i32_1 = arith.constant 0 : i32
    %c0_i32_2 = arith.constant 0 : i32
    return %c0_i32, %c0_i32_0, %c0_i32_1 : i32, i32, i32
  }
  func.func @transform_6(%arg0: i32) -> (i32, i32) {
    %c0_i32 = arith.constant 0 : i32
    %c0_i32_0 = arith.constant 0 : i32
    %c0_i32_1 = arith.constant 0 : i32
    return %c0_i32, %c0_i32_0 : i32, i32
  }
  func.func @transform_7(%arg0: i32) -> (i32, i32) {
    %c0_i32 = arith.constant 0 : i32
    %c0_i32_0 = arith.constant 0 : i32
    %c0_i32_1 = arith.constant 0 : i32
    return %c0_i32, %c0_i32_0 : i32, i32
  }
  func.func @transform_8(%arg0: i32) -> (i32, i32) {
    %c0_i32 = arith.constant 0 : i32
    %c0_i32_0 = arith.constant 0 : i32
    %c0_i32_1 = arith.constant 0 : i32
    return %c0_i32, %c0_i32_0 : i32, i32
  }
  func.func @transform_9(%arg0: i32) -> (i32, i32, i32) {
    %c0_i32 = arith.constant 0 : i32
    %c0_i32_0 = arith.constant 0 : i32
    %c0_i32_1 = arith.constant 0 : i32
    %c0_i32_2 = arith.constant 0 : i32
    return %c0_i32, %c0_i32_0, %c0_i32_1 : i32, i32, i32
  }
  func.func @transform_10(%arg0: i32) -> (i32, i32) {
    %c0_i32 = arith.constant 0 : i32
    %c0_i32_0 = arith.constant 0 : i32
    %c0_i32_1 = arith.constant 0 : i32
    return %c0_i32, %c0_i32_0 : i32, i32
  }
  func.func @transform_11(%arg0: i32) -> (i32, i32) {
    %c0_i32 = arith.constant 0 : i32
    %c0_i32_0 = arith.constant 0 : i32
    %c0_i32_1 = arith.constant 0 : i32
    return %c0_i32, %c0_i32_0 : i32, i32
  }
  func.func @transform_12(%arg0: i32) -> (i32, i32) {
    %c0_i32 = arith.constant 0 : i32
    %c0_i32_0 = arith.constant 0 : i32
    %c0_i32_1 = arith.constant 0 : i32
    return %c0_i32, %c0_i32_0 : i32, i32
  }
  func.func @transform_13(%arg0: i32) -> (i32, i32, i32) {
    %c0_i32 = arith.constant 0 : i32
    %c0_i32_0 = arith.constant 0 : i32
    %c0_i32_1 = arith.constant 0 : i32
    %c0_i32_2 = arith.constant 0 : i32
    return %c0_i32, %c0_i32_0, %c0_i32_1 : i32, i32, i32
  }
  func.func @transform_14(%arg0: i32) -> (i32, i32) {
    %c0_i32 = arith.constant 0 : i32
    %c0_i32_0 = arith.constant 0 : i32
    %c0_i32_1 = arith.constant 0 : i32
    return %c0_i32, %c0_i32_0 : i32, i32
  }
  func.func @transform_15(%arg0: i32) -> (i32, i32) {
    %c0_i32 = arith.constant 0 : i32
    %c0_i32_0 = arith.constant 0 : i32
    %c0_i32_1 = arith.constant 0 : i32
    return %c0_i32, %c0_i32_0 : i32, i32
  }
  func.func @transform_16(%arg0: i32) -> (i32, i32) {
    %c0_i32 = arith.constant 0 : i32
    %c0_i32_0 = arith.constant 0 : i32
    %c0_i32_1 = arith.constant 0 : i32
    return %c0_i32, %c0_i32_0 : i32, i32
  }
  func.func @transform_17(%arg0: i32) -> (i32, i32, i32) {
    %c0_i32 = arith.constant 0 : i32
    %c0_i32_0 = arith.constant 0 : i32
    %c0_i32_1 = arith.constant 0 : i32
    return %arg0, %c0_i32, %c0_i32_0 : i32, i32, i32
  }
}

</mosaic_0001>

<bundles_post_ra>
// kernel: feature_extractor_forward.1
= control target key start
LH: loop header
LB: loop body
LE: loop exit
PB: predicated region body
PF: predicated region fallthrough
CT: control target
= control target key end

     0   :  { %s6155_s0 = inlined_call_operand.hbm [shape: f32[2,64,16], index: 0, kind: input, shape index: {}]   ;;  %s6156_s1 = inlined_call_operand.hbm [shape: bf16[3,16,256], index: 1, kind: input, shape index: {}]   ;;  %s6157_s2 = inlined_call_operand.vmem [shape: f32[1,256], index: 2, kind: input, shape index: {}]   ;;  %s6158_s3 = inlined_call_operand.hbm [shape: bf16[32,64], index: 3, kind: input, shape index: {}]   ;;  %s6159_s4 = inlined_call_operand.hbm [shape: bf16[256,128], index: 4, kind: input, shape index: {}]   ;;  %s6160_s5 = inlined_call_operand.hbm [shape: bf16[3,128,256], index: 5, kind: input, shape index: {}]   ;;  %s6161_s6 = inlined_call_operand.hbm [shape: f32[1,256], index: 6, kind: input, shape index: {}]   ;;  %s6162_s7 = inlined_call_operand.vmem [shape: bf16[16,32], index: 7, kind: input, shape index: {}]   ;;  %s6163_s8 = inlined_call_operand.hbm [shape: bf16[256,128], index: 8, kind: input, shape index: {}]   ;;  %s6164_s9 = inlined_call_operand.hbm [shape: bf16[3,128,256], index: 9, kind: input, shape index: {}]   ;;  %s6165_s10 = inlined_call_operand.vmem [shape: f32[1,256], index: 10, kind: input, shape index: {}]   ;;  %s6166_s11 = inlined_call_operand.vmem [shape: bf16[8,16], index: 11, kind: input, shape index: {}]   ;;  %s6167_s12 = inlined_call_operand.hbm [shape: bf16[256,128], index: 12, kind: input, shape index: {}]   ;;  %s6168_s13 = inlined_call_operand.hbm [shape: bf16[3,128,256], index: 13, kind: input, shape index: {}]   ;;  %s6169_s14 = inlined_call_operand.vmem [shape: f32[1,256], index: 14, kind: input, shape index: {}]   ;;  %s6170_s15 = inlined_call_operand.vmem [shape: bf16[4,8], index: 15, kind: input, shape index: {}]   ;;  %s6171_s16 = inlined_call_operand.hbm [shape: bf16[256,128], index: 16, kind: input, shape index: {}]   ;;  %s6172_s17 = inlined_call_operand.hbm [shape: f32[2,4,128], index: 17, kind: output, shape index: {}]  }
   0x1   :  { %6185 = sst [smem:[#allocation28_spill]] %s6155_s0 }
   0x2   :  { %6186 = sst [smem:[#allocation29_spill]] %s6156_s1 }
   0x3   :  { %6187 = sst [smem:[#allocation30_spill]] %s6158_s3 }
   0x4   :  { %6188 = sst [smem:[#allocation31_spill]] %s6159_s4 }
   0x5   :  { %6189 = sst [smem:[#allocation32_spill]] %s6160_s5 }
   0x6   :  { %6190 = sst [smem:[#allocation33_spill]] %s6161_s6 }
   0x7   :  { %6191 = sst [smem:[#allocation34_spill]] %s6163_s8 }
   0x8   :  { %6192 = sst [smem:[#allocation35_spill]] %s6164_s9 }
   0x9   :  { %6193 = sst [smem:[#allocation36_spill]] %s6166_s11 }
   0xa   :  { %6194 = sst [smem:[#allocation37_spill]] %s6169_s14 }
   0xb   :  { %6195 = sst [smem:[#allocation38_spill]] %s6170_s15 }
   0xc   :  { %6196 = sst [smem:[#allocation39_spill]] %s6172_s17 }
   0xd   :  { %22 = vsyncpa [#allocation3], 0 }
   0xe   :  { %24 = vsyncpa [#allocation3 + $0x1], 0 }
   0xf   :  { %25 = vsyncpa [#allocation6], 0 }
  0x10   :  { %26 = vsyncpa [#allocation9], 0 }
  0x11   :  { %27 = vsyncpa [#allocation12], 0 }
  0x12   :  { %28 = vsyncpa [#allocation15], 0 }
  0x13   :  { %29 = vsyncpa [#allocation18], 0 }
  0x14   :  { %30 = vsyncpa [#allocation4], 0 }
  0x15   :  { %32 = vsyncpa [#allocation4 + $0x1], 0  ;;  %s5443_s24 = smov 0   ;;  %s5445_s25 = smov 0  }
  0x16   :  { %s5447_s26 = smov 0   ;;  %s5449_s27 = smov 0  }
  0x17 LB: > { %s5333_s28 = smov [#allocation5]   ;;  %s5464_s0 = sadd.s32 4294967295, %s5331_s27   ;;  %s5331_s27 = sphi %s5449_s27, %s6249_s27   ;;  %s5327_s26 = sphi %s5447_s26, %s6248_s26   ;;  %s5323_s25 = sphi %s5445_s25, %s6247_s25   ;;  %s5319_s24 = sphi %s5443_s24, %s6246_s24  }
  0x18   : > { %s443_s29 = sshll.u32 %s5333_s28, 4  ;;  %p4089_p0 = scmp.ge.s32.totalorder %s5331_s27, 1  ;;  %s444_s29 = int_to_ptr.vmem [resolvable:$true] %s443_s29 }
  0x19   : > { %p6181_p1 = scmp.eq.s32.totalorder %s5464_s0, 0  ;;  %p431_p2 = scmp.lt.s32.totalorder %s5331_s27, 3 }
  0x1a   : > { %s5334_s19 = smov [#allocation8]   ;;  %s5335_s20 = smov [#allocation11]  }
  0x1b   : > { %p5469_p3 = pnand %p4089_p0, %p431_p2  ;;  %s472_s1 = sshll.u32 %s5334_s19, 4  ;;  %s5482_s1 = int_to_ptr.vmem [resolvable:$true] %s472_s1 }
  0x1c   : > { %s5484_s21 = sshll.u32 %s5335_s20, 4  ;;  %s4970_s23 = scalar_lea.vmem %s444_s29, 768  ;;  %s500_s21 = int_to_ptr.vmem [resolvable:$true] %s5484_s21 }
  0x1d   : > { %s6197_s30 = scalar_select %p5469_p3, 1, 0 }
  0x1e   : > { %p4521_p5 = pneg %p5469_p3  ;;  %p4971_p8 = scmp.ne.s32.totalorder %s444_s29, %s4970_s23 }
  0x1f   : > { %p4978_p11 = scmp.lt.s32.totalorder %s444_s29, %s444_s29  ;;  %p4979_p12 = scmp.lt.s32.totalorder %s4970_s23, %s4970_s23 }
  0x20   : > { %p5478_p6 = pnand %p4521_p5, %p6181_p1 }
  0x21   : > { %p4980_p13 = por %p4979_p12, %p4978_p11 }
  0x22   : > { %p5488_p7 = pneg %p5478_p6 }
  0x24   : > { %p4973_p9 = pnand %p4971_p8, %p5488_p7 }
  0x26   : > { %p4974_p10 = pneg %p4973_p9 }
  0x28   : > { %p4981_p0 = pnand %p4980_p13, %p4974_p10 }
  0x2a   : > { %4984 = shalt.err (!%p4981_p0)
}
  0x2b   : > { %s6179_s28 = smov 128   ;;  %s6180_s19 = smov 8  }
  0x2c   : > { %s6200_s15 = sld [smem:[#allocation29_spill]]  ;;  %s4996_s14 = scalar_lea.vmem %s5482_s1, 2048 }
  0x2d   : > { %p4997_p2 = scmp.ne.s32.totalorder %s5482_s1, %s4996_s14  ;;  %p5004_p9 = scmp.lt.s32.totalorder %s5482_s1, %s5482_s1 }
  0x2e   : > { %p5005_p10 = scmp.lt.s32.totalorder %s4996_s14, %s4996_s14 }
  0x2f   : > { %p4999_p5 = pnand %p4997_p2, %p5488_p7 }
  0x30   : > { %p5006_p11 = por %p5005_p10, %p5004_p9 }
  0x31   : > { %p5000_p8 = pneg %p4999_p5 }
  0x32   : > { %4524 = dma.hbm_to_vmem [thread:$0]  (!%p5478_p6), %s6200_s15, 768, %s444_s29, [#allocation6], %s6179_s28, %s6179_s28, %s6180_s19  }
  0x33   : > { %p5007_p12 = pnand %p5006_p11, %p5000_p8 }
  0x35   : > { %5010 = shalt.err (!%p5007_p12)
}
  0x36   : > { %s6175_s23 = smov 64   ;;  %s6177_s11 = smov 4  }
  0x37   : > { %s6201_s4 = sld [smem:[#allocation31_spill]]  ;;  %s5022_s29 = scalar_lea.vmem %s500_s21, 32 }
  0x38   : > { %p5023_p13 = scmp.ne.s32.totalorder %s500_s21, %s5022_s29  ;;  %p5030_p5 = scmp.lt.s32.totalorder %s500_s21, %s500_s21 }
  0x39   : > { %p5031_p8 = scmp.lt.s32.totalorder %s5022_s29, %s5022_s29 }
  0x3a   : > { %p5025_p0 = pnand %p5023_p13, %p5488_p7 }
  0x3b   : > { %p5032_p9 = por %p5031_p8, %p5030_p5 }
  0x3c   : > { %p5026_p2 = pneg %p5025_p0 }
  0x3d   : > { %4530 = dma.hbm_to_vmem [thread:$0]  (!%p5478_p6), %s6201_s4, 2048, %s5482_s1, [#allocation9], %s6175_s23, %s6175_s23, %s6177_s11  }
  0x3e   : > { %p5033_p10 = pnand %p5032_p9, %p5026_p2 }
  0x40   : > { %5036 = shalt.err (!%p5033_p10)
}
  0x41   : > { %s6202_s6 = sld [smem:[#allocation33_spill]]  ;;  %s5340_s15 = smov [#allocation14]  }
  0x42   : > { %s525_s1 = sshll.u32 %s5340_s15, 4  ;;  %s5341_s17 = smov [#allocation17]   ;;  %s526_s1 = int_to_ptr.vmem [resolvable:$true] %s525_s1 }
  0x43   : > { %s557_s23 = sshll.u32 %s5341_s17, 4  ;;  %s5048_s11 = scalar_lea.vmem %s526_s1, 6144  ;;  %s558_s23 = int_to_ptr.vmem [resolvable:$true] %s557_s23 }
  0x44   : > { %p5049_p11 = scmp.ne.s32.totalorder %s526_s1, %s5048_s11  ;;  %p5056_p0 = scmp.lt.s32.totalorder %s526_s1, %s526_s1 }
  0x45   : > { %p5057_p2 = scmp.lt.s32.totalorder %s5048_s11, %s5048_s11 }
  0x46   : > { %p5051_p12 = pnand %p5049_p11, %p5488_p7 }
  0x47   : > { %4536 = dma.hbm_to_vmem [thread:$0]  (!%p5478_p6), %s6202_s6, 32, %s500_s21, [#allocation12]  }
  0x48   : > { %p5052_p13 = pneg %p5051_p12  ;;  %p5058_p5 = por %p5057_p2, %p5056_p0 }
  0x4a   : > { %p5059_p8 = pnand %p5058_p5, %p5052_p13 }
  0x4c   : > { %5062 = shalt.err (!%p5059_p8)
}
  0x4d   : > { %s6203_s9 = sld [smem:[#allocation35_spill]]  ;;  %s5074_s14 = scalar_lea.vmem %s558_s23, 6144 }
  0x4e   : > { %p5075_p9 = scmp.ne.s32.totalorder %s558_s23, %s5074_s14  ;;  %p5082_p12 = scmp.lt.s32.totalorder %s558_s23, %s558_s23 }
  0x4f   : > { %p5083_p0 = scmp.lt.s32.totalorder %s5074_s14, %s5074_s14 }
  0x50   : > { %p5077_p10 = pnand %p5075_p9, %p5488_p7 }
  0x51   : > { %p5084_p13 = por %p5083_p0, %p5082_p12 }
  0x52   : > { %p5078_p11 = pneg %p5077_p10 }
  0x53   : > { %4542 = dma.hbm_to_vmem [thread:$0]  (!%p5478_p6), %s6203_s9, 6144, %s526_s1, [#allocation15], %s6179_s28, %s6179_s28, %s6180_s19  }
  0x54   : > { %p5085_p2 = pnand %p5084_p13, %p5078_p11 }
  0x56   : > { %5088 = shalt.err (!%p5085_p2)
}
  0x57   : > { %4548 = dma.hbm_to_vmem [thread:$0]  (!%p5478_p6), %s6168_s13, 6144, %s558_s23, [#allocation18], %s6179_s28, %s6179_s28, %s6180_s19  }
  0x58   : > { %s5342_s15 = smov [#allocation7]   ;;  %s5343_s17 = smov [#allocation10]  }
  0x59   : > { %s459_s1 = sshll.u32 %s5342_s15, 4  ;;  %s485_s21 = sshll.u32 %s5343_s17, 4  ;;  %s460_s1 = int_to_ptr.vmem [resolvable:$true] %s459_s1  ;;  %s486_s21 = int_to_ptr.vmem [resolvable:$true] %s485_s21 }
  0x5a   : > { %s5100_s29 = scalar_lea.vmem %s460_s1, 256  ;;  %p5108_p10 = scmp.lt.s32.totalorder %s460_s1, %s460_s1 }
  0x5b   : > { %p5101_p5 = scmp.ne.s32.totalorder %s460_s1, %s5100_s29  ;;  %p5109_p11 = scmp.lt.s32.totalorder %s5100_s29, %s5100_s29 }
  0x5d   : > { %p5103_p8 = pnand %p5101_p5, %p5488_p7  ;;  %p5110_p12 = por %p5109_p11, %p5108_p10 }
  0x5f   : > { %p5104_p9 = pneg %p5103_p8 }
  0x61   : > { %p5111_p0 = pnand %p5110_p12, %p5104_p9 }
  0x63   : > { %5114 = shalt.err (!%p5111_p0)
}
  0x64   : > { %s6204_s14 = smov 4   ;;  %s6205_s11 = smov 64  }
  0x65   : > { %s6206_s3 = sld [smem:[#allocation30_spill]]  ;;  %s5126_s15 = scalar_lea.vmem %s486_s21, 6144 }
  0x66   : > { %p5127_p13 = scmp.ne.s32.totalorder %s486_s21, %s5126_s15  ;;  %p5134_p8 = scmp.lt.s32.totalorder %s486_s21, %s486_s21 }
  0x67   : > { %p5135_p10 = scmp.lt.s32.totalorder %s5126_s15, %s5126_s15 }
  0x68   : > { %p5129_p2 = pnand %p5127_p13, %p5488_p7 }
  0x69   : > { %p5136_p9 = por %p5135_p10, %p5134_p8 }
  0x6a   : > { %p5130_p5 = pneg %p5129_p2 }
  0x6b   : > { %4527 = dma.hbm_to_vmem [thread:$0]  (!%p5478_p6), %s6206_s3, 256, %s460_s1, [#allocation6], %s6205_s11, %s6205_s11, %s6204_s14  }
  0x6c   : > { %p5137_p11 = pnand %p5136_p9, %p5130_p5 }
  0x6e   : > { %5140 = shalt.err (!%p5137_p11)
}
  0x6f   : > { %s6207_s5 = sld [smem:[#allocation32_spill]]  ;;  %s5344_s1 = smov [#allocation13]  }
  0x70   : > { %s512_s23 = sshll.u32 %s5344_s1, 4  ;;  %s5345_s20 = smov [#allocation16]   ;;  %s513_s23 = int_to_ptr.vmem [resolvable:$true] %s512_s23 }
  0x71   : > { %s544_s3 = sshll.u32 %s5345_s20, 4  ;;  %s5152_s4 = scalar_lea.vmem %s513_s23, 2048  ;;  %s545_s3 = int_to_ptr.vmem [resolvable:$true] %s544_s3 }
  0x72   : > { %p5153_p12 = scmp.ne.s32.totalorder %s513_s23, %s5152_s4  ;;  %p5160_p2 = scmp.lt.s32.totalorder %s513_s23, %s513_s23 }
  0x73   : > { %p5161_p5 = scmp.lt.s32.totalorder %s5152_s4, %s5152_s4 }
  0x74   : > { %p5155_p0 = pnand %p5153_p12, %p5488_p7 }
  0x75   : > { %4533 = dma.hbm_to_vmem [thread:$0]  (!%p5478_p6), %s6207_s5, 6144, %s486_s21, [#allocation9], %s6179_s28, %s6179_s28, %s6180_s19  }
  0x76   : > { %p5156_p13 = pneg %p5155_p0  ;;  %p5162_p8 = por %p5161_p5, %p5160_p2 }
  0x78   : > { %p5163_p10 = pnand %p5162_p8, %p5156_p13 }
  0x7a   : > { %5166 = shalt.err (!%p5163_p10)
}
  0x7b   : > { %s6208_s8 = sld [smem:[#allocation34_spill]]  ;;  %s5178_s17 = scalar_lea.vmem %s545_s3, 2048 }
  0x7c   : > { %p5179_p9 = scmp.ne.s32.totalorder %s545_s3, %s5178_s17  ;;  %p5186_p0 = scmp.lt.s32.totalorder %s545_s3, %s545_s3 }
  0x7d   : > { %p5187_p2 = scmp.lt.s32.totalorder %s5178_s17, %s5178_s17 }
  0x7e   : > { %p5181_p11 = pnand %p5179_p9, %p5488_p7 }
  0x7f   : > { %p5188_p13 = por %p5187_p2, %p5186_p0 }
  0x80   : > { %p5182_p12 = pneg %p5181_p11 }
  0x81   : > { %4539 = dma.hbm_to_vmem [thread:$0]  (!%p5478_p6), %s6208_s8, 2048, %s513_s23, [#allocation12], %s6205_s11, %s6205_s11, %s6204_s14  }
  0x82   : > { %p5189_p5 = pnand %p5188_p13, %p5182_p12 }
  0x84   : > { %5192 = shalt.err (!%p5189_p5)
}
  0x85   : > { %4545 = dma.hbm_to_vmem [thread:$0]  (!%p5478_p6), %s6167_s12, 2048, %s545_s3, [#allocation15], %s6205_s11, %s6205_s11, %s6204_s14  }
  0x86   : > { %s5346_s1 = smov [#allocation19]  }
  0x87   : > { %s576_s23 = sshll.u32 %s5346_s1, 4  ;;  %s577_s23 = int_to_ptr.vmem [resolvable:$true] %s576_s23 }
  0x88   : > { %s5204_s20 = scalar_lea.vmem %s577_s23, 2048  ;;  %p5212_p11 = scmp.lt.s32.totalorder %s577_s23, %s577_s23 }
  0x89   : > { %p5205_p8 = scmp.ne.s32.totalorder %s577_s23, %s5204_s20  ;;  %p5213_p12 = scmp.lt.s32.totalorder %s5204_s20, %s5204_s20 }
  0x8b   : > { %p5207_p10 = pnand %p5205_p8, %p5488_p7  ;;  %p5214_p0 = por %p5213_p12, %p5212_p11 }
  0x8d   : > { %p5208_p9 = pneg %p5207_p10 }
  0x8f   : > { %p5215_p2 = pnand %p5214_p0, %p5208_p9 }
  0x91   : > { %5218 = shalt.err (!%p5215_p2)
}
  0x92   : > { %4551 = dma.hbm_to_vmem [thread:$0]  (!%p5478_p6), %s6171_s16, 2048, %s577_s23, [#allocation18], %s6205_s11, %s6205_s11, %s6204_s14  }
  0x93   : > { %s4088_s18 = sadd.s32 4294967294, %s5331_s27   ;;  %s5597_s22 = sadd.s32 1, %s5331_s27  }
  0x94   : > { %s42_s15 = ssub.s32 %s5331_s27, %s5597_s22  ;;  %s45_s17 = sadd.s32 1, %s5327_s26 }
  0x95   : > { %p43_p7 = scmp.eq.s32.totalorder %s42_s15, 0  ;;  %p52_p13 = scmp.ne.s32.totalorder %s5327_s26, %s5323_s25 }
  0x96   : > { %p53_p5 = scmp.eq.s32.totalorder %s5331_s27, 0  ;;  %p58_p8 = scmp.ne.s32.totalorder %s5323_s25, %s5319_s24 }
  0x97   : > { %s5608_s4 = scalar_select %p43_p7, %s5327_s26, %s45_s17  }
  0x98   : > { %p5610_p10 = por %p53_p5, %p52_p13  ;;  %p5616_p6 = por %p6181_p1, %p58_p8 }
  0x99   : > { %p418_p9 = scmp.eq.s32.totalorder %s5464_s0, 1  ;;  %p424_p11 = scmp.eq.s32.totalorder %s4088_s18, 1 }
  0x9a   : > { %s6210_s14 = scalar_select %p5616_p6, 1, 0 }
  0x9b   : > { %p4570_p12 = scmp.lt.s32.totalorder %s5331_s27, 2  ;;  %s590_s11 = sand.u32 1, %s5327_s26  }
  0x9c   : > { %p5623_p0 = por %p418_p9, %p52_p13  ;;  %p5627_p2 = por %p424_p11, %p58_p8 }
  0x9d   : > { %s4101_s20 = sshll.u32 %s590_s11, 6  ;;  %s4380_s21 = sshll.u32 %s5331_s27, 10 }
  0x9e   : > { %s6211_s1 = scalar_select %p5623_p0, 1, 0 }
  0x9f   : > { %s6212_s23 = scalar_select %p5627_p2, 1, 0 }
  0xa0   : > { %s6213_s17 = sld [smem:[#allocation28_spill]]  ;;  %s594_s18 = scalar_lea.vmem [#allocation2], %s4101_s20 }
  0xa1   : > { %s601_s19 = sshll.u32 %s594_s18, 4  ;;  %p5641_p7 = pnand %p4570_p12, %p5610_p10  ;;  %s5637_s19 = int_to_ptr.vmem [resolvable:$true] %s601_s19 }
  0xa2   : > { %s5645_s6 = scalar_lea.sflag [#allocation3], %s590_s11 }
  0xa3   : > { %p5221_p5 = pneg %p5641_p7 }
  0xa6   : > { %s5635_s28 = scalar_lea.hbm %s6213_s17, %s4380_s21  ;;  %s5224_s20 = scalar_lea.hbm %s6213_s17, 2048 }
  0xa7   : > { %s5219_s8 = scalar_lea.hbm %s5635_s28, 1024  ;;  %p5225_p10 = scmp.lt.s32.totalorder %s5635_s28, %s6213_s17 }
  0xa8   : > { %p5220_p13 = scmp.ne.s32.totalorder %s5635_s28, %s5219_s8  ;;  %p5226_p11 = scmp.lt.s32.totalorder %s5224_s20, %s5219_s8 }
  0xaa   : > { %p5222_p8 = pnand %p5221_p5, %p5220_p13  ;;  %p5227_p12 = por %p5226_p11, %p5225_p10 }
  0xac   : > { %p5223_p9 = pneg %p5222_p8 }
  0xae   : > { %p5228_p4 = pnand %p5227_p12, %p5223_p9 }
  0xb0   : > { %5231 = shalt.err (!%p5228_p4)
}
  0xb1   : > { %s5232_s29 = scalar_lea.vmem %s5637_s19, 1024  ;;  %s5347_s11 = smov [#allocation2]  }
  0xb2   : > { %p5233_p1 = scmp.ne.s32.totalorder %s5637_s19, %s5232_s29  ;;  %s5237_s9 = sshll.u32 %s5347_s11, 4  ;;  %s5238_s9 = int_to_ptr.vmem [resolvable:$false] %s5237_s9 }
  0xb3   : > { %s5239_s21 = scalar_lea.vmem %s5238_s9, 2048  ;;  %p5240_p8 = scmp.lt.s32.totalorder %s5637_s19, %s5238_s9 }
  0xb4   : > { %p5235_p2 = pnand %p5233_p1, %p5221_p5  ;;  %p5241_p0 = scmp.lt.s32.totalorder %s5239_s21, %s5232_s29 }
  0xb6   : > { %p5236_p13 = pneg %p5235_p2  ;;  %p5242_p6 = por %p5241_p0, %p5240_p8 }
  0xb8   : > { %p5243_p3 = pnand %p5242_p6, %p5236_p13 }
  0xba   : > { %5246 = shalt.err (!%p5243_p3)
}
  0xbb   : > { %s6215_s8 = smov 8   ;;  %s6216_s3 = smov 128  }
  0xbc   : > { %4555 = dma.hbm_to_vmem [thread:$0]  (!%p5641_p7), %s5635_s28, 1024, %s5637_s19, %s5645_s6, %s6216_s3, %s6216_s3, %s6215_s8  }
  0xbd   : > { %p6217_p1 = scmp.ne.s32.totalorder %s6197_s30, 0 }
  0xbe   : > { %s5672_s20 = sand.u32 (!%p6217_p1), 1, %s5323_s25   ;;  %p6218_p3 = scmp.ne.s32.totalorder (!%p6217_p1), %s6210_s14, 0 }
  0xbf   : > { %613 = sbr.rel (%p6217_p1) target bundleno = 3248 (0xcb0), region = 88  ;;  %s4105_s9 = sshll.u32 (!%p6217_p1), %s5672_s20, 6 }
  0xc0   : > { %s616_s15 = scalar_lea.sflag (!%p6217_p1), [#allocation3], %s5672_s20  ;;  %s5676_s18 = scalar_lea.vmem (!%p6217_p1), [#allocation2], %s4105_s9 }
  0xc4   : > { %5290 = dma.done.wait (%p6218_p3), %s616_s15, 1024  }
  0xc5   : > { %5292 = vsyncadd (%p6218_p3), %s616_s15, 4294966272  ;;  %p6219_p4 = scmp.eq.s32.totalorder %s5464_s0, 0 }
  0xc7   : > { %5294 = dma.done.wait (%p6219_p4), [#allocation6], 1024   ;;  %p6220_p6 = pmov %p6219_p4 }
  0xc8   : > { %p6221_p0 = pmov %p6219_p4 }
  0xc9   : > { %5296 = vsyncadd (%p6220_p6), [#allocation6], 4294966272 }
  0xca   : > { %5298 = dma.done.wait (%p6221_p0), [#allocation9], 8192   ;;  %p6222_p2 = pmov %p6221_p0 }
  0xcb   : > { %p6223_p7 = pmov %p6221_p0 }
  0xcc   : > { %5300 = vsyncadd (%p6222_p2), [#allocation9], 4294959104 }
  0xcd   : > { %5302 = dma.done.wait (%p6223_p7), [#allocation12], 2080   ;;  %p6224_p5 = pmov %p6221_p0 }
  0xce   : > { %p6225_p9 = pmov %p6221_p0 }
  0xcf   : > { %5304 = vsyncadd (%p6224_p5), [#allocation12], 4294965216 }
  0xd0   : > { %5306 = dma.done.wait (%p6225_p9), [#allocation15], 8192   ;;  %p6226_p10 = pmov %p6221_p0 }
  0xd1   : > { %p6227_p11 = pmov %p6221_p0 }
  0xd2   : > { %5308 = vsyncadd (%p6226_p10), [#allocation15], 4294959104 }
  0xd3   : > { %5310 = dma.done.wait (%p6227_p11), [#allocation18], 8192   ;;  %p6228_p12 = pmov %p6221_p0 }
  0xd4   : > { %v719_v0 = vlaneseq  ;;  %v5348_v1 = vmov 0   ;;  %v4667_v10 = vld [vmem:[#allocation5 + $0x4] ss:$8 sps:$4 sm:$0xff]   ;;  %vm945_vm1 = vcmask 130048   ;;  %v4669_v11 = vld [vmem:[#allocation5] ss:$8 sps:$4 sm:$0xff]  }
  0xd5   : > { %5312 = vsyncadd (%p6228_p12), [#allocation18], 4294959104  ;;  %990 = vmatprep.mubr.bf16.mxu0 %v5348_v1  ;;  %1010 = vmatprep.mubr.bf16.mxu1 %v5348_v1  ;;  %v5719_v12 = vld [vmem:[%s5676_s18] sm:$0xff]  ;;  %v5722_v13 = vld [vmem:[%s5676_s18 + $0x8] sm:$0xff]  ;;  %vm1358_vm11 = vcmask 523264   ;;  %s5349_s30 = smov 112  }
  0xd6   : > { %v5705_v2 = vshrl.u32 %v719_v0, 7  ;;  %972 = vmatprep.subr.bf16.mxu0 %v4667_v10  ;;  %4475 = vmatprep.subr.bf16.mxu1 %v4667_v10  ;;  %v5729_v16 = vld [vmem:[%s5676_s18 + $0x38] sm:$0xff]  ;;  %v832_v17 = vrot.slane %v5719_v12, 7  ;;  %v833_v18 = vrot.slane %v5722_v13, 7  ;;  %v5743_v23 = vld [vmem:[%s5676_s18 + $0x20] sm:$0xff]  ;;  %v5746_v24 = vld [vmem:[%s5676_s18 + $0x28] sm:$0xff] }
  0xd7   : > { %v5734_v19 = vld [vmem:[%s5676_s18 + $0x18] sm:$0xff]  ;;  %973 = vmatpush1.bf16.msra.mxu0 %v4669_v11  ;;  %4476 = vmatpush1.bf16.msra.mxu1 %v4669_v11  ;;  %v839_v22 = vrot.slane %v5729_v16, 7  ;;  %v5750_v26 = vld [vmem:[%s5676_s18 + $0x10] sm:$0xff]  ;;  %v836_v29 = vrot.slane %v5743_v23, 7  ;;  %v837_v30 = vrot.slane %v5746_v24, 7  ;;  %v882_v34 = vrot.slane %v5722_v13, 1 }
  0xd8   : > { %v732_v3 = vand.u32 15, %v5705_v2  ;;  %v724_v4 = vadd.s32 32, %v5705_v2  ;;  %v5710_v5 = vadd.s32 16, %v5705_v2  ;;  %v726_v6 = vadd.s32 48, %v5705_v2  ;;  %v5762_v32 = vld [vmem:[%s5676_s18 + $0x30] sm:$0xff]  ;;  %s5350_s14 = smov 96  }
  0xd9   : > { %v5714_v7 = vadd.s32 8, %v5705_v2  ;;  %vm840_vm0 = vcmp.lt.s32.totalorder %v5705_v2, 1  ;;  %v835_v25 = vrot.slane %v5734_v19, 7  ;;  %v834_v31 = vrot.slane %v5750_v26, 7  ;;  %v4672_v37 = vld [vmem:[#allocation5 + $0x14] ss:$8 sps:$4 sm:$0xff]  }
  0xda   : > { %v760_v8 = vand.u32 15, %v724_v4  ;;  %v746_v9 = vand.u32 15, %v5710_v5  ;;  %vm5724_vm2 = vcmp.ne.s32.totalorder %v732_v3, 0  ;;  %v774_v15 = vand.u32 15, %v726_v6  ;;  %v4670_v42 = vld [vmem:[#allocation5 + $0x10] ss:$8 sps:$4 sm:$0xff]   ;;  %1067 = vmatprep.subr.bf16.mxu1 %v4672_v37 }
  0xdb   : > { %v739_v21 = vand.u32 15, %v5714_v7  ;;  %v847_v28 = vsel %vm840_vm0, %v832_v17, %v833_v18  ;;  %v848_v33 = vsel %vm840_vm0, %v839_v22, %v832_v17  ;;  %v838_v36 = vrot.slane %v5762_v32, 7  ;;  %v4675_v46 = vld [vmem:[#allocation5 + $0x24] ss:$8 sps:$4 sm:$0xff]   ;;  %v4673_v49 = vld [vmem:[#allocation5 + $0x20] ss:$8 sps:$4 sm:$0xff]  }
  0xdc   : > { %vm5736_vm3 = vcmp.ne.s32.totalorder %v760_v8, 0  ;;  %vm5752_vm4 = vcmp.ne.s32.totalorder %v746_v9, 0  ;;  %vm5767_vm5 = vcmp.ne.s32.totalorder %v774_v15, 0  ;;  %v865_v38 = vsel %vm5724_vm2, %v848_v33, 0.0  ;;  %1169 = vmatprep.subr.bf16.mxu0 %v4675_v46  ;;  %s6239_s3 = sld [smem:[#allocation36_spill]]  ;;  %s5351_s9 = smov 64  }
  0xdd   : > { %v843_v39 = vsel %vm840_vm0, %v836_v29, %v837_v30  ;;  %v844_v40 = vsel %vm840_vm0, %v835_v25, %v836_v29  ;;  %v883_v41 = vrot.slane %v5750_v26, 1  ;;  %v929_v43 = vpack.c.bf16 %v847_v28, %v865_v38  ;;  %s6240_s5 = sld [smem:[#allocation37_spill]]  ;;  %s4116_s19 = sshll.u32 %s5672_s20, 2 }
  0xde   : > { %v869_v44 = vsel %vm5736_vm3, %v844_v40, 0.0  ;;  %v846_v45 = vsel %vm840_vm0, %v833_v18, %v834_v31  ;;  %v842_v48 = vsel %vm840_vm0, %v837_v30, %v838_v36  ;;  %vm889_vm6 = vcmp.lt.s32.totalorder %v5705_v2, 7  ;;  %s6241_s28 = sld [smem:[#allocation38_spill]]  ;;  %s709_s29 = scalar_lea.vmem [#allocation20], %s4116_s19 }
  0xdf   : > { %v931_v47 = vpack.c.bf16 %v843_v39, %v869_v44  ;;  %4119 = vmatmul.mubr.msk.bf16.vlgmr.msra.gmra.mxu0 %vm945_vm1, %v929_v43  ;;  %v845_v50 = vsel %vm840_vm0, %v834_v31, %v835_v25  ;;  %v867_v51 = vsel %vm5752_vm4, %v846_v45, 0.0  ;;  %v841_v52 = vsel %vm840_vm0, %v838_v36, %v839_v22  ;;  %s3923_s11 = sshll.u32 %s709_s29, 4  ;;  %s3910_s15 = scalar_lea.sflag [#allocation4], %s5672_s20  ;;  %s6114_s11 = int_to_ptr.vmem [resolvable:$true] %s3923_s11 }
  0xe0   : > { %1000 = vmatprep.mubr.bf16.mxu0 %v5348_v1  ;;  %v871_v53 = vsel %vm5767_vm5, %v842_v48, 0.0  ;;  %v5799_v54 = vadd.s32 24, %v5705_v2  ;;  %1170 = vmatpush1.bf16.msra.mxu0 %v4673_v49  ;;  %vm874_vm7 = vcmp.ne.s32.totalorder %v739_v21, 15  ;;  %v895_v55 = vsel %vm889_vm6, %v882_v34, %v883_v41  ;;  %s5247_s18 = scalar_lea.vmem %s6114_s11, 64  ;;  %p6243_p8 = scmp.ne.s32.totalorder %s6211_s1, 0 }
  0xe1   : > { %4121 = vmatmul.mubr.msk.bf16.vlgmr.msra.gmra.mxu1 %vm945_vm1, %v931_v47  ;;  %v930_v56 = vpack.c.bf16 %v845_v50, %v867_v51  ;;  %v881_v57 = vrot.slane %v5719_v12, 1  ;;  %v932_v58 = vpack.c.bf16 %v841_v52, %v871_v53  ;;  %v725_v59 = vadd.s32 40, %v5705_v2  ;;  %p5248_p13 = scmp.ne.s32.totalorder %s6114_s11, %s5247_s18 }
  0xe2   : > { %1020 = vmatprep.mubr.bf16.mxu1 %v5348_v1  ;;  %1068 = vmatpush1.bf16.msra.mxu1 %v4670_v42  ;;  %v915_v60 = vsel %vm874_vm7, %v895_v55, 0.0  ;;  %v753_v61 = vand.u32 15, %v5799_v54  ;;  %v884_v62 = vrot.slane %v5734_v19, 1  ;;  %v885_v3 = vrot.slane %v5743_v23, 1 }
  0xe3   : > { %v896_v63 = vsel %vm889_vm6, %v881_v57, %v882_v34  ;;  %v922_v6 = vpack.c.bf16 %v5722_v13, %v5719_v12  ;;  %v727_v11 = vadd.s32 56, %v5705_v2  ;;  %v767_v14 = vand.u32 15, %v725_v59  ;;  %v1244_v59 = vld [vmem:[%s6157_s2] sm:$0x3]  ;;  %p5249_p1 = pnand %p5248_p13, %p6243_p8 }
  0xe4   : > { %v1126_v4 = vpack.c.bf16 %v915_v60, %v896_v63  ;;  %vm876_vm8 = vcmp.ne.s32.totalorder %v753_v61, 15  ;;  %v893_v8 = vsel %vm889_vm6, %v884_v62, %v885_v3  ;;  %v894_v9 = vsel %vm889_vm6, %v883_v41, %v884_v62 }
  0xe5   : > { %v917_v10 = vsel %vm876_vm8, %v893_v8, 0.0  ;;  %v886_v12 = vrot.slane %v5746_v24, 1  ;;  %v887_v13 = vrot.slane %v5762_v32, 1  ;;  %v923_v17 = vpack.c.bf16 %v5734_v19, %v5750_v26  ;;  %p5250_p3 = pneg %p5249_p1 }
  0xe6   : > { %v1127_v15 = vpack.c.bf16 %v917_v10, %v894_v9  ;;  %v781_v18 = vand.u32 15, %v727_v11  ;;  %v888_v20 = vrot.slane %v5729_v16, 1  ;;  %vm878_vm9 = vcmp.ne.s32.totalorder %v767_v14, 15 }
  0xe7   : > { %4120 = vmatmul.mubr.msk.bf16.gmra.mxu0 %vm945_vm1, %v930_v56  ;;  %v891_v21 = vsel %vm889_vm6, %v886_v12, %v887_v13  ;;  %v892_v22 = vsel %vm889_vm6, %v885_v3, %v886_v12  ;;  %v924_v28 = vpack.c.bf16 %v5746_v24, %v5743_v23  ;;  %v925_v31 = vpack.c.bf16 %v5729_v16, %v5762_v32 }
  0xe8   : > { %1187 = vmatprep.mubr.bf16.mxu0 %v5348_v1  ;;  %v919_v25 = vsel %vm878_vm9, %v891_v21, 0.0  ;;  %vm880_vm10 = vcmp.ne.s32.totalorder %v781_v18, 15  ;;  %v897_v19 = vsel %vm889_vm6, %v888_v20, %v881_v57  ;;  %v890_v29 = vsel %vm889_vm6, %v887_v13, %v888_v20 }
  0xe9   : > { %4122 = vmatmul.mubr.msk.bf16.gmra.mxu1 %vm945_vm1, %v932_v58  ;;  %v1128_v26 = vpack.c.bf16 %v919_v25, %v892_v22  ;;  %v921_v27 = vsel %vm880_vm10, %v897_v19, 0.0  ;;  %v5860_v57 = vsub.s32 0, %v5705_v2  ;;  %v5869_v9 = vsub.s32 1, %v5705_v2 }
  0xea   : > { %1085 = vmatprep.mubr.bf16.mxu1 %v5348_v1  ;;  %v1129_v30 = vpack.c.bf16 %v921_v27, %v890_v29 }
  0xeb   : > { %v5866_v3 = vrot.slane %v1244_v59, %v5860_v57 }
  0xef   : > { %4131 = vmatmul.mubr.msk.bf16.vlgmr.msra.gmra.mxu0 %vm945_vm1, %v1126_v4 }
  0xf0   : > { %1197 = vmatprep.mubr.bf16.mxu0 %v5348_v1 }
  0xf1   : > { %4125 = vmatmul.mubr.msk.bf16.vlgmr.msra.gmra.mxu1 %vm945_vm1, %v922_v6 }
  0xf2   : > { %1095 = vmatprep.mubr.bf16.mxu1 %v5348_v1 }
  0xf7   : > { %4132 = vmatmul.mubr.msk.bf16.gmra.mxu0 %vm945_vm1, %v1127_v15 }
  0xf8   : > { %1207 = vmatprep.mubr.bf16.mxu0 %v5348_v1 }
  0xf9   : > { %4126 = vmatmul.mubr.msk.bf16.gmra.mxu1 %vm945_vm1, %v923_v17  ;;  %v5875_v17 = vrot.slane %v1244_v59, %v5869_v9 }
  0xfa   : > { %1105 = vmatprep.mubr.bf16.mxu1 %v5348_v1 }
  0xff   : > { %4133 = vmatmul.mubr.msk.bf16.gmra.mxu0 %vm945_vm1, %v1128_v26 }
 0x100   : > { %1217 = vmatprep.mubr.bf16.mxu0 %v5348_v1 }
 0x101   : > { %4127 = vmatmul.mubr.msk.bf16.gmra.mxu1 %vm945_vm1, %v924_v28 }
 0x102   : > { %1115 = vmatprep.mubr.bf16.mxu1 %v5348_v1 }
 0x107   : > { %4134 = vmatmul.mubr.msk.bf16.gmra.mxu0 %vm945_vm1, %v1129_v30 }
 0x109   : > { %4128 = vmatmul.mubr.msk.bf16.gmra.mxu1 %vm945_vm1, %v925_v31 }
 0x10a   : > { %1397 = vmatprep.mubr.bf16.mxu1 %v5348_v1 }
 0x19f   : > { %v992_v23 = vpop.f32.mrf.mxu0 }
 0x1a1   : > { %v1012_v24 = vpop.f32.mrf.mxu1  ;;  %v994_v33 = vpop.f32.mrf.mxu0 }
 0x1a3   : > { %v1014_v34 = vpop.f32.mrf.mxu1  ;;  %v996_v35 = vpop.f32.mrf.mxu0 }
 0x1a5   : > { %v1016_v36 = vpop.f32.mrf.mxu1  ;;  %v998_v37 = vpop.f32.mrf.mxu0 }
 0x1a7   : > { %v1018_v38 = vpop.f32.mrf.mxu1  ;;  %v1002_v39 = vpop.f32.mrf.mxu0 }
 0x1a9   : > { %v1022_v40 = vpop.f32.mrf.mxu1  ;;  %v1004_v41 = vpop.f32.mrf.mxu0 }
 0x1ab   : > { %v5853_v42 = vpop.f32.mrf.mxu1  ;;  %v1006_v16 = vpop.f32.mrf.mxu0 }
 0x1ad   : > { %v5855_v32 = vpop.f32.mrf.mxu1  ;;  %v1008_v43 = vpop.f32.mrf.mxu0 }
 0x1af   : > { %v5857_v44 = vpop.f32.mrf.mxu1  ;;  %v1189_v45 = vpop.f32.mrf.mxu0 }
 0x1b1   : > { %v1087_v46 = vpop.f32.mrf.mxu1  ;;  %v1191_v47 = vpop.f32.mrf.mxu0 }
 0x1b2   : > { %v1088_v56 = vadd.f32 %v1087_v46, %v992_v23 }
 0x1b3   : > { %v1089_v48 = vpop.f32.mrf.mxu1  ;;  %v1193_v49 = vpop.f32.mrf.mxu0 }
 0x1b4   : > { %v1228_v63 = vadd.f32 %v1189_v45, %v1088_v56  ;;  %v1090_v8 = vadd.f32 %v1089_v48, %v994_v33 }
 0x1b5   : > { %v1091_v50 = vpop.f32.mrf.mxu1  ;;  %v1195_v51 = vpop.f32.mrf.mxu0 }
 0x1b6   : > { %v5872_v14 = vadd.f32 %v5866_v3, %v1228_v63  ;;  %v1229_v15 = vadd.f32 %v1191_v47, %v1090_v8  ;;  %v1092_v22 = vadd.f32 %v1091_v50, %v996_v35 }
 0x1b7   : > { %v1093_v52 = vpop.f32.mrf.mxu1  ;;  %v1199_v53 = vpop.f32.mrf.mxu0 }
 0x1b8   : > { %v1272_v21 = vmax.f32 %v5872_v14, 0.0  ;;  %v5879_v27 = vadd.f32 %v5875_v17, %v1229_v15  ;;  %v1094_v28 = vadd.f32 %v1093_v52, %v998_v37  ;;  %v1230_v47 = vadd.f32 %v1193_v49, %v1092_v22  ;;  %v4682_v14 = vld [vmem:[#allocation8 + $0x68] sm:$0xff]  }
 0x1b9   : > { %v1097_v55 = vpop.f32.mrf.mxu1  ;;  %v1201_v58 = vpop.f32.mrf.mxu0 }
 0x1ba   : > { %v5883_v46 = vrot.slane %v1272_v21, 1  ;;  %v1098_v48 = vadd.f32 %v1097_v55, %v1002_v39  ;;  %v1273_v37 = vmax.f32 %v5879_v27, 0.0  ;;  %v4678_v27 = vld [vmem:[#allocation8 + $0x78] sm:$0xff]  }
 0x1bb   : > { %v1099_v60 = vpop.f32.mrf.mxu1  ;;  %v1203_v61 = vpop.f32.mrf.mxu0  ;;  %4381 = vmatprep.subr.bf16.mxu0 %v4678_v27 }
 0x1bd   : > { %v1101_v62 = vpop.f32.mrf.mxu1  ;;  %v1205_v4 = vpop.f32.mrf.mxu0 }
 0x1be   : > { %v1102_v56 = vadd.f32 %v1101_v62, %v1006_v16 }
 0x1bf   : > { %v1103_v6 = vpop.f32.mrf.mxu1  ;;  %v1209_v10 = vpop.f32.mrf.mxu0 }
 0x1c0   : > { %v1104_v29 = vadd.f32 %v1103_v6, %v1008_v43  ;;  %v1231_v43 = vadd.f32 %v1195_v51, %v1094_v28  ;;  %v1234_v51 = vadd.f32 %v1203_v61, %v1102_v56 }
 0x1c1   : > { %v1107_v11 = vpop.f32.mrf.mxu1  ;;  %v1211_v12 = vpop.f32.mrf.mxu0 }
 0x1c2   : > { %v1108_v31 = vadd.f32 %v1107_v11, %v1012_v24  ;;  %v1235_v24 = vadd.f32 %v1205_v4, %v1104_v29 }
 0x1c3   : > { %v1109_v13 = vpop.f32.mrf.mxu1  ;;  %v1213_v18 = vpop.f32.mrf.mxu0 }
 0x1c4   : > { %v1110_v19 = vadd.f32 %v1109_v13, %v1014_v34  ;;  %v1100_v34 = vadd.f32 %v1099_v60, %v1004_v41  ;;  %v1232_v41 = vadd.f32 %v1199_v53, %v1098_v48 }
 0x1c5   : > { %v1111_v20 = vpop.f32.mrf.mxu1  ;;  %v1215_v25 = vpop.f32.mrf.mxu0 }
 0x1c6   : > { %v1112_v23 = vadd.f32 %v1111_v20, %v1016_v36  ;;  %v1237_v59 = vadd.f32 %v1211_v12, %v1110_v19  ;;  %v1233_v60 = vadd.f32 %v1201_v58, %v1100_v34  ;;  %v5895_v12 = vadd.f32 %v5875_v17, %v1231_v43 }
 0x1c7   : > { %v1113_v26 = vpop.f32.mrf.mxu1  ;;  %v1219_v30 = vpop.f32.mrf.mxu0  ;;  %v5907_v20 = vadd.f32 %v5866_v3, %v1232_v41 }
 0x1c8   : > { %v1114_v33 = vadd.f32 %v1113_v26, %v1018_v38  ;;  %v1236_v38 = vadd.f32 %v1209_v10, %v1108_v31  ;;  %v1238_v52 = vadd.f32 %v1213_v18, %v1112_v23  ;;  %v1265_v62 = vadd.f32 %v5875_v17, %v1237_v59 }
 0x1c9   : > { %v1117_v45 = vpop.f32.mrf.mxu1  ;;  %v1221_v50 = vpop.f32.mrf.mxu0  ;;  %v1261_v26 = vadd.f32 %v5875_v17, %v1233_v60  ;;  %v1276_v59 = vmax.f32 %v5907_v20, 0.0 }
 0x1ca   : > { %v1118_v35 = vadd.f32 %v1117_v45, %v1022_v40  ;;  %v1239_v63 = vadd.f32 %v1215_v25, %v1114_v33  ;;  %v5889_v40 = vadd.f32 %v5866_v3, %v1230_v47  ;;  %v5902_v53 = vadd.f32 %v5866_v3, %v1236_v38 }
 0x1cb   : > { %v1119_v8 = vpop.f32.mrf.mxu1  ;;  %v1223_v39 = vpop.f32.mrf.mxu0  ;;  %v1281_v28 = vmax.f32 %v1265_v62, 0.0 }
 0x1cc   : > { %v1240_v36 = vadd.f32 %v1219_v30, %v1118_v35  ;;  %v1267_v6 = vadd.f32 %v5875_v17, %v1239_v63  ;;  %v1120_v11 = vadd.f32 %v1119_v8, %v5853_v42  ;;  %v5898_v42 = vadd.f32 %v5875_v17, %v1235_v24 }
 0x1cd   : > { %v1121_v49 = vpop.f32.mrf.mxu1  ;;  %v1225_v18 = vpop.f32.mrf.mxu0  ;;  %v1289_v30 = vrot.slane %v1273_v37, 1  ;;  %v1280_v45 = vmax.f32 %v5902_v53, 0.0  ;;  %v1277_v63 = vmax.f32 %v1261_v26, 0.0  ;;  %v1297_v43 = vrot.slane %v1281_v28, 1 }
 0x1ce   : > { %v1268_v16 = vadd.f32 %v5866_v3, %v1240_v36  ;;  %v1122_v55 = vadd.f32 %v1121_v49, %v5855_v32  ;;  %v1241_v4 = vadd.f32 %v1221_v50, %v1120_v11  ;;  %v1266_v32 = vadd.f32 %v5866_v3, %v1238_v52 }
 0x1cf   : > { %v1123_v10 = vpop.f32.mrf.mxu1  ;;  %v1283_v58 = vmax.f32 %v1267_v6, 0.0  ;;  %v1279_v31 = vmax.f32 %v5898_v42, 0.0  ;;  %v1275_v50 = vmax.f32 %v5895_v12, 0.0  ;;  %v1296_v6 = vrot.slane %v1280_v45, 1 }
 0x1d0   : > { %v1242_v13 = vadd.f32 %v1223_v39, %v1122_v55  ;;  %v1124_v15 = vadd.f32 %v1123_v10, %v5857_v44  ;;  %v1269_v61 = vadd.f32 %v5875_v17, %v1241_v4  ;;  %v1284_v22 = vmax.f32 %v1268_v16, 0.0 }
 0x1d1   : > { %v1262_v44 = vadd.f32 %v5866_v3, %v1234_v51  ;;  %v1282_v47 = vmax.f32 %v1266_v32, 0.0  ;;  %v1299_v48 = vrot.slane %v1283_v58, 1  ;;  %v1295_v52 = vrot.slane %v1279_v31, 1 }
 0x1d2   : > { %v1270_v25 = vadd.f32 %v5866_v3, %v1242_v13  ;;  %v1243_v19 = vadd.f32 %v1225_v18, %v1124_v15  ;;  %v1285_v29 = vmax.f32 %v1269_v61, 0.0  ;;  %v1300_v34 = vrot.slane %v1284_v22, 1 }
 0x1d3   : > { %v1278_v8 = vmax.f32 %v1262_v44, 0.0  ;;  %v1298_v11 = vrot.slane %v1282_v47, 1  ;;  %v1309_v49 = vsel %vm889_vm6, %v1297_v43, %v1299_v48  ;;  %v1274_v10 = vmax.f32 %v5889_v40, 0.0 }
 0x1d4   : > { %v1286_v23 = vmax.f32 %v1270_v25, 0.0  ;;  %v1271_v33 = vadd.f32 %v5875_v17, %v1243_v19  ;;  %v1301_v35 = vrot.slane %v1285_v29, 1  ;;  %v1293_v12 = vrot.slane %v1277_v63, 1 }
 0x1d5   : > { %v1306_v60 = vsel %vm889_vm6, %v1298_v11, %v1300_v34  ;;  %v1311_v42 = vsel %vm889_vm6, %v1295_v52, %v1297_v43  ;;  %v1294_v13 = vrot.slane %v1278_v8, 1  ;;  %v1308_v15 = vsel %vm889_vm6, %v1296_v6, %v1298_v11  ;;  %v4688_v11 = vld [vmem:[#allocation8 + $0x50] sm:$0xff]  }
 0x1d6   : > { %v1302_v56 = vrot.slane %v1286_v23, 1  ;;  %v1287_v3 = vmax.f32 %v1271_v33, 0.0  ;;  %v1307_v38 = vsel %vm889_vm6, %v1299_v48, %v1301_v35  ;;  %v1329_v32 = vmax.f32 %v1281_v28, %v1309_v49  ;;  %v4689_v49 = vld [vmem:[#allocation8 + $0x10] sm:$0xff]  }
 0x1d7   : > { %v1331_v4 = vmax.f32 %v1283_v58, %v1307_v38  ;;  %v1291_v61 = vrot.slane %v1275_v50, 1  ;;  %v1330_v20 = vmax.f32 %v1282_v47, %v1306_v60  ;;  %v1292_v25 = vrot.slane %v1276_v59, 1  ;;  %v4685_v38 = vld [vmem:[#allocation8 + $0x20] sm:$0xff]  }
 0x1d8   : > { %v1304_v24 = vsel %vm889_vm6, %v1300_v34, %v1302_v56  ;;  %v1318_v17 = vsel %vm889_vm6, %v1302_v56, %v5883_v46  ;;  %v1303_v36 = vrot.slane %v1287_v3, 1  ;;  %v1310_v40 = vsel %vm889_vm6, %v1294_v13, %v1296_v6  ;;  %v4687_v6 = vld [vmem:[#allocation8 + $0x18] sm:$0xff]   ;;  %v4692_v60 = vld [vmem:[#allocation8 + $0x40] sm:$0xff]  }
 0x1d9   : > { %v1332_v39 = vmax.f32 %v1284_v22, %v1304_v24  ;;  %v1334_v41 = vmax.f32 %v1286_v23, %v1318_v17  ;;  %v1313_v22 = vsel %vm889_vm6, %v1293_v12, %v1295_v52  ;;  %v1341_v58 = vpack.c.bf16 %v1331_v4, %v1329_v32  ;;  %v4681_v17 = vld [vmem:[#allocation8 + $0x30] sm:$0xff]   ;;  %v4686_v52 = vld [vmem:[#allocation8 + $0x58] sm:$0xff]  }
 0x1da   : > { %v1319_v16 = vsel %vm889_vm6, %v1303_v36, %v1289_v30  ;;  %v1305_v55 = vsel %vm889_vm6, %v1301_v35, %v1303_v36  ;;  %v1327_v19 = vmax.f32 %v1279_v31, %v1311_v42  ;;  %v1328_v26 = vmax.f32 %v1280_v45, %v1308_v15  ;;  %v4684_v36 = vld [vmem:[#allocation8 + $0x60] sm:$0xff]  }
 0x1db   : > { %v1335_v51 = vmax.f32 %v1287_v3, %v1319_v16  ;;  %v1333_v62 = vmax.f32 %v1285_v29, %v1305_v55  ;;  %v1342_v18 = vpack.c.bf16 %v1334_v41, %v1332_v39  ;;  %v1315_v44 = vsel %vm889_vm6, %v1291_v61, %v1293_v12  ;;  %v4690_v41 = vld [vmem:[#allocation8 + $0x48] sm:$0xff]  }
 0x1dc   : > { %v1290_v29 = vrot.slane %v1274_v10, 1  ;;  %v1312_v28 = vsel %vm889_vm6, %v1292_v25, %v1294_v13  ;;  %v1325_v23 = vmax.f32 %v1277_v63, %v1313_v22  ;;  %v1340_v33 = vpack.c.bf16 %v1330_v20, %v1328_v26  ;;  %v4691_v16 = vld [vmem:[#allocation8 + $0x8] sm:$0xff]   ;;  %v4705_v20 = vld [vmem:[#allocation10 + $0x74] ss:$8 sps:$4 sm:$0xff]  }
 0x1dd   : > { %v1343_v53 = vpack.c.bf16 %v1335_v51, %v1333_v62  ;;  %v1326_v47 = vmax.f32 %v1278_v8, %v1310_v40  ;;  %v1317_v48 = vsel %vm889_vm6, %v1289_v30, %v1291_v61  ;;  %v1323_v34 = vmax.f32 %v1275_v50, %v1315_v44  ;;  %v4676_v50 = vld [vmem:[#allocation7] sm:$0xff]   ;;  %v4693_v51 = vld [vmem:[#allocation8] sm:$0xff]  }
 0x1de   : > { %v1314_v35 = vsel %vm889_vm6, %v1290_v29, %v1292_v25  ;;  %v1339_v31 = vpack.c.bf16 %v1327_v19, %v1325_v23  ;;  %v1324_v45 = vmax.f32 %v1276_v59, %v1312_v28  ;;  %v1316_v56 = vsel %vm889_vm6, %v5883_v46, %v1290_v29  ;;  %v4677_v46 = vld [vmem:[#allocation7 + $0x8] sm:$0xff]   ;;  %v4680_v59 = vld [vmem:[#allocation8 + $0x70] sm:$0xff]   ;;  %v4709_v25 = vld [vmem:[#allocation10 + $0x60] ss:$8 sps:$4 sm:$0xff]  }
 0x1df   : > { %1373 = vmatprep.subr.bf16.mxu1 %v1343_v53  ;;  %v1321_v3 = vmax.f32 %v1273_v37, %v1317_v48  ;;  %v1322_v8 = vmax.f32 %v1274_v10, %v1314_v35  ;;  %v1320_v30 = vmax.f32 %v1272_v21, %v1316_v56  ;;  %v4679_v37 = vld [vmem:[#allocation8 + $0x38] sm:$0xff]   ;;  %v4683_v21 = vld [vmem:[#allocation8 + $0x28] sm:$0xff]   ;;  %v5967_v44 = vand.u32 127, %v719_v0 }
 0x1e0   : > { %1374 = vmatpush1.bf16.msra.mxu1 %v1342_v18  ;;  %v1338_v63 = vpack.c.bf16 %v1326_v47, %v1324_v45  ;;  %4382 = vmatpush3.bf16.msra.mxu0 %v4679_v37  ;;  %v4696_v61 = vld [vmem:[#allocation10 + $0xf4] ss:$8 sps:$4 sm:$0xff]   ;;  %v4703_v18 = vld [vmem:[#allocation10 + $0x70] ss:$8 sps:$4 sm:$0xff]   ;;  %v4711_v40 = vld [vmem:[#allocation10 + $0x64] ss:$8 sps:$4 sm:$0xff]  }
 0x1e1   : > { %1375 = vmatprep.subr.bf16.mxu1 %v1341_v58  ;;  %v1337_v43 = vpack.c.bf16 %v1323_v34, %v1321_v3  ;;  %v1336_v24 = vpack.c.bf16 %v1322_v8, %v1320_v30  ;;  %4383 = vmatprep.subr.bf16.mxu0 %v4680_v59  ;;  %v4715_v58 = vld [vmem:[#allocation10 + $0x50] ss:$8 sps:$4 sm:$0xff]   ;;  %v4717_v19 = vld [vmem:[#allocation10 + $0x54] ss:$8 sps:$4 sm:$0xff]   ;;  %vm1436_vm12 = vcmp.lt.s32.totalorder %v5967_v44, 112 }
 0x1e2   : > { %v4694_v30 = vld [vmem:[#allocation10 + $0xf0] ss:$8 sps:$4 sm:$0xff]  }
 0x1e4   : > { %1376 = vmatpush1.bf16.msra.mxu1 %v1340_v33  ;;  %4384 = vmatpush3.bf16.msra.mxu0 %v4681_v17  ;;  %v4697_v17 = vld [vmem:[#allocation10 + $0xe0] ss:$8 sps:$4 sm:$0xff]  }
 0x1e5   : > { %1377 = vmatprep.subr.bf16.mxu1 %v1339_v31  ;;  %4385 = vmatprep.subr.bf16.mxu0 %v4682_v14 }
 0x1e8   : > { %1378 = vmatpush1.bf16.msra.mxu1 %v1338_v63  ;;  %4386 = vmatpush3.bf16.msra.mxu0 %v4683_v21 }
 0x1e9   : > { %1379 = vmatprep.subr.bf16.mxu1 %v1337_v43  ;;  %4387 = vmatprep.subr.bf16.mxu0 %v4684_v36 }
 0x1ec   : > { %1380 = vmatpush1.bf16.msra.mxu1 %v1336_v24  ;;  %4388 = vmatpush3.bf16.msra.mxu0 %v4685_v38  ;;  %v4699_v24 = vld [vmem:[#allocation10 + $0xe4] ss:$8 sps:$4 sm:$0xff]  }
 0x1ed   : > { %4389 = vmatprep.subr.bf16.mxu0 %v4686_v52  ;;  %1847 = vmatprep.subr.bf16.mxu1 %v4705_v20  ;;  %v4702_v52 = vld [vmem:[#allocation10 + $0xd4] ss:$8 sps:$4 sm:$0xff]   ;;  %v4730_v20 = vld [vmem:[#allocation10 + $0x80] ss:$8 sps:$4 sm:$0xff]  }
 0x1ef   : > { %4137 = vmatmul.mubr.msk.bf16.vlgmr.msra.gmra.mxu1 %vm1358_vm11, %v4676_v50 }
 0x1f0   : > { %1407 = vmatprep.mubr.bf16.mxu1 %v5348_v1  ;;  %4390 = vmatpush3.bf16.msra.mxu0 %v4687_v6 }
 0x1f1   : > { %4391 = vmatprep.subr.bf16.mxu0 %v4688_v11  ;;  %1848 = vmatpush1.bf16.msra.mxu1 %v4703_v18  ;;  %v4732_v18 = vld [vmem:[#allocation10 + $0x84] ss:$8 sps:$4 sm:$0xff]  }
 0x1f2   : > { %1849 = vmatprep.subr.bf16.mxu1 %v4711_v40  ;;  %v4738_v40 = vld [vmem:[#allocation10 + $0x14] ss:$8 sps:$4 sm:$0xff]  }
 0x1f4   : > { %4392 = vmatpush3.bf16.msra.mxu0 %v4689_v49 }
 0x1f5   : > { %4393 = vmatprep.subr.bf16.mxu0 %v4690_v41  ;;  %1850 = vmatpush1.bf16.msra.mxu1 %v4709_v25  ;;  %v4735_v25 = vld [vmem:[#allocation10 + $0x24] ss:$8 sps:$4 sm:$0xff]  }
 0x1f6   : > { %1851 = vmatprep.subr.bf16.mxu1 %v4717_v19  ;;  %v4741_v19 = vld [vmem:[#allocation10 + $0x4] ss:$8 sps:$4 sm:$0xff]  }
 0x1f7   : > { %4138 = vmatmul.mubr.msk.bf16.gmra.mxu1 %vm1358_vm11, %v4677_v46 }
 0x1f8   : > { %1879 = vmatprep.mubr.bf16.mxu1 %v5348_v1  ;;  %4394 = vmatpush3.bf16.msra.mxu0 %v4691_v16 }
 0x1f9   : > { %4395 = vmatprep.subr.bf16.mxu0 %v4692_v60  ;;  %1852 = vmatpush1.bf16.msra.mxu1 %v4715_v58  ;;  %v4708_v60 = vld [vmem:[#allocation10 + $0xc4] ss:$8 sps:$4 sm:$0xff]   ;;  %v4736_v58 = vld [vmem:[#allocation10 + $0x10] ss:$8 sps:$4 sm:$0xff]  }
 0x1fc   : > { %4396 = vmatpush3.bf16.msra.mxu0 %v4693_v51  ;;  %v4706_v51 = vld [vmem:[#allocation10 + $0xc0] ss:$8 sps:$4 sm:$0xff]  }
 0x1fd   : > { %1980 = vmatprep.subr.bf16.mxu0 %v4696_v61  ;;  %v4729_v61 = vld [vmem:[#allocation10 + $0x34] ss:$8 sps:$4 sm:$0xff]  }
 0x2af   : > { %v1399_v39 = vpop.f32.mrf.mxu1 }
 0x2b1   : > { %v1401_v55 = vpop.f32.mrf.mxu1 }
 0x2b3   : > { %v1403_v62 = vpop.f32.mrf.mxu1 }
 0x2b4   : > { %v4632_v4 = vpack.i.bf16 %v1403_v62, %v1399_v39 }
 0x2b5   : > { %v1405_v10 = vpop.f32.mrf.mxu1 }
 0x2b6   : > { %4633 = vrot.lane.b32.xlu0 %v4632_v4, %s5349_s30  ;;  %v4637_v42 = vpack.i.bf16 %v1405_v10, %v1401_v55  ;;  %v4712_v4 = vld [vmem:[#allocation10 + $0xb0] ss:$8 sps:$4 sm:$0xff]  }
 0x2b7   : > { %v5960_v12 = vpop.f32.mrf.mxu1 }
 0x2b9   : > { %v5962_v13 = vpop.f32.mrf.mxu1 }
 0x2ba   : > { %4638 = vrot.lane.b32.xlu0 %v4637_v42, %s5349_s30  ;;  %v4721_v42 = vld [vmem:[#allocation10 + $0x40] ss:$8 sps:$4 sm:$0xff]  }
 0x2bb   : > { %v1413_v15 = vpop.f32.mrf.mxu1 }
 0x2bc   : > { %v4642_v53 = vpack.i.bf16 %v1413_v15, %v5960_v12 }
 0x2bd   : > { %v1415_v32 = vpop.f32.mrf.mxu1 }
 0x2be   : > { %4643 = vrot.lane.b32.xlu1 %v4642_v53, %s5349_s30  ;;  %v4647_v22 = vpack.i.bf16 %v1415_v32, %v5962_v13  ;;  %v4726_v53 = vld [vmem:[#allocation10 + $0x94] ss:$8 sps:$4 sm:$0xff]  }
 0x2c2   : > { %4648 = vrot.lane.b32.xlu1 %v4647_v22, %s5349_s30  ;;  %v4733_v22 = vld [vmem:[#allocation10 + $0x20] ss:$8 sps:$4 sm:$0xff]  }
 0x328   : > { %v4634_v26 = vpop.permute.xlu0 %4633 }
 0x329   : > { %v4636_v28 = vunpack.i.h.bf16 %v4634_v26  ;;  %v4635_v23 = vunpack.i.l.bf16 %v4634_v26  ;;  %v4739_v26 = vld [vmem:[#allocation10] ss:$8 sps:$4 sm:$0xff]  }
 0x32c   : > { %v4639_v29 = vpop.permute.xlu0 %4638 }
 0x32d   : > { %v4641_v33 = vunpack.i.h.bf16 %v4639_v29  ;;  %v4640_v47 = vunpack.i.l.bf16 %v4639_v29  ;;  %v4744_v29 = vld [vmem:[#allocation10 + $0x174] ss:$8 sps:$4 sm:$0xff]  }
 0x32f   : > { %v1438_v48 = vsel %vm1436_vm12, %v4636_v28, %v4641_v33  ;;  %v1442_v35 = vsel %vm1436_vm12, %v4641_v33, %v4636_v28  ;;  %v1437_v31 = vsel %vm1436_vm12, %v4635_v23, %v4640_v47  ;;  %v1441_v0 = vsel %vm1436_vm12, %v4640_v47, %v4635_v23 }
 0x330   : > { %v1447_v34 = vmax.f32 %v1403_v62, %v1438_v48  ;;  %v1445_v45 = vmax.f32 %v1399_v39, %v1437_v31  ;;  %v4644_v56 = vpop.permute.xlu1 %4643  ;;  %v1446_v3 = vmax.f32 %v1401_v55, %v1441_v0  ;;  %v1448_v63 = vmax.f32 %v1405_v10, %v1442_v35  ;;  %v4700_v55 = vld [vmem:[#allocation10 + $0xd0] ss:$8 sps:$4 sm:$0xff]   ;;  %v4714_v62 = vld [vmem:[#allocation10 + $0xb4] ss:$8 sps:$4 sm:$0xff]   ;;  %v4720_v10 = vld [vmem:[#allocation10 + $0xa4] ss:$8 sps:$4 sm:$0xff]  }
 0x331   : > { %v4646_v46 = vunpack.i.h.bf16 %v4644_v56  ;;  %v4645_v27 = vunpack.i.l.bf16 %v4644_v56  ;;  %v1638_v56 = vand.u32 7, %v5705_v2 }
 0x332   : > { %v1453_v8 = vpack.c.bf16 %v1447_v34, %v1445_v45  ;;  %v1454_v43 = vpack.c.bf16 %v1448_v63, %v1446_v3  ;;  %v1645_v3 = vand.u32 7, %v5714_v7 }
 0x333   : > { %vm6003_vm13 = vcmp.ne.s32.totalorder %v1638_v56, 0  ;;  %vm1706_vm5 = vcmp.ne.s32.totalorder %v1638_v56, 7 }
 0x334   : > { %1617 = vmatprep.mubr.bf16.mxu0 %v1454_v43  ;;  %v4649_v50 = vpop.permute.xlu1 %4648  ;;  %vm1683_vm14 = vcmp.ne.s32.totalorder %v1645_v3, 0  ;;  %vm1707_vm7 = vcmp.ne.s32.totalorder %v1645_v3, 7 }
 0x335   : > { %v4651_v37 = vunpack.i.h.bf16 %v4649_v50  ;;  %v4650_v59 = vunpack.i.l.bf16 %v4649_v50  ;;  %1618 = vmatmul.mubr.bf16.vlgmr.msra.gmra.mxu0 %v1453_v8  ;;  %vm4171_vm15 = vmpackc.low %vm1683_vm14, %vm6003_vm13  ;;  %vm2311_vm13 = vcmp.lt.s32.totalorder %v5967_v44, 96 }
 0x336   : > { %1981 = vmatpush1.bf16.msra.mxu0 %v4694_v30  ;;  %vm4209_vm8 = vmpackc.low %vm1707_vm7, %vm1706_vm5 }
 0x337   : > { %v1440_v14 = vsel %vm1436_vm12, %v4646_v46, %v4651_v37  ;;  %v1444_v21 = vsel %vm1436_vm12, %v4651_v37, %v4646_v46  ;;  %v1439_v36 = vsel %vm1436_vm12, %v4645_v27, %v4650_v59  ;;  %v1443_v38 = vsel %vm1436_vm12, %v4650_v59, %v4645_v27  ;;  %1982 = vmatprep.subr.bf16.mxu0 %v4699_v24 }
 0x338   : > { %v1450_v6 = vmax.f32 %v5962_v13, %v1443_v38  ;;  %v1452_v11 = vmax.f32 %v1415_v32, %v1444_v21  ;;  %v1449_v49 = vmax.f32 %v5960_v12, %v1439_v36  ;;  %v1451_v39 = vmax.f32 %v1413_v15, %v1440_v14  ;;  %v4718_v12 = vld [vmem:[#allocation10 + $0xa0] ss:$8 sps:$4 sm:$0xff]   ;;  %v4723_v13 = vld [vmem:[#allocation10 + $0x44] ss:$8 sps:$4 sm:$0xff]   ;;  %v4724_v15 = vld [vmem:[#allocation10 + $0x90] ss:$8 sps:$4 sm:$0xff]  }
 0x339   : > { %1853 = vmatprep.subr.bf16.mxu1 %v4723_v13  ;;  %v4727_v32 = vld [vmem:[#allocation10 + $0x30] ss:$8 sps:$4 sm:$0xff]   ;;  %v4747_v21 = vld [vmem:[#allocation10 + $0x164] ss:$8 sps:$4 sm:$0xff]   ;;  %v1652_v36 = vand.u32 7, %v5710_v5  ;;  %v1659_v38 = vand.u32 7, %v5799_v54 }
 0x33a   : > { %v1456_v41 = vpack.c.bf16 %v1452_v11, %v1450_v6  ;;  %v1455_v16 = vpack.c.bf16 %v1451_v39, %v1449_v49  ;;  %1983 = vmatpush1.bf16.msra.mxu0 %v4697_v17  ;;  %1854 = vmatpush1.bf16.msra.mxu1 %v4721_v42  ;;  %v4742_v17 = vld [vmem:[#allocation10 + $0x170] ss:$8 sps:$4 sm:$0xff]   ;;  %v4745_v6 = vld [vmem:[#allocation10 + $0x160] ss:$8 sps:$4 sm:$0xff]   ;;  %v4750_v11 = vld [vmem:[#allocation10 + $0x154] ss:$8 sps:$4 sm:$0xff]  }
 0x33b   : > { %1984 = vmatprep.subr.bf16.mxu0 %v4702_v52  ;;  %1855 = vmatprep.subr.bf16.mxu1 %v4729_v61  ;;  %vm1684_vm2 = vcmp.ne.s32.totalorder %v1652_v36, 0  ;;  %vm1685_vm3 = vcmp.ne.s32.totalorder %v1659_v38, 0  ;;  %v4748_v5 = vld [vmem:[#allocation10 + $0x150] ss:$8 sps:$4 sm:$0xff]   ;;  %vm1708_vm9 = vcmp.ne.s32.totalorder %v1652_v36, 7  ;;  %vm1709_vm10 = vcmp.ne.s32.totalorder %v1659_v38, 7 }
 0x33c   : > { %1625 = vmatprep.mubr.bf16.mxu0 %v1456_v41  ;;  %vm4174_vm4 = vmpackc.low %vm1685_vm3, %vm1684_vm2  ;;  %v4753_v41 = vld [vmem:[#allocation10 + $0x144] ss:$8 sps:$4 sm:$0xff]   ;;  %vm2256_vm12 = vcmask 261120  }
 0x33d   : > { %1626 = vmatmul.mubr.bf16.gmra.mxu0 %v1455_v16  ;;  %v4751_v16 = vld [vmem:[#allocation10 + $0x140] ss:$8 sps:$4 sm:$0xff]   ;;  %vm4212_vm11 = vmpackc.low %vm1709_vm10, %vm1708_vm9  ;;  %vm3690_vm9 = vcmask 1043456   ;;  %vm3686_vm10 = vcmask 64512  }
 0x33e   : > { %1985 = vmatpush1.bf16.msra.mxu0 %v4700_v55  ;;  %2012 = vmatprep.mubr.bf16.mxu0 %v5348_v1  ;;  %v4756_v55 = vld [vmem:[#allocation10 + $0x134] ss:$8 sps:$4 sm:$0xff]  }
 0x33f   : > { %1986 = vmatprep.subr.bf16.mxu0 %v4708_v60  ;;  %1856 = vmatpush1.bf16.msra.mxu1 %v4727_v32  ;;  %v4754_v60 = vld [vmem:[#allocation10 + $0x130] ss:$8 sps:$4 sm:$0xff]  }
 0x340   : > { %1857 = vmatprep.subr.bf16.mxu1 %v4735_v25 }
 0x342   : > { %1987 = vmatpush1.bf16.msra.mxu0 %v4706_v51  ;;  %v4759_v51 = vld [vmem:[#allocation10 + $0x124] ss:$8 sps:$4 sm:$0xff]  }
 0x343   : > { %1988 = vmatprep.subr.bf16.mxu0 %v4714_v62  ;;  %1858 = vmatpush1.bf16.msra.mxu1 %v4733_v22  ;;  %v4757_v62 = vld [vmem:[#allocation10 + $0x120] ss:$8 sps:$4 sm:$0xff]  }
 0x344   : > { %1859 = vmatprep.subr.bf16.mxu1 %v4738_v40 }
 0x346   : > { %1989 = vmatpush1.bf16.msra.mxu0 %v4712_v4  ;;  %v4762_v4 = vld [vmem:[#allocation10 + $0x114] ss:$8 sps:$4 sm:$0xff]  }
 0x347   : > { %1990 = vmatprep.subr.bf16.mxu0 %v4720_v10  ;;  %1860 = vmatpush1.bf16.msra.mxu1 %v4736_v58  ;;  %v4760_v10 = vld [vmem:[#allocation10 + $0x110] ss:$8 sps:$4 sm:$0xff]  }
 0x348   : > { %1861 = vmatprep.subr.bf16.mxu1 %v4741_v19 }
 0x34a   : > { %1991 = vmatpush1.bf16.msra.mxu0 %v4718_v12  ;;  %v4765_v12 = vld [vmem:[#allocation10 + $0x104] ss:$8 sps:$4 sm:$0xff]  }
 0x34b   : > { %1992 = vmatprep.subr.bf16.mxu0 %v4726_v53  ;;  %1862 = vmatpush1.bf16.msra.mxu1 %v4739_v26 }
 0x34c   : > { %2132 = vmatprep.subr.bf16.mxu1 %v4744_v29 }
 0x34e   : > { %1993 = vmatpush1.bf16.msra.mxu0 %v4724_v15  ;;  %v4763_v15 = vld [vmem:[#allocation10 + $0x100] ss:$8 sps:$4 sm:$0xff]  }
 0x34f   : > { %1994 = vmatprep.subr.bf16.mxu0 %v4732_v18 }
 0x352   : > { %1995 = vmatpush1.bf16.msra.mxu0 %v4730_v20 }
 0x3f5   : > { %v4397_v28 = vpop.f32.mrf.mxu0 }
 0x3f7   : > { %v4398_v23 = vpop.f32.mrf.mxu0 }
 0x3f8   : > { %v5989_v48 = vadd.f32 %v4398_v23, %v4397_v28 }
 0x3f9   : > { %v4400_v33 = vpop.f32.mrf.mxu0 }
 0x3fa   : > { %v1686_v50 = vrot.slane %v5989_v48, 7  ;;  %v1710_v53 = vrot.slane %v5989_v48, 1 }
 0x3fb   : > { %v4401_v47 = vpop.f32.mrf.mxu0 }
 0x3fc   : > { %v5991_v35 = vadd.f32 %v4401_v47, %v4400_v33 }
 0x3fd   : > { %v4403_v31 = vpop.f32.mrf.mxu0 }
 0x3fe   : > { %v1730_v0 = vpack.c.bf16 %v5991_v35, %v5989_v48  ;;  %v1687_v8 = vrot.slane %v5991_v35, 7  ;;  %v1711_v13 = vrot.slane %v5991_v35, 1 }
 0x3ff   : > { %v4404_v34 = vpop.f32.mrf.mxu0 }
 0x400   : > { %2013 = vmatmul.mubr.bf16.vlgmr.msra.gmra.mxu0 %v1730_v0  ;;  %v5999_v43 = vadd.f32 %v4404_v34, %v4403_v31  ;;  %v1692_v37 = vsel %vm840_vm0, %v1686_v50, %v1687_v8  ;;  %v1716_v61 = vsel %vm889_vm6, %v1710_v53, %v1711_v13 }
 0x401   : > { %v4406_v45 = vpop.f32.mrf.mxu0  ;;  %2022 = vmatprep.mubr.bf16.mxu0 %v5348_v1 }
 0x402   : > { %v1688_v52 = vrot.slane %v5999_v43, 7  ;;  %v1712_v42 = vrot.slane %v5999_v43, 1 }
 0x403   : > { %v4407_v63 = vpop.f32.mrf.mxu0 }
 0x404   : > { %v6001_v30 = vadd.f32 %v4407_v63, %v4406_v45  ;;  %v1691_v54 = vsel %vm840_vm0, %v1687_v8, %v1688_v52  ;;  %v1715_v32 = vsel %vm889_vm6, %v1711_v13, %v1712_v42  ;;  %v2193_v63 = vld [vmem:[#allocation11] sm:$0x3] }
 0x405   : > { %v4210_v18 = vpack.c.bf16 %v1715_v32, %v1716_v61  ;;  %v2202_v36 = vrot.slane %v2193_v63, %v5869_v9 }
 0x406   : > { %v1689_v46 = vrot.slane %v6001_v30, 7  ;;  %v1731_v27 = vpack.c.bf16 %v6001_v30, %v5999_v43  ;;  %v1713_v20 = vrot.slane %v6001_v30, 1 }
 0x408   : > { %v1693_v59 = vsel %vm840_vm0, %v1689_v46, %v1686_v50  ;;  %2023 = vmatmul.mubr.bf16.gmra.mxu0 %v1731_v27  ;;  %v1690_v49 = vsel %vm840_vm0, %v1688_v52, %v1689_v46  ;;  %v1714_v22 = vsel %vm889_vm6, %v1712_v42, %v1713_v20  ;;  %v1717_v25 = vsel %vm889_vm6, %v1713_v20, %v1710_v53 }
 0x409   : > { %v4172_v14 = vpack.c.bf16 %v1692_v37, %v1693_v59  ;;  %2292 = vmatprep.mubr.bf16.mxu0 %v5348_v1  ;;  %v4175_v39 = vpack.c.bf16 %v1690_v49, %v1691_v54  ;;  %v4213_v40 = vpack.c.bf16 %v1717_v25, %v1714_v22  ;;  %v2198_v27 = vrot.slane %v2193_v63, %v5860_v57 }
 0x40b   : > { %4173 = vmatmul.mubr.msk.bf16.vlgmr.msra.gmra.mxu1 %vm4171_vm15, %v4172_v14 }
 0x40c   : > { %2133 = vmatpush1.bf16.msra.mxu1 %v4742_v17  ;;  %1889 = vmatprep.mubr.bf16.mxu1 %v5348_v1 }
 0x40d   : > { %2134 = vmatprep.subr.bf16.mxu1 %v4747_v21 }
 0x410   : > { %2135 = vmatpush1.bf16.msra.mxu1 %v4745_v6 }
 0x411   : > { %2136 = vmatprep.subr.bf16.mxu1 %v4750_v11 }
 0x413   : > { %4176 = vmatmul.mubr.msk.bf16.gmra.mxu1 %vm4174_vm4, %v4175_v39 }
 0x414   : > { %2137 = vmatpush1.bf16.msra.mxu1 %v4748_v5  ;;  %2164 = vmatprep.mubr.bf16.mxu1 %v5348_v1 }
 0x415   : > { %2138 = vmatprep.subr.bf16.mxu1 %v4753_v41 }
 0x418   : > { %2139 = vmatpush1.bf16.msra.mxu1 %v4751_v16 }
 0x419   : > { %2140 = vmatprep.subr.bf16.mxu1 %v4756_v55 }
 0x41c   : > { %2141 = vmatpush1.bf16.msra.mxu1 %v4754_v60 }
 0x41d   : > { %2142 = vmatprep.subr.bf16.mxu1 %v4759_v51 }
 0x420   : > { %2143 = vmatpush1.bf16.msra.mxu1 %v4757_v62 }
 0x421   : > { %2144 = vmatprep.subr.bf16.mxu1 %v4762_v4 }
 0x424   : > { %2145 = vmatpush1.bf16.msra.mxu1 %v4760_v10 }
 0x425   : > { %2146 = vmatprep.subr.bf16.mxu1 %v4765_v12 }
 0x428   : > { %2147 = vmatpush1.bf16.msra.mxu1 %v4763_v15 }
 0x42b   : > { %4211 = vmatmul.mubr.msk.bf16.vlgmr.msra.gmra.mxu1 %vm4209_vm8, %v4210_v18 }
 0x42c   : > { %2174 = vmatprep.mubr.bf16.mxu1 %v5348_v1 }
 0x433   : > { %4214 = vmatmul.mubr.msk.bf16.gmra.mxu1 %vm4212_vm11, %v4213_v40 }
 0x4c0   : > { %v2014_v28 = vpop.f32.mrf.mxu0 }
 0x4c2   : > { %v2016_v33 = vpop.f32.mrf.mxu0 }
 0x4c4   : > { %v2018_v48 = vpop.f32.mrf.mxu0 }
 0x4c6   : > { %v2020_v31 = vpop.f32.mrf.mxu0 }
 0x4c8   : > { %v2024_v34 = vpop.f32.mrf.mxu0 }
 0x4ca   : > { %v2026_v3 = vpop.f32.mrf.mxu0 }
 0x4cb   : > { %v1881_v58 = vpop.f32.mrf.mxu1 }
 0x4cc   : > { %v2015_v30 = vadd.f32 %v2014_v28, %v1881_v58  ;;  %v2028_v59 = vpop.f32.mrf.mxu0 }
 0x4cd   : > { %v1883_v19 = vpop.f32.mrf.mxu1 }
 0x4ce   : > { %v2017_v24 = vadd.f32 %v2016_v33, %v1883_v19  ;;  %v2030_v39 = vpop.f32.mrf.mxu0 }
 0x4cf   : > { %v1885_v26 = vpop.f32.mrf.mxu1 }
 0x4d0   : > { %v2019_v17 = vadd.f32 %v2018_v48, %v1885_v26 }
 0x4d1   : > { %v1887_v29 = vpop.f32.mrf.mxu1 }
 0x4d2   : > { %v2021_v43 = vadd.f32 %v2020_v31, %v1887_v29 }
 0x4d3   : > { %v1891_v23 = vpop.f32.mrf.mxu1 }
 0x4d4   : > { %v2025_v46 = vadd.f32 %v2024_v34, %v1891_v23 }
 0x4d5   : > { %v1893_v47 = vpop.f32.mrf.mxu1 }
 0x4d6   : > { %v2027_v52 = vadd.f32 %v2026_v3, %v1893_v47 }
 0x4d7   : > { %v1895_v35 = vpop.f32.mrf.mxu1 }
 0x4d8   : > { %v2029_v41 = vadd.f32 %v2028_v59, %v1895_v35 }
 0x4d9   : > { %v1897_v0 = vpop.f32.mrf.mxu1 }
 0x4da   : > { %v2031_v62 = vadd.f32 %v2030_v39, %v1897_v0  ;;  %v4774_v39 = vld [vmem:[#allocation13 + $0x20] sm:$0xff]  }
 0x4eb   : > { %v2166_v45 = vpop.f32.mrf.mxu1 }
 0x4ec   : > { %v2185_v14 = vadd.f32 %v2166_v45, %v2015_v30 }
 0x4ed   : > { %v2168_v56 = vpop.f32.mrf.mxu1 }
 0x4ee   : > { %v2186_v21 = vadd.f32 %v2168_v56, %v2017_v24  ;;  %v2205_v16 = vadd.f32 %v2198_v27, %v2185_v14 }
 0x4ef   : > { %v2170_v8 = vpop.f32.mrf.mxu1 }
 0x4f0   : > { %v2187_v11 = vadd.f32 %v2170_v8, %v2019_v17  ;;  %v2206_v55 = vadd.f32 %v2202_v36, %v2186_v21  ;;  %v2213_v32 = vmax.f32 %v2205_v16, 0.0  ;;  %v4776_v16 = vld [vmem:[#allocation13 + $0x18] sm:$0xff]  }
 0x4f1   : > { %v2172_v50 = vpop.f32.mrf.mxu1 }
 0x4f2   : > { %v2188_v37 = vadd.f32 %v2172_v50, %v2021_v43  ;;  %v2207_v10 = vadd.f32 %v2198_v27, %v2187_v11  ;;  %v2214_v61 = vmax.f32 %v2206_v55, 0.0  ;;  %v2221_v29 = vrot.slane %v2213_v32, 1  ;;  %v4770_v11 = vld [vmem:[#allocation13 + $0x30] sm:$0xff]  }
 0x4f3   : > { %v2176_v38 = vpop.f32.mrf.mxu1  ;;  %v4777_v55 = vld [vmem:[#allocation13 + $0x50] sm:$0xff]  }
 0x4f4   : > { %v2189_v6 = vadd.f32 %v2176_v38, %v2025_v46  ;;  %v2208_v49 = vadd.f32 %v2202_v36, %v2188_v37  ;;  %v2215_v40 = vmax.f32 %v2207_v10, 0.0  ;;  %v2222_v28 = vrot.slane %v2214_v61, 1  ;;  %v4767_v38 = vld [vmem:[#allocation13 + $0x78] sm:$0xff]   ;;  %v4781_v10 = vld [vmem:[#allocation13 + $0x40] sm:$0xff]  }
 0x4f5   : > { %v2178_v5 = vpop.f32.mrf.mxu1  ;;  %4409 = vmatprep.subr.bf16.mxu1 %v4767_v38  ;;  %v4815_v38 = vld [vmem:[#allocation14 + $0xa4] ss:$8 sps:$4 sm:$0xff]  }
 0x4f6   : > { %v2190_v54 = vadd.f32 %v2178_v5, %v2027_v52  ;;  %v2209_v60 = vadd.f32 %v2198_v27, %v2189_v6  ;;  %v2216_v12 = vmax.f32 %v2208_v49, 0.0  ;;  %v2223_v35 = vrot.slane %v2215_v40, 1  ;;  %v4768_v52 = vld [vmem:[#allocation13 + $0x38] sm:$0xff]   ;;  %v4769_v6 = vld [vmem:[#allocation13 + $0x70] sm:$0xff]   ;;  %v4771_v49 = vld [vmem:[#allocation13 + $0x68] sm:$0xff]  }
 0x4f7   : > { %v2180_v51 = vpop.f32.mrf.mxu1  ;;  %4410 = vmatpush3.bf16.msra.mxu1 %v4768_v52  ;;  %v4772_v5 = vld [vmem:[#allocation13 + $0x28] sm:$0xff]  }
 0x4f8   : > { %v2210_v4 = vadd.f32 %v2202_v36, %v2190_v54  ;;  %v2191_v42 = vadd.f32 %v2180_v51, %v2029_v41  ;;  %v2217_v18 = vmax.f32 %v2209_v60, 0.0  ;;  %v2224_v58 = vrot.slane %v2216_v12, 1  ;;  %4411 = vmatprep.subr.bf16.mxu1 %v4769_v6  ;;  %v4773_v54 = vld [vmem:[#allocation13 + $0x60] sm:$0xff]   ;;  %v4775_v41 = vld [vmem:[#allocation13 + $0x58] sm:$0xff]   ;;  %v4778_v60 = vld [vmem:[#allocation13 + $0x10] sm:$0xff]  }
 0x4f9   : > { %v2182_v13 = vpop.f32.mrf.mxu1  ;;  %v2233_v50 = vsel %vm889_vm6, %v2221_v29, %v2223_v35  ;;  %v4779_v51 = vld [vmem:[#allocation13 + $0x48] sm:$0xff]  }
 0x4fa   : > { %v2218_v15 = vmax.f32 %v2210_v4, 0.0  ;;  %v2192_v53 = vadd.f32 %v2182_v13, %v2031_v62  ;;  %v2211_v20 = vadd.f32 %v2198_v27, %v2191_v42  ;;  %v2225_v23 = vrot.slane %v2217_v18, 1  ;;  %v4780_v62 = vld [vmem:[#allocation13 + $0x8] sm:$0xff]  }
 0x4fb   : > { %v2234_v34 = vsel %vm889_vm6, %v2222_v28, %v2224_v58  ;;  %v2237_v14 = vmax.f32 %v2213_v32, %v2233_v50  ;;  %4412 = vmatpush3.bf16.msra.mxu1 %v4770_v11  ;;  %v4786_v32 = vld [vmem:[#allocation14 + $0x70] ss:$8 sps:$4 sm:$0xff]   ;;  %v4813_v52 = vld [vmem:[#allocation14 + $0xa0] ss:$8 sps:$4 sm:$0xff]   ;;  %v4818_v11 = vld [vmem:[#allocation14 + $0x24] ss:$8 sps:$4 sm:$0xff]  }
 0x4fc   : > { %v2226_v22 = vrot.slane %v2218_v15, 1  ;;  %v2212_v25 = vadd.f32 %v2202_v36, %v2192_v53  ;;  %v2219_v19 = vmax.f32 %v2211_v20, 0.0  ;;  %v2231_v8 = vsel %vm889_vm6, %v2223_v35, %v2225_v23  ;;  %v4766_v36 = vld [vmem:[%s6162_s7] sm:$0xff]   ;;  %4413 = vmatprep.subr.bf16.mxu1 %v4771_v49  ;;  %v4783_v50 = vld [vmem:[#allocation14 + $0xf0] ss:$8 sps:$4 sm:$0xff]  }
 0x4fd   : > { %v2238_v27 = vmax.f32 %v2214_v61, %v2234_v34  ;;  %v2239_v59 = vmax.f32 %v2215_v40, %v2231_v8  ;;  %v4788_v61 = vld [vmem:[#allocation14 + $0x74] ss:$8 sps:$4 sm:$0xff]   ;;  %v4798_v40 = vld [vmem:[#allocation14 + $0x50] ss:$8 sps:$4 sm:$0xff]   ;;  %v4816_v6 = vld [vmem:[#allocation14 + $0x20] ss:$8 sps:$4 sm:$0xff]  }
 0x4fe   : > { %v2220_v26 = vmax.f32 %v2212_v25, 0.0  ;;  %v2227_v33 = vrot.slane %v2219_v19, 1  ;;  %v2232_v48 = vsel %vm889_vm6, %v2224_v58, %v2226_v22  ;;  %v4794_v25 = vld [vmem:[#allocation14 + $0x64] ss:$8 sps:$4 sm:$0xff]   ;;  %v4800_v58 = vld [vmem:[#allocation14 + $0x54] ss:$8 sps:$4 sm:$0xff]  }
 0x4ff   : > { %v2240_v24 = vmax.f32 %v2216_v12, %v2232_v48  ;;  %v2245_v21 = vpack.c.bf16 %v2239_v59, %v2237_v14  ;;  %4414 = vmatpush3.bf16.msra.mxu1 %v4772_v5  ;;  %v4782_v12 = vld [vmem:[#allocation13] sm:$0xff]   ;;  %v4795_v59 = vld [vmem:[#allocation14 + $0xd0] ss:$8 sps:$4 sm:$0xff]   ;;  %v4821_v49 = vld [vmem:[#allocation14 + $0x94] ss:$8 sps:$4 sm:$0xff]  }
 0x500   : > { %v2228_v47 = vrot.slane %v2220_v26, 1  ;;  %v2229_v31 = vsel %vm889_vm6, %v2225_v23, %v2227_v33  ;;  %v2235_v0 = vsel %vm889_vm6, %v2227_v33, %v2221_v29  ;;  %4415 = vmatprep.subr.bf16.mxu1 %v4773_v54  ;;  %v4810_v29 = vld [vmem:[#allocation14 + $0x30] ss:$8 sps:$4 sm:$0xff]   ;;  %v4801_v14 = vld [vmem:[#allocation14 + $0xc0] ss:$8 sps:$4 sm:$0xff]  }
 0x501   : > { %v2241_v45 = vmax.f32 %v2217_v18, %v2229_v31  ;;  %v2243_v56 = vmax.f32 %v2219_v19, %v2235_v0  ;;  %v2246_v17 = vpack.c.bf16 %v2240_v24, %v2238_v27  ;;  %v4804_v19 = vld [vmem:[#allocation14 + $0x40] ss:$8 sps:$4 sm:$0xff]   ;;  %v4819_v5 = vld [vmem:[#allocation14 + $0x90] ss:$8 sps:$4 sm:$0xff]  }
 0x502   : > { %v2236_v3 = vsel %vm889_vm6, %v2228_v47, %v2222_v28  ;;  %v2230_v63 = vsel %vm889_vm6, %v2226_v22, %v2228_v47  ;;  %v4792_v22 = vld [vmem:[#allocation14 + $0x60] ss:$8 sps:$4 sm:$0xff]   ;;  %v4812_v28 = vld [vmem:[#allocation14 + $0x34] ss:$8 sps:$4 sm:$0xff]   ;;  %v4822_v54 = vld [vmem:[#allocation14 + $0x10] ss:$8 sps:$4 sm:$0xff]  }
 0x503   : > { %v2244_v43 = vmax.f32 %v2220_v26, %v2236_v3  ;;  %v2242_v30 = vmax.f32 %v2218_v15, %v2230_v63  ;;  %v2247_v37 = vpack.c.bf16 %v2243_v56, %v2241_v45  ;;  %4416 = vmatpush3.bf16.msra.mxu1 %v4774_v39  ;;  %v4785_v15 = vld [vmem:[#allocation14 + $0xf4] ss:$8 sps:$4 sm:$0xff]   ;;  %v4806_v26 = vld [vmem:[#allocation14 + $0x44] ss:$8 sps:$4 sm:$0xff]   ;;  %v4789_v27 = vld [vmem:[#allocation14 + $0xe0] ss:$8 sps:$4 sm:$0xff]  }
 0x504   : > { %4417 = vmatprep.subr.bf16.mxu1 %v4775_v41  ;;  %v4824_v39 = vld [vmem:[#allocation14 + $0x14] ss:$8 sps:$4 sm:$0xff]   ;;  %v4827_v41 = vld [vmem:[#allocation14 + $0x84] ss:$8 sps:$4 sm:$0xff]  }
 0x505   : > { %v2248_v46 = vpack.c.bf16 %v2244_v43, %v2242_v30 }
 0x507   : > { %2272 = vmatprep.subr.bf16.mxu0 %v2248_v46  ;;  %4418 = vmatpush3.bf16.msra.mxu1 %v4776_v16  ;;  %v4791_v46 = vld [vmem:[#allocation14 + $0xe4] ss:$8 sps:$4 sm:$0xff]   ;;  %v4825_v16 = vld [vmem:[#allocation14 + $0x80] ss:$8 sps:$4 sm:$0xff]  }
 0x508   : > { %2273 = vmatpush1.bf16.msra.mxu0 %v2247_v37  ;;  %4419 = vmatprep.subr.bf16.mxu1 %v4777_v55  ;;  %v4797_v37 = vld [vmem:[#allocation14 + $0xd4] ss:$8 sps:$4 sm:$0xff]   ;;  %v4830_v55 = vld [vmem:[#allocation14 + $0x4] ss:$8 sps:$4 sm:$0xff]  }
 0x509   : > { %2274 = vmatprep.subr.bf16.mxu0 %v2246_v17  ;;  %v4803_v17 = vld [vmem:[#allocation14 + $0xc4] ss:$8 sps:$4 sm:$0xff]  }
 0x50b   : > { %4420 = vmatpush3.bf16.msra.mxu1 %v4778_v60  ;;  %v4828_v60 = vld [vmem:[#allocation14] ss:$8 sps:$4 sm:$0xff]  }
 0x50c   : > { %2275 = vmatpush1.bf16.msra.mxu0 %v2245_v21  ;;  %4421 = vmatprep.subr.bf16.mxu1 %v4779_v51  ;;  %v4809_v21 = vld [vmem:[#allocation14 + $0xb4] ss:$8 sps:$4 sm:$0xff]  }
 0x50d   : > { %2654 = vmatprep.subr.bf16.mxu0 %v4788_v61  ;;  %v4833_v51 = vld [vmem:[#allocation14 + $0x174] ss:$8 sps:$4 sm:$0xff]  }
 0x50f   : > { %4216 = vmatmul.mubr.msk.bf16.vlgmr.msra.gmra.mxu0 %vm2256_vm12, %v4766_v36  ;;  %4422 = vmatpush3.bf16.msra.mxu1 %v4780_v62  ;;  %v4807_v36 = vld [vmem:[#allocation14 + $0xb0] ss:$8 sps:$4 sm:$0xff]  }
 0x510   : > { %2686 = vmatprep.mubr.bf16.mxu0 %v5348_v1  ;;  %4423 = vmatprep.subr.bf16.mxu1 %v4781_v10 }
 0x511   : > { %2655 = vmatpush1.bf16.msra.mxu0 %v4786_v32 }
 0x512   : > { %2656 = vmatprep.subr.bf16.mxu0 %v4794_v25  ;;  %v4831_v25 = vld [vmem:[#allocation14 + $0x170] ss:$8 sps:$4 sm:$0xff]  }
 0x513   : > { %4424 = vmatpush3.bf16.msra.mxu1 %v4782_v12  ;;  %v2495_v12 = vand.u32 3, %v5705_v2 }
 0x514   : > { %2777 = vmatprep.subr.bf16.mxu1 %v4785_v15 }
 0x515   : > { %2657 = vmatpush1.bf16.msra.mxu0 %v4792_v22  ;;  %vm2515_vm14 = vcmp.ne.s32.totalorder %v2495_v12, 0 }
 0x516   : > { %2658 = vmatprep.subr.bf16.mxu0 %v4800_v58  ;;  %v4836_v58 = vld [vmem:[#allocation14 + $0x164] ss:$8 sps:$4 sm:$0xff]  }
 0x519   : > { %2659 = vmatpush1.bf16.msra.mxu0 %v4798_v40 }
 0x51a   : > { %2660 = vmatprep.subr.bf16.mxu0 %v4806_v26  ;;  %v4837_v26 = vld [vmem:[#allocation14 + $0x150] ss:$8 sps:$4 sm:$0xff]  }
 0x51d   : > { %2661 = vmatpush1.bf16.msra.mxu0 %v4804_v19  ;;  %v4839_v19 = vld [vmem:[#allocation14 + $0x154] ss:$8 sps:$4 sm:$0xff]  }
 0x51e   : > { %2662 = vmatprep.subr.bf16.mxu0 %v4812_v28  ;;  %v4840_v28 = vld [vmem:[#allocation14 + $0x140] ss:$8 sps:$4 sm:$0xff]  }
 0x521   : > { %2663 = vmatpush1.bf16.msra.mxu0 %v4810_v29  ;;  %v4842_v29 = vld [vmem:[#allocation14 + $0x144] ss:$8 sps:$4 sm:$0xff]  }
 0x522   : > { %2664 = vmatprep.subr.bf16.mxu0 %v4818_v11 }
 0x525   : > { %2665 = vmatpush1.bf16.msra.mxu0 %v4816_v6 }
 0x526   : > { %2666 = vmatprep.subr.bf16.mxu0 %v4824_v39 }
 0x529   : > { %2667 = vmatpush1.bf16.msra.mxu0 %v4822_v54 }
 0x52a   : > { %2668 = vmatprep.subr.bf16.mxu0 %v4830_v55 }
 0x52d   : > { %2669 = vmatpush1.bf16.msra.mxu0 %v4828_v60 }
 0x52e   : > { %2918 = vmatprep.subr.bf16.mxu0 %v4833_v51 }
 0x5cf   : > { %v2294_v4 = vpop.f32.mrf.mxu0 }
 0x5d1   : > { %v2296_v42 = vpop.f32.mrf.mxu0 }
 0x5d3   : > { %v2298_v13 = vpop.f32.mrf.mxu0 }
 0x5d4   : > { %v4652_v53 = vpack.i.bf16 %v2298_v13, %v2294_v4 }
 0x5d5   : > { %v2300_v18 = vpop.f32.mrf.mxu0 }
 0x5d6   : > { %v4657_v20 = vpack.i.bf16 %v2300_v18, %v2296_v42  ;;  %4653 = vrot.lane.b32.xlu0 %v4652_v53, %s5350_s14 }
 0x5d8   : > { %4658 = vrot.lane.b32.xlu1 %v4657_v20, %s5350_s14  ;;  %s4377_s14 = sshll.u32 %s5464_s0, 6  ;;  %s5352_s0 = smov [#allocation20]  }
 0x648   : > { %v4654_v23 = vpop.permute.xlu0 %4653 }
 0x649   : > { %v4656_v47 = vunpack.i.h.bf16 %v4654_v23  ;;  %v4655_v48 = vunpack.i.l.bf16 %v4654_v23  ;;  %v4845_v23 = vld [vmem:[#allocation14 + $0x134] ss:$8 sps:$4 sm:$0xff]  }
 0x64a   : > { %v4659_v33 = vpop.permute.xlu1 %4658 }
 0x64b   : > { %v4661_v35 = vunpack.i.h.bf16 %v4659_v33  ;;  %v4660_v31 = vunpack.i.l.bf16 %v4659_v33  ;;  %v4843_v33 = vld [vmem:[#allocation14 + $0x130] ss:$8 sps:$4 sm:$0xff]  }
 0x64d   : > { %v2313_v0 = vsel %vm2311_vm13, %v4656_v47, %v4661_v35  ;;  %v2315_v34 = vsel %vm2311_vm13, %v4661_v35, %v4656_v47  ;;  %v2312_v45 = vsel %vm2311_vm13, %v4655_v48, %v4660_v31  ;;  %v2314_v56 = vsel %vm2311_vm13, %v4660_v31, %v4655_v48  ;;  %v4848_v47 = vld [vmem:[#allocation14 + $0x124] ss:$8 sps:$4 sm:$0xff]   ;;  %v4846_v48 = vld [vmem:[#allocation14 + $0x120] ss:$8 sps:$4 sm:$0xff]   ;;  %v4851_v35 = vld [vmem:[#allocation14 + $0x114] ss:$8 sps:$4 sm:$0xff]  }
 0x64e   : > { %v2318_v3 = vmax.f32 %v2298_v13, %v2313_v0  ;;  %v2316_v63 = vmax.f32 %v2294_v4, %v2312_v45  ;;  %v2317_v8 = vmax.f32 %v2296_v42, %v2314_v56  ;;  %v2319_v43 = vmax.f32 %v2300_v18, %v2315_v34  ;;  %v4849_v31 = vld [vmem:[#allocation14 + $0x110] ss:$8 sps:$4 sm:$0xff]   ;;  %v4854_v0 = vld [vmem:[#allocation14 + $0x104] ss:$8 sps:$4 sm:$0xff]   ;;  %v4852_v56 = vld [vmem:[#allocation14 + $0x100] ss:$8 sps:$4 sm:$0xff]  }
 0x64f   : > { %v2502_v42 = vand.u32 3, %v5714_v7  ;;  %v4834_v7 = vld [vmem:[#allocation14 + $0x160] ss:$8 sps:$4 sm:$0xff]  }
 0x650   : > { %v2320_v30 = vpack.c.bf16 %v2318_v3, %v2316_v63  ;;  %v2321_v24 = vpack.c.bf16 %v2319_v43, %v2317_v8 }
 0x651   : > { %vm2516_vm15 = vcmp.ne.s32.totalorder %v2502_v42, 0  ;;  %vm2528_vm3 = vcmp.ne.s32.totalorder %v2502_v42, 3 }
 0x652   : > { %2482 = vmatprep.mubr.bf16.mxu1 %v2321_v24  ;;  %vm4249_vm2 = vmpackc.low %vm2516_vm15, %vm2515_vm14 }
 0x653   : > { %2483 = vmatmul.mubr.bf16.vlgmr.msra.gmra.mxu1 %v2320_v30 }
 0x654   : > { %2778 = vmatpush1.bf16.msra.mxu1 %v4783_v50  ;;  %2809 = vmatprep.mubr.bf16.mxu1 %v5348_v1 }
 0x655   : > { %2779 = vmatprep.subr.bf16.mxu1 %v4791_v46 }
 0x658   : > { %2780 = vmatpush1.bf16.msra.mxu1 %v4789_v27  ;;  %v2965_v27 = vld [vmem:[%s6165_s10] sm:$0x3] }
 0x659   : > { %2781 = vmatprep.subr.bf16.mxu1 %v4797_v37 }
 0x65c   : > { %2782 = vmatpush1.bf16.msra.mxu1 %v4795_v59 }
 0x65d   : > { %2783 = vmatprep.subr.bf16.mxu1 %v4803_v17  ;;  %v2970_v17 = vrot.slane %v2965_v27, %v5860_v57 }
 0x660   : > { %2784 = vmatpush1.bf16.msra.mxu1 %v4801_v14 }
 0x661   : > { %2785 = vmatprep.subr.bf16.mxu1 %v4809_v21 }
 0x664   : > { %2786 = vmatpush1.bf16.msra.mxu1 %v4807_v36 }
 0x665   : > { %2787 = vmatprep.subr.bf16.mxu1 %v4815_v38 }
 0x668   : > { %2788 = vmatpush1.bf16.msra.mxu1 %v4813_v52  ;;  %v2974_v52 = vrot.slane %v2965_v27, %v5869_v9  ;;  %v4874_v27 = vld [vmem:[#allocation17 + $0x70] ss:$8 sps:$4 sm:$0xff]  }
 0x669   : > { %2789 = vmatprep.subr.bf16.mxu1 %v4821_v49 }
 0x66c   : > { %2790 = vmatpush1.bf16.msra.mxu1 %v4819_v5 }
 0x66d   : > { %2791 = vmatprep.subr.bf16.mxu1 %v4827_v41 }
 0x670   : > { %2792 = vmatpush1.bf16.msra.mxu1 %v4825_v16 }
 0x713   : > { %v4425_v62 = vpop.f32.mrf.mxu1 }
 0x715   : > { %v4426_v4 = vpop.f32.mrf.mxu1 }
 0x716   : > { %v4427_v13 = vadd.f32 %v4426_v4, %v4425_v62 }
 0x717   : > { %v4428_v10 = vpop.f32.mrf.mxu1 }
 0x718   : > { %v2517_v32 = vrot.slane %v4427_v13, 7  ;;  %v2529_v45 = vrot.slane %v4427_v13, 1 }
 0x719   : > { %v4429_v15 = vpop.f32.mrf.mxu1 }
 0x71a   : > { %v4430_v53 = vadd.f32 %v4429_v15, %v4428_v10 }
 0x71c   : > { %v2518_v61 = vrot.slane %v4430_v53, 7  ;;  %v2539_v18 = vpack.c.bf16 %v4430_v53, %v4427_v13  ;;  %v2530_v34 = vrot.slane %v4430_v53, 1 }
 0x71e   : > { %v2519_v20 = vsel %vm840_vm0, %v2517_v32, %v2518_v61  ;;  %v2520_v22 = vsel %vm840_vm0, %v2518_v61, %v2517_v32  ;;  %2810 = vmatmul.mubr.bf16.vlgmr.msra.gmra.mxu1 %v2539_v18  ;;  %vm2527_vm0 = vcmp.ne.s32.totalorder %v2495_v12, 3  ;;  %v2531_v3 = vsel %vm889_vm6, %v2529_v45, %v2530_v34 }
 0x71f   : > { %v4250_v40 = vpack.c.bf16 %v2519_v20, %v2520_v22  ;;  %3035 = vmatprep.mubr.bf16.mxu1 %v5348_v1  ;;  %v2532_v63 = vsel %vm889_vm6, %v2530_v34, %v2529_v45  ;;  %vm4284_vm4 = vmpackc.low %vm2528_vm3, %vm2527_vm0  ;;  %v4862_v34 = vld [vmem:[#allocation16 + $0x20] sm:$0xff]   ;;  %v4863_v45 = vld [vmem:[#allocation16 + $0x58] sm:$0xff]  }
 0x720   : > { %v4285_v8 = vpack.c.bf16 %v2532_v63, %v2531_v3  ;;  %v4865_v3 = vld [vmem:[#allocation16 + $0x50] sm:$0xff]  }
 0x721   : > { %4251 = vmatmul.mubr.msk.bf16.vlgmr.msra.gmra.mxu0 %vm4249_vm2, %v4250_v40  ;;  %v4866_v63 = vld [vmem:[#allocation16 + $0x10] sm:$0xff]  }
 0x722   : > { %2919 = vmatpush1.bf16.msra.mxu0 %v4831_v25  ;;  %2950 = vmatprep.mubr.bf16.mxu0 %v5348_v1 }
 0x723   : > { %2920 = vmatprep.subr.bf16.mxu0 %v4836_v58 }
 0x726   : > { %2921 = vmatpush1.bf16.msra.mxu0 %v4834_v7 }
 0x727   : > { %2922 = vmatprep.subr.bf16.mxu0 %v4839_v19 }
 0x72a   : > { %2923 = vmatpush1.bf16.msra.mxu0 %v4837_v26 }
 0x72b   : > { %2924 = vmatprep.subr.bf16.mxu0 %v4842_v29 }
 0x72e   : > { %2925 = vmatpush1.bf16.msra.mxu0 %v4840_v28  ;;  %v2999_v28 = vld [vmem:[%s6239_s3] sm:$0xf]  ;;  %s6242_s3 = sld [smem:[#allocation39_spill]] }
 0x72f   : > { %2926 = vmatprep.subr.bf16.mxu0 %v4845_v23  ;;  %v4855_v23 = vld [vmem:[#allocation16 + $0x78] sm:$0xff]  }
 0x732   : > { %2927 = vmatpush1.bf16.msra.mxu0 %v4843_v33  ;;  %v4856_v33 = vld [vmem:[#allocation16 + $0x38] sm:$0xff]  }
 0x733   : > { %2928 = vmatprep.subr.bf16.mxu0 %v4848_v47  ;;  %v4857_v47 = vld [vmem:[#allocation16 + $0x70] sm:$0xff]  }
 0x736   : > { %2929 = vmatpush1.bf16.msra.mxu0 %v4846_v48  ;;  %v4858_v48 = vld [vmem:[#allocation16 + $0x30] sm:$0xff]  }
 0x737   : > { %2930 = vmatprep.subr.bf16.mxu0 %v4851_v35  ;;  %v4859_v35 = vld [vmem:[#allocation16 + $0x68] sm:$0xff]  }
 0x73a   : > { %2931 = vmatpush1.bf16.msra.mxu0 %v4849_v31  ;;  %v4860_v31 = vld [vmem:[#allocation16 + $0x28] sm:$0xff]  }
 0x73b   : > { %2932 = vmatprep.subr.bf16.mxu0 %v4854_v0  ;;  %v4861_v0 = vld [vmem:[#allocation16 + $0x60] sm:$0xff]  }
 0x73e   : > { %2933 = vmatpush1.bf16.msra.mxu0 %v4852_v56  ;;  %v4864_v56 = vld [vmem:[#allocation16 + $0x18] sm:$0xff]  }
 0x741   : > { %4286 = vmatmul.mubr.msk.bf16.vlgmr.msra.gmra.mxu0 %vm4284_vm4, %v4285_v8  ;;  %v4867_v8 = vld [vmem:[#allocation16 + $0x48] sm:$0xff]  }
 0x742   : > { %3392 = vmatprep.mubr.bf16.mxu0 %v5348_v1 }
 0x7de   : > { %v2811_v24 = vpop.f32.mrf.mxu1 }
 0x7e0   : > { %v2813_v46 = vpop.f32.mrf.mxu1 }
 0x7e1   : > { %v2688_v43 = vpop.f32.mrf.mxu0 }
 0x7e2   : > { %v2812_v59 = vadd.f32 %v2811_v24, %v2688_v43  ;;  %v2815_v14 = vpop.f32.mrf.mxu1  ;;  %v4868_v43 = vld [vmem:[#allocation16 + $0x8] sm:$0xff]   ;;  %v4870_v24 = vld [vmem:[#allocation16] sm:$0xff]  }
 0x7e3   : > { %v2690_v30 = vpop.f32.mrf.mxu0 }
 0x7e4   : > { %v2814_v36 = vadd.f32 %v2813_v46, %v2690_v30  ;;  %v2817_v54 = vpop.f32.mrf.mxu1  ;;  %v4869_v30 = vld [vmem:[#allocation16 + $0x40] sm:$0xff]   ;;  %v4873_v46 = vld [vmem:[#allocation17 + $0xf4] ss:$8 sps:$4 sm:$0xff]  }
 0x7e5   : > { %v2692_v50 = vpop.f32.mrf.mxu0 }
 0x7e6   : > { %v2816_v11 = vadd.f32 %v2815_v14, %v2692_v50 }
 0x7e7   : > { %v2694_v37 = vpop.f32.mrf.mxu0 }
 0x7e8   : > { %v2818_v41 = vadd.f32 %v2817_v54, %v2694_v37  ;;  %v4876_v37 = vld [vmem:[#allocation17 + $0x74] ss:$8 sps:$4 sm:$0xff]   ;;  %v4898_v54 = vld [vmem:[#allocation17 + $0x30] ss:$8 sps:$4 sm:$0xff]  }
 0x7e9   : > { %3360 = vmatprep.subr.bf16.mxu0 %v4876_v37  ;;  %v4931_v37 = vld [vmem:[#allocation17 + $0x130] ss:$8 sps:$4 sm:$0xff]  }
 0x7ea   : > { %3361 = vmatpush1.bf16.msra.mxu0 %v4874_v27  ;;  %v4933_v27 = vld [vmem:[#allocation17 + $0x134] ss:$8 sps:$4 sm:$0xff]  }
 0x801   : > { %v2952_v21 = vpop.f32.mrf.mxu0 }
 0x802   : > { %v2961_v38 = vadd.f32 %v2952_v21, %v2812_v59 }
 0x803   : > { %v2954_v6 = vpop.f32.mrf.mxu0 }
 0x804   : > { %v2977_v49 = vadd.f32 %v2970_v17, %v2961_v38  ;;  %v2962_v5 = vadd.f32 %v2954_v6, %v2814_v36  ;;  %v4880_v36 = vld [vmem:[#allocation17 + $0x60] ss:$8 sps:$4 sm:$0xff]   ;;  %v4886_v6 = vld [vmem:[#allocation17 + $0x50] ss:$8 sps:$4 sm:$0xff]  }
 0x805   : > { %v2956_v39 = vpop.f32.mrf.mxu0 }
 0x806   : > { %v2978_v16 = vadd.f32 %v2974_v52, %v2962_v5  ;;  %v2963_v55 = vadd.f32 %v2956_v39, %v2816_v11  ;;  %v2981_v51 = vmax.f32 %v2977_v49, 0.0  ;;  %v4894_v11 = vld [vmem:[#allocation17 + $0x44] ss:$8 sps:$4 sm:$0xff]   ;;  %v4892_v49 = vld [vmem:[#allocation17 + $0x40] ss:$8 sps:$4 sm:$0xff]  }
 0x807   : > { %v2958_v60 = vpop.f32.mrf.mxu0  ;;  %v4900_v5 = vld [vmem:[#allocation17 + $0x34] ss:$8 sps:$4 sm:$0xff]   ;;  %v4906_v39 = vld [vmem:[#allocation17 + $0x24] ss:$8 sps:$4 sm:$0xff]  }
 0x808   : > { %v2979_v62 = vadd.f32 %v2970_v17, %v2963_v55  ;;  %v2964_v4 = vadd.f32 %v2958_v60, %v2818_v41  ;;  %v2982_v10 = vmax.f32 %v2978_v16, 0.0  ;;  %v2985_v13 = vrot.slane %v2981_v51, 1  ;;  %v4882_v17 = vld [vmem:[#allocation17 + $0x64] ss:$8 sps:$4 sm:$0xff]   ;;  %v4904_v41 = vld [vmem:[#allocation17 + $0x20] ss:$8 sps:$4 sm:$0xff]  }
 0x809   : > { %3362 = vmatprep.subr.bf16.mxu0 %v4882_v17  ;;  %v4934_v17 = vld [vmem:[#allocation17 + $0x120] ss:$8 sps:$4 sm:$0xff]  }
 0x80a   : > { %v2983_v12 = vmax.f32 %v2979_v62, 0.0  ;;  %v2980_v42 = vadd.f32 %v2974_v52, %v2964_v4  ;;  %v2986_v32 = vrot.slane %v2982_v10, 1  ;;  %v4888_v52 = vld [vmem:[#allocation17 + $0x54] ss:$8 sps:$4 sm:$0xff]   ;;  %3363 = vmatpush1.bf16.msra.mxu0 %v4880_v36  ;;  %v4940_v36 = vld [vmem:[#allocation17 + $0x100] ss:$8 sps:$4 sm:$0xff]  }
 0x80b   : > { %3364 = vmatprep.subr.bf16.mxu0 %v4888_v52 }
 0x80c   : > { %v2987_v15 = vrot.slane %v2983_v12, 1  ;;  %v2984_v53 = vmax.f32 %v2980_v42, 0.0 }
 0x80e   : > { %v2989_v61 = vsel %vm889_vm6, %v2985_v13, %v2987_v15  ;;  %v2991_v18 = vsel %vm889_vm6, %v2987_v15, %v2985_v13  ;;  %v2988_v20 = vrot.slane %v2984_v53, 1  ;;  %3365 = vmatpush1.bf16.msra.mxu0 %v4886_v6  ;;  %v4871_v13 = vld [vmem:[#allocation17 + $0xf0] ss:$8 sps:$4 sm:$0xff]   ;;  %v4879_v15 = vld [vmem:[#allocation17 + $0xe4] ss:$8 sps:$4 sm:$0xff]  }
 0x80f   : > { %v2993_v22 = vmax.f32 %v2981_v51, %v2989_v61  ;;  %v2995_v25 = vmax.f32 %v2983_v12, %v2991_v18  ;;  %3366 = vmatprep.subr.bf16.mxu0 %v4894_v11  ;;  %v4891_v61 = vld [vmem:[#allocation17 + $0xc4] ss:$8 sps:$4 sm:$0xff]   ;;  %v4889_v18 = vld [vmem:[#allocation17 + $0xc0] ss:$8 sps:$4 sm:$0xff]   ;;  %v4943_v6 = vld [vmem:[#allocation19 + $0x78] sm:$0xff]  }
 0x810   : > { %v2992_v40 = vsel %vm889_vm6, %v2988_v20, %v2986_v32  ;;  %v2990_v58 = vsel %vm889_vm6, %v2986_v32, %v2988_v20  ;;  %v4885_v32 = vld [vmem:[#allocation17 + $0xd4] ss:$8 sps:$4 sm:$0xff]  }
 0x811   : > { %v2996_v7 = vmax.f32 %v2984_v53, %v2992_v40  ;;  %v2994_v19 = vmax.f32 %v2982_v10, %v2990_v58  ;;  %v2997_v29 = vpack.c.bf16 %v2995_v25, %v2993_v22  ;;  %v4877_v53 = vld [vmem:[#allocation17 + $0xe0] ss:$8 sps:$4 sm:$0xff]   ;;  %v4897_v20 = vld [vmem:[#allocation17 + $0xb4] ss:$8 sps:$4 sm:$0xff]   ;;  %v4895_v22 = vld [vmem:[#allocation17 + $0xb0] ss:$8 sps:$4 sm:$0xff]  }
 0x812   : > { %3367 = vmatpush1.bf16.msra.mxu0 %v4892_v49  ;;  %v4903_v25 = vld [vmem:[#allocation17 + $0xa4] ss:$8 sps:$4 sm:$0xff]   ;;  %v4901_v40 = vld [vmem:[#allocation17 + $0xa0] ss:$8 sps:$4 sm:$0xff]   ;;  %v4909_v58 = vld [vmem:[#allocation17 + $0x94] ss:$8 sps:$4 sm:$0xff]  }
 0x813   : > { %v2998_v26 = vpack.c.bf16 %v2996_v7, %v2994_v19  ;;  %3368 = vmatprep.subr.bf16.mxu0 %v4900_v5  ;;  %v4907_v7 = vld [vmem:[#allocation17 + $0x90] ss:$8 sps:$4 sm:$0xff]  }
 0x814   : > { %v4910_v19 = vld [vmem:[#allocation17 + $0x10] ss:$8 sps:$4 sm:$0xff]  }
 0x815   : > { %3017 = vmatprep.subr.bf16.mxu1 %v2998_v26  ;;  %v4912_v26 = vld [vmem:[#allocation17 + $0x14] ss:$8 sps:$4 sm:$0xff]  }
 0x816   : > { %3018 = vmatpush1.bf16.msra.mxu1 %v2997_v29  ;;  %3369 = vmatpush1.bf16.msra.mxu0 %v4898_v54  ;;  %v4915_v29 = vld [vmem:[#allocation17 + $0x84] ss:$8 sps:$4 sm:$0xff]   ;;  %v4944_v11 = vld [vmem:[#allocation19 + $0x38] sm:$0xff]   ;;  %v4945_v49 = vld [vmem:[#allocation19 + $0x70] sm:$0xff]  }
 0x817   : > { %4431 = vmatprep.subr.bf16.mxu1 %v4855_v23  ;;  %3370 = vmatprep.subr.bf16.mxu0 %v4906_v39  ;;  %v4918_v23 = vld [vmem:[#allocation17 + $0x4] ss:$8 sps:$4 sm:$0xff]   ;;  %v4946_v5 = vld [vmem:[#allocation19 + $0x30] sm:$0xff]  }
 0x818   : > { %v4947_v54 = vld [vmem:[#allocation19 + $0x68] sm:$0xff]  }
 0x819   : > { %4287 = vmatmul.mubr.msk.bf16.vlgmr.msra.gmra.mxu1 %vm945_vm1, %v2999_v28  ;;  %vm3048_vm1 = vcmp.lt.s32.totalorder %v5967_v44, 64  ;;  %v4883_v44 = vld [vmem:[#allocation17 + $0xd0] ss:$8 sps:$4 sm:$0xff]   ;;  %v4913_v28 = vld [vmem:[#allocation17 + $0x80] ss:$8 sps:$4 sm:$0xff]  }
 0x81a   : > { %4432 = vmatpush3.bf16.msra.mxu1 %v4856_v33  ;;  %3371 = vmatpush1.bf16.msra.mxu0 %v4904_v41  ;;  %v4916_v33 = vld [vmem:[#allocation17] ss:$8 sps:$4 sm:$0xff]  }
 0x81b   : > { %4433 = vmatprep.subr.bf16.mxu1 %v4857_v47  ;;  %3372 = vmatprep.subr.bf16.mxu0 %v4912_v26  ;;  %v4921_v47 = vld [vmem:[#allocation17 + $0x174] ss:$8 sps:$4 sm:$0xff]   ;;  %v4948_v39 = vld [vmem:[#allocation19 + $0x28] sm:$0xff]   ;;  %v4949_v41 = vld [vmem:[#allocation19 + $0x60] sm:$0xff]  }
 0x81e   : > { %4434 = vmatpush3.bf16.msra.mxu1 %v4858_v48  ;;  %3373 = vmatpush1.bf16.msra.mxu0 %v4910_v19  ;;  %v3227_v48 = vand.u32 1, %v5705_v2  ;;  %v4927_v2 = vld [vmem:[#allocation17 + $0x154] ss:$8 sps:$4 sm:$0xff]  }
 0x81f   : > { %4435 = vmatprep.subr.bf16.mxu1 %v4859_v35  ;;  %3374 = vmatprep.subr.bf16.mxu0 %v4918_v23 }
 0x820   : > { %vm3235_vm6 = vcmp.ne.s32.totalorder %v3227_v48, 0  ;;  %vm3240_vm7 = vcmp.ne.s32.totalorder %v3227_v48, 1 }
 0x821   : > { %vm4320_vm5 = vmpackc.low %vm3235_vm6, %vm3235_vm6 }
 0x822   : > { %4436 = vmatpush3.bf16.msra.mxu1 %v4860_v31  ;;  %3375 = vmatpush1.bf16.msra.mxu0 %v4916_v33  ;;  %vm4355_vm8 = vmpackc.low %vm3240_vm7, %vm3240_vm7 }
 0x823   : > { %4437 = vmatprep.subr.bf16.mxu1 %v4861_v0  ;;  %3620 = vmatprep.subr.bf16.mxu0 %v4921_v47 }
 0x826   : > { %4438 = vmatpush3.bf16.msra.mxu1 %v4862_v34 }
 0x827   : > { %4439 = vmatprep.subr.bf16.mxu1 %v4863_v45 }
 0x82a   : > { %4440 = vmatpush3.bf16.msra.mxu1 %v4864_v56 }
 0x82b   : > { %4441 = vmatprep.subr.bf16.mxu1 %v4865_v3 }
 0x82e   : > { %4442 = vmatpush3.bf16.msra.mxu1 %v4866_v63  ;;  %v4919_v63 = vld [vmem:[#allocation17 + $0x170] ss:$8 sps:$4 sm:$0xff]  }
 0x82f   : > { %4443 = vmatprep.subr.bf16.mxu1 %v4867_v8 }
 0x832   : > { %4444 = vmatpush3.bf16.msra.mxu1 %v4868_v43  ;;  %v4924_v43 = vld [vmem:[#allocation17 + $0x164] ss:$8 sps:$4 sm:$0xff]  }
 0x833   : > { %4445 = vmatprep.subr.bf16.mxu1 %v4869_v30  ;;  %v4922_v30 = vld [vmem:[#allocation17 + $0x160] ss:$8 sps:$4 sm:$0xff]  }
 0x836   : > { %4446 = vmatpush3.bf16.msra.mxu1 %v4870_v24  ;;  %v4925_v24 = vld [vmem:[#allocation17 + $0x150] ss:$8 sps:$4 sm:$0xff]  }
 0x837   : > { %3481 = vmatprep.subr.bf16.mxu1 %v4873_v46  ;;  %v4928_v46 = vld [vmem:[#allocation17 + $0x140] ss:$8 sps:$4 sm:$0xff]  }
 0x8d9   : > { %v3037_v50 = vpop.f32.mrf.mxu1 }
 0x8db   : > { %v3039_v59 = vpop.f32.mrf.mxu1 }
 0x8dc   : > { %v4662_v14 = vpack.i.bf16 %v3039_v59, %v3037_v50 }
 0x8dd   : > { %v3041_v21 = vpop.f32.mrf.mxu1 }
 0x8de   : > { %4663 = vrot.lane.b32.xlu0 %v4662_v14, %s5351_s9  ;;  %v4939_v14 = vld [vmem:[#allocation17 + $0x114] ss:$8 sps:$4 sm:$0xff]   ;;  %v4942_v21 = vld [vmem:[#allocation17 + $0x104] ss:$8 sps:$4 sm:$0xff]   ;;  %s6112_s9 = scalar_lea.hbm %s6242_s3, %s4377_s14 }
 0x8df   : > { %v3042_v38 = vpop.f32.mrf.mxu1 }
 0x950   : > { %v4664_v16 = vpop.permute.xlu0 %4663 }
 0x951   : > { %v4666_v55 = vunpack.i.h.bf16 %v4664_v16  ;;  %v4665_v60 = vunpack.i.l.bf16 %v4664_v16  ;;  %v4950_v16 = vld [vmem:[#allocation19 + $0x20] sm:$0xff]  }
 0x953   : > { %v3049_v51 = vsel %vm3048_vm1, %v4665_v60, %v4666_v55  ;;  %v3050_v62 = vsel %vm3048_vm1, %v4666_v55, %v4665_v60  ;;  %v4951_v55 = vld [vmem:[#allocation19 + $0x58] sm:$0xff]  }
 0x954   : > { %v3051_v4 = vmax.f32 %v3037_v50, %v3049_v51  ;;  %v3052_v10 = vmax.f32 %v3039_v59, %v3050_v62  ;;  %v4930_v50 = vld [vmem:[#allocation17 + $0x144] ss:$8 sps:$4 sm:$0xff]   ;;  %v4952_v60 = vld [vmem:[#allocation19 + $0x18] sm:$0xff]   ;;  %v4953_v51 = vld [vmem:[#allocation19 + $0x50] sm:$0xff]  }
 0x955   : > { %v4936_v59 = vld [vmem:[#allocation17 + $0x124] ss:$8 sps:$4 sm:$0xff]   ;;  %v4954_v62 = vld [vmem:[#allocation19 + $0x10] sm:$0xff]  }
 0x956   : > { %v3053_v12 = vpack.c.bf16 %v3051_v4, %v3051_v4  ;;  %v3054_v42 = vpack.c.bf16 %v3052_v10, %v3052_v10 }
 0x958   : > { %3215 = vmatprep.mubr.bf16.mxu1 %v3054_v42 }
 0x959   : > { %3216 = vmatmul.mubr.bf16.vlgmr.msra.gmra.mxu1 %v3053_v12 }
 0x95a   : > { %3482 = vmatpush1.bf16.msra.mxu1 %v4871_v13  ;;  %3513 = vmatprep.mubr.bf16.mxu1 %v5348_v1 }
 0x95b   : > { %3483 = vmatprep.subr.bf16.mxu1 %v4879_v15 }
 0x95e   : > { %3484 = vmatpush1.bf16.msra.mxu1 %v4877_v53 }
 0x95f   : > { %3485 = vmatprep.subr.bf16.mxu1 %v4885_v32 }
 0x962   : > { %3486 = vmatpush1.bf16.msra.mxu1 %v4883_v44  ;;  %v3663_v44 = vld [vmem:[%s6240_s5] sm:$0x3]  ;;  %s5251_s5 = sshll.u32 %s5352_s0, 4  ;;  %s5252_s5 = int_to_ptr.vmem [resolvable:$false] %s5251_s5 }
 0x963   : > { %3487 = vmatprep.subr.bf16.mxu1 %v4891_v61  ;;  %s5253_s6 = scalar_lea.vmem %s5252_s5, 128  ;;  %p5254_p4 = scmp.lt.s32.totalorder %s6114_s11, %s5252_s5 }
 0x964   : > { %p5255_p6 = scmp.lt.s32.totalorder %s5253_s6, %s5247_s18 }
 0x966   : > { %3488 = vmatpush1.bf16.msra.mxu1 %v4889_v18  ;;  %v3668_v18 = vrot.slane %v3663_v44, %v5860_v57  ;;  %p5256_p0 = por %p5255_p6, %p5254_p4 }
 0x967   : > { %3489 = vmatprep.subr.bf16.mxu1 %v4897_v20 }
 0x968   : > { %p5257_p2 = pnand %p5256_p0, %p5250_p3 }
 0x96a   : > { %3490 = vmatpush1.bf16.msra.mxu1 %v4895_v22 }
 0x96b   : > { %3491 = vmatprep.subr.bf16.mxu1 %v4903_v25 }
 0x96e   : > { %3492 = vmatpush1.bf16.msra.mxu1 %v4901_v40  ;;  %v3672_v40 = vrot.slane %v3663_v44, %v5869_v9  ;;  %v3685_v9 = vld [vmem:[%s6241_s28] sm:$0x3] }
 0x96f   : > { %3493 = vmatprep.subr.bf16.mxu1 %v4909_v58 }
 0x972   : > { %3494 = vmatpush1.bf16.msra.mxu1 %v4907_v7 }
 0x973   : > { %3495 = vmatprep.subr.bf16.mxu1 %v4915_v29 }
 0x976   : > { %3496 = vmatpush1.bf16.msra.mxu1 %v4913_v28 }
 0xa19   : > { %v4447_v35 = vpop.f32.mrf.mxu1 }
 0xa1b   : > { %v4448_v31 = vpop.f32.mrf.mxu1 }
 0xa1c   : > { %v4449_v0 = vadd.f32 %v4448_v31, %v4447_v35 }
 0xa1d   : > { %v4450_v34 = vpop.f32.mrf.mxu1 }
 0xa1e   : > { %v3236_v45 = vrot.slane %v4449_v0, 7  ;;  %v3245_v56 = vpack.c.bf16 %v4449_v0, %v4449_v0  ;;  %v3241_v38 = vrot.slane %v4449_v0, 1 }
 0xa1f   : > { %v4451_v3 = vpop.f32.mrf.mxu1 }
 0xa20   : > { %v4321_v8 = vpack.c.bf16 %v3236_v45, %v3236_v45  ;;  %3514 = vmatmul.mubr.bf16.vlgmr.msra.gmra.mxu1 %v3245_v56  ;;  %v4356_v52 = vpack.c.bf16 %v3241_v38, %v3241_v38  ;;  %v4955_v45 = vld [vmem:[#allocation19 + $0x48] sm:$0xff]   ;;  %v4957_v3 = vld [vmem:[#allocation19 + $0x40] sm:$0xff]  }
 0xa21   : > { %3729 = vmatprep.mubr.bf16.mxu1 %v5348_v1  ;;  %v4956_v56 = vld [vmem:[#allocation19 + $0x8] sm:$0xff]  }
 0xa22   : > { %4322 = vmatmul.mubr.msk.bf16.vlgmr.msra.gmra.mxu0 %vm4320_vm5, %v4321_v8 }
 0xa23   : > { %3621 = vmatpush1.bf16.msra.mxu0 %v4919_v63  ;;  %3652 = vmatprep.mubr.bf16.mxu0 %v5348_v1  ;;  %v4937_v1 = vld [vmem:[#allocation17 + $0x110] ss:$8 sps:$4 sm:$0xff]   ;;  %v4958_v63 = vld [vmem:[#allocation19] sm:$0xff]  }
 0xa24   : > { %3622 = vmatprep.subr.bf16.mxu0 %v4924_v43 }
 0xa27   : > { %3623 = vmatpush1.bf16.msra.mxu0 %v4922_v30 }
 0xa28   : > { %3624 = vmatprep.subr.bf16.mxu0 %v4927_v2 }
 0xa2b   : > { %3625 = vmatpush1.bf16.msra.mxu0 %v4925_v24 }
 0xa2c   : > { %3626 = vmatprep.subr.bf16.mxu0 %v4930_v50 }
 0xa2f   : > { %3627 = vmatpush1.bf16.msra.mxu0 %v4928_v46 }
 0xa30   : > { %3628 = vmatprep.subr.bf16.mxu0 %v4933_v27 }
 0xa33   : > { %3629 = vmatpush1.bf16.msra.mxu0 %v4931_v37 }
 0xa34   : > { %3630 = vmatprep.subr.bf16.mxu0 %v4936_v59 }
 0xa37   : > { %3631 = vmatpush1.bf16.msra.mxu0 %v4934_v17 }
 0xa38   : > { %3632 = vmatprep.subr.bf16.mxu0 %v4939_v14 }
 0xa3b   : > { %3633 = vmatpush1.bf16.msra.mxu0 %v4937_v1 }
 0xa3c   : > { %3634 = vmatprep.subr.bf16.mxu0 %v4942_v21 }
 0xa3f   : > { %3635 = vmatpush1.bf16.msra.mxu0 %v4940_v36 }
 0xa40   : > { %4453 = vmatprep.subr.bf16.mxu0 %v4943_v6 }
 0xa42   : > { %4357 = vmatmul.mubr.msk.bf16.vlgmr.msra.gmra.mxu0 %vm4355_vm8, %v4356_v52 }
 0xa43   : > { %4454 = vmatpush3.bf16.msra.mxu0 %v4944_v11 }
 0xa44   : > { %4455 = vmatprep.subr.bf16.mxu0 %v4945_v49 }
 0xa47   : > { %4456 = vmatpush3.bf16.msra.mxu0 %v4946_v5 }
 0xa48   : > { %4457 = vmatprep.subr.bf16.mxu0 %v4947_v54 }
 0xa4b   : > { %4458 = vmatpush3.bf16.msra.mxu0 %v4948_v39 }
 0xa4c   : > { %4459 = vmatprep.subr.bf16.mxu0 %v4949_v41 }
 0xa4f   : > { %4460 = vmatpush3.bf16.msra.mxu0 %v4950_v16 }
 0xa50   : > { %4461 = vmatprep.subr.bf16.mxu0 %v4951_v55 }
 0xa53   : > { %4462 = vmatpush3.bf16.msra.mxu0 %v4952_v60 }
 0xa54   : > { %4463 = vmatprep.subr.bf16.mxu0 %v4953_v51 }
 0xa57   : > { %4464 = vmatpush3.bf16.msra.mxu0 %v4954_v62 }
 0xa58   : > { %4465 = vmatprep.subr.bf16.mxu0 %v4955_v45 }
 0xa5b   : > { %4466 = vmatpush3.bf16.msra.mxu0 %v4956_v56 }
 0xa5c   : > { %4467 = vmatprep.subr.bf16.mxu0 %v4957_v3 }
 0xa5f   : > { %4468 = vmatpush3.bf16.msra.mxu0 %v4958_v63 }
 0xae0   : > { %v3515_v4 = vpop.f32.mrf.mxu1 }
 0xae2   : > { %v3394_v10 = vpop.f32.mrf.mxu0  ;;  %v3517_v12 = vpop.f32.mrf.mxu1 }
 0xae3   : > { %v3516_v61 = vadd.f32 %v3515_v4, %v3394_v10 }
 0xae4   : > { %v3396_v42 = vpop.f32.mrf.mxu0  ;;  %v3519_v13 = vpop.f32.mrf.mxu1 }
 0xae5   : > { %v3518_v22 = vadd.f32 %v3517_v12, %v3396_v42 }
 0xae6   : > { %v3398_v15 = vpop.f32.mrf.mxu0  ;;  %v3520_v53 = vpop.f32.mrf.mxu1 }
 0xae8   : > { %v3399_v32 = vpop.f32.mrf.mxu0 }
 0xb02   : > { %v3654_v20 = vpop.f32.mrf.mxu0 }
 0xb03   : > { %v3661_v25 = vadd.f32 %v3654_v20, %v3516_v61 }
 0xb04   : > { %v3656_v58 = vpop.f32.mrf.mxu0 }
 0xb05   : > { %v3675_v7 = vadd.f32 %v3668_v18, %v3661_v25  ;;  %v3662_v19 = vadd.f32 %v3656_v58, %v3518_v22 }
 0xb06   : > { %v3658_v26 = vpop.f32.mrf.mxu0 }
 0xb07   : > { %v3677_v29 = vmax.f32 %v3675_v7, 0.0  ;;  %v3676_v28 = vadd.f32 %v3672_v40, %v3662_v19 }
 0xb08   : > { %v3659_v23 = vpop.f32.mrf.mxu0 }
 0xb09   : > { %v3679_v33 = vrot.slane %v3677_v29, 1  ;;  %v3678_v47 = vmax.f32 %v3676_v28, 0.0 }
 0xb0b   : > { %v3681_v48 = vmax.f32 %v3677_v29, %v3679_v33  ;;  %v3680_v35 = vrot.slane %v3678_v47, 1 }
 0xb0d   : > { %v3682_v31 = vmax.f32 %v3678_v47, %v3680_v35  ;;  %v3683_v0 = vpack.c.bf16 %v3681_v48, %v3681_v48 }
 0xb0f   : > { %v3684_v57 = vpack.c.bf16 %v3682_v31, %v3682_v31  ;;  %v3692_v34 = vsel %vm3690_vm9, %v3683_v0, 0 }
 0xb11   : > { %4358 = vmatprep.subr.msk.bf16.mxu1 %vm3690_vm9, %v3684_v57 }
 0xb12   : > { %3712 = vmatpush1.bf16.msra.mxu1 %v3692_v34 }
 0xb15   : > { %4359 = vmatmul.mubr.msk.bf16.vlgmr.msra.gmra.mxu1 %vm3686_vm10, %v3685_v9 }
 0xbd5   : > { %v3731_v8 = vpop.f32.mrf.mxu1 }
 0xbd7   : > { %v3733_v43 = vpop.f32.mrf.mxu1 }
 0xbd8   : > { %v3738_v30 = vmax.f32 %v3731_v8, %v3733_v43 }
 0xbd9   : > { %v3735_v2 = vpop.f32.mrf.mxu1 }
 0xbda   : > { %v3739_v24 = vpack.c.bf16 %v3738_v30, %v3738_v30 }
 0xbdb   : > { %v3736_v50 = vpop.f32.mrf.mxu1 }
 0xbdc   : > { %3900 = vmatprep.mubr.bf16.mxu0 %v3739_v24 }
 0xbdd   : > { %3901 = vmatmul.mubr.bf16.vlgmr.msra.gmra.mxu0 %v3739_v24 }
 0xc9d   : > { %v4469_v46 = vpop.f32.mrf.mxu0 }
 0xc9f   : > { %v4470_v27 = vpop.f32.mrf.mxu0 }
 0xca0   : > { %v4471_v37 = vadd.f32 %v4470_v27, %v4469_v46 }
 0xca1   : > { %v4472_v59 = vpop.f32.mrf.mxu0 }
 0xca2   : > { %3908 = vst [vmem:[%s709_s29] sm:$0xf] %v4471_v37 }
 0xca3   : > { %v4473_v17 = vpop.f32.mrf.mxu0 }
 0xca4   : > { %5260 = shalt.err (!%p5257_p2)
}
 0xca5   : > { %s5261_s30 = scalar_lea.hbm %s6112_s9, 64  ;;  %s5265_s19 = scalar_lea.hbm %s6242_s3, 128 }
 0xca6   : > { %p5262_p7 = scmp.ne.s32.totalorder %s6112_s9, %s5261_s30  ;;  %p5266_p10 = scmp.lt.s32.totalorder %s6112_s9, %s6242_s3 }
 0xca7   : > { %p5267_p11 = scmp.lt.s32.totalorder %s5265_s19, %s5261_s30 }
 0xca8   : > { %p5263_p5 = pnand %p5262_p7, %p6243_p8 }
 0xca9   : > { %p5268_p12 = por %p5267_p11, %p5266_p10 }
 0xcaa   : > { %p5264_p9 = pneg %p5263_p5 }
 0xcac   : > { %p5269_p13 = pnand %p5268_p12, %p5264_p9 }
 0xcae   : > { %5272 = shalt.err (!%p5269_p13)
}
 0xcaf   : > { %4519 = dma.vmem_to_hbm [thread:$0]  (%p6243_p8), %s6114_s11, 64, %s6112_s9, %s3910_s15  }
 0xcb0 PF: > { %s3935_s21 = sand.u32 1, %s5319_s24   ;;  %p6244_p1 = scmp.ne.s32.totalorder %s6212_s23, 0 }
 0xcb1   : > { %p6245_p3 = scmp.ge.s32.totalorder %s5331_s27, 2  ;;  %s3936_s8 = scalar_lea.sflag [#allocation4], %s3935_s21 }
 0xcb3   : > { %p4557_p4 = pnand %p6245_p3, %p6244_p1 }
 0xcb5   : > { %p4558_p6 = pneg %p4557_p4 }
 0xcb7   : > { %5314 = dma.done.wait (%p4558_p6), %s3936_s8, 64  }
 0xcb8   : > { %5316 = vsyncadd (%p4558_p6), %s3936_s8, 4294967232  ;;  %p35_p0 = scmp.ge.s32.totalorder %s5597_s22, 4   ;;  %s6246_s24 = smov %s5323_s25 }
 0xcb9   : > { %s6247_s25 = smov %s5327_s26  ;;  %s6248_s26 = smov %s5608_s4 }
 0xcba   : > { %s6249_s27 = smov %s5597_s22  ;;  %37 = sbr.rel (!%p35_p0) target bundleno = 23 (0x17), region = 181 }
 0xcbf   :  { %3941 = vsyncpa [#allocation3], 1 }
 0xcc0   :  { %3943 = vsyncpa [#allocation3 + $0x1], 1 }
 0xcc1   :  { %3944 = vsyncpa [#allocation6], 1 }
 0xcc2   :  { %3945 = vsyncpa [#allocation9], 1 }
 0xcc3   :  { %3946 = vsyncpa [#allocation12], 1 }
 0xcc4   :  { %3947 = vsyncpa [#allocation15], 1 }
 0xcc5   :  { %3948 = vsyncpa [#allocation18], 1 }
 0xcc6   :  { %3949 = vsyncpa [#allocation4], 1 }
 0xcc7   :  { %3951 = vsyncpa [#allocation4 + $0x1], 1 }

</bundles_post_ra>
